<compile_context>
chip_gen: v7x
topology: tpu7x:2x2x1
jax: 0.10.0
libtpu: 0.0.40
codegen_flags: <defaults>
</compile_context>

<pallas_src>
import functools
import math

import jax
import jax.numpy as jnp
from jax.experimental import pallas as pl
from jax.experimental.pallas import tpu as pltpu


def _round_up(x, m):
    return ((x + m - 1) // m) * m


# ---------------------------------------------------------------------------
# Kernel 1: fused lin1 + ReLU + lin2 (dropout = identity at inference).
# Weights arrive pre-transposed to (in, out); hidden/class dims zero-padded.
# ---------------------------------------------------------------------------
def _mlp_kernel(x_ref, w1_ref, b1_ref, w2_ref, b2_ref, out_ref):
    h1 = jnp.dot(x_ref[...], w1_ref[...], preferred_element_type=jnp.float32)
    h1 = jnp.maximum(h1 + b1_ref[...], 0.0)
    h2 = jnp.dot(h1, w2_ref[...], preferred_element_type=jnp.float32)
    out_ref[...] = (h2 + b2_ref[...]).astype(out_ref.dtype)


def _mlp_forward(x_p, w1_tp, b1_p, w2_tp, b2_p, *, tile_m):
    n_p, fin = x_p.shape
    hid_p = w1_tp.shape[1]
    cp = w2_tp.shape[1]
    grid = (n_p // tile_m,)
    return pl.pallas_call(
        _mlp_kernel,
        out_shape=jax.ShapeDtypeStruct((n_p, cp), jnp.bfloat16),
        grid=grid,
        in_specs=[
            pl.BlockSpec((tile_m, fin), lambda i: (i, 0)),     # x rows
            pl.BlockSpec((fin, hid_p), lambda i: (0, 0)),      # W1 (in, hid_p)
            pl.BlockSpec((1, hid_p), lambda i: (0, 0)),        # b1 (padded)
            pl.BlockSpec((hid_p, cp), lambda i: (0, 0)),       # W2 (hid_p, cp)
            pl.BlockSpec((1, cp), lambda i: (0, 0)),           # b2 (padded)
        ],
        out_specs=pl.BlockSpec((tile_m, cp), lambda i: (i, 0)),
        compiler_params=pltpu.CompilerParams(
            dimension_semantics=("parallel",)),
    )(x_p, w1_tp, b1_p, w2_tp, b2_p)


# ---------------------------------------------------------------------------
# Kernel 2: one propagation step  z_new = A_hat @ z  (adjacency and z streamed
# bf16, f32 accumulation).  On the final step, the masked log_softmax over the
# real class columns is fused into the finalize.
# ---------------------------------------------------------------------------
def _prop_step_kernel(adj_ref, z_ref, out_ref, acc_ref, *, num_classes,
                      last_step):
    k = pl.program_id(1)

    @pl.when(k == 0)
    def _():
        acc_ref[...] = jnp.zeros_like(acc_ref)

    acc_ref[...] += jnp.dot(adj_ref[...], z_ref[...],
                            preferred_element_type=jnp.float32)

    @pl.when(k == pl.num_programs(1) - 1)
    def _():
        z = acc_ref[...]
        if last_step:
            # log_softmax over the real class columns only (pad cols masked).
            col = jax.lax.broadcasted_iota(jnp.int32, z.shape, 1)
            valid = col < num_classes
            zm = jnp.where(valid, z, jnp.full_like(z, -1e30))
            m = jnp.max(zm, axis=1, keepdims=True)
            e = jnp.where(valid, jnp.exp(zm - m), 0.0)
            lse = jnp.log(jnp.sum(e, axis=1, keepdims=True)) + m
            out_ref[...] = (zm - lse).astype(out_ref.dtype)
        else:
            out_ref[...] = z.astype(out_ref.dtype)


def _prop_step(adj_bf16, z, *, num_classes, last_step, tile_m, tile_k):
    n_p = adj_bf16.shape[0]
    cp = z.shape[1]
    grid = (n_p // tile_m, n_p // tile_k)
    out_dtype = jnp.float32 if last_step else jnp.bfloat16
    kernel = functools.partial(_prop_step_kernel, num_classes=num_classes,
                               last_step=last_step)
    cost = pl.CostEstimate(
        flops=2 * n_p * n_p * cp,
        transcendentals=(n_p * cp) if last_step else 0,
        bytes_accessed=n_p * n_p * 2 + n_p * cp * 2
        + n_p * cp * (4 if last_step else 2),
    )
    return pl.pallas_call(
        kernel,
        out_shape=jax.ShapeDtypeStruct((n_p, cp), out_dtype),
        grid=grid,
        in_specs=[
            pl.BlockSpec((tile_m, tile_k), lambda i, k: (i, k)),  # A_hat tile
            pl.BlockSpec((tile_k, cp), lambda i, k: (k, 0)),      # z rows
        ],
        out_specs=pl.BlockSpec((tile_m, cp), lambda i, k: (i, 0)),
        scratch_shapes=[pltpu.VMEM((tile_m, cp), jnp.float32)],
        compiler_params=pltpu.CompilerParams(
            dimension_semantics=("parallel", "arbitrary")),
        cost_estimate=cost,
    )(adj_bf16, z)


# ---------------------------------------------------------------------------
# Wrapper: padding / layout plumbing + the K propagation calls.
# ---------------------------------------------------------------------------
@functools.partial(jax.jit, static_argnames=("k_prop", "tile_m", "tile_k"))
def smpgnn_forward(x, adj_norm, w1, b1, w2, b2, *, k_prop=2,
                   tile_m=256, tile_k=256):
    assert k_prop >= 1
    n, fin = x.shape
    hid = w1.shape[0]
    c = w2.shape[0]

    lane = 128
    cp = _round_up(max(c, lane), lane)                 # lane-dense class dim
    hid_p = _round_up(max(hid, lane), lane)            # lane-dense hidden dim
    n_p = _round_up(n, math.lcm(tile_m, tile_k))       # row/contraction pad

    # Zero-pad node rows and adjacency; padded rows/cols contribute nothing.
    x_p = jnp.zeros((n_p, fin), jnp.float32).at[:n, :].set(x)
    adj_bf16 = jnp.zeros((n_p, n_p), jnp.bfloat16).at[:n, :n].set(
        jnp.asarray(adj_norm, jnp.float32).astype(jnp.bfloat16))

    # Pre-transpose weights to (in, out); zero-pad hidden / class columns.
    w1_tp = jnp.zeros((fin, hid_p), jnp.float32).at[:, :hid].set(
        jnp.asarray(w1, jnp.float32).T)                         # (fin, hid_p)
    b1_p = jnp.zeros((1, hid_p), jnp.float32).at[:, :hid].set(
        jnp.asarray(b1, jnp.float32).reshape(1, hid))
    w2_tp = jnp.zeros((hid_p, cp), jnp.float32).at[:hid, :c].set(
        jnp.asarray(w2, jnp.float32).T)                         # (hid_p, cp)
    b2_p = jnp.zeros((1, cp), jnp.float32).at[:, :c].set(
        jnp.asarray(b2, jnp.float32).reshape(1, c))

    # lin1 + ReLU + lin2 (row-parallel); result stored bf16 for propagation.
    z = _mlp_forward(x_p, w1_tp, b1_p, w2_tp, b2_p, tile_m=tile_m)

    # K propagation passes; last one fuses the log_softmax and emits f32.
    for step in range(k_prop):
        z = _prop_step(adj_bf16, z, num_classes=c,
                       last_step=(step == k_prop - 1),
                       tile_m=tile_m, tile_k=tile_k)

    return z[:n, :c]


def _reference(x, adj_norm, w1, b1, w2, b2, k_prop=2):
    h1 = jnp.maximum(x @ w1.T + b1, 0.0)
    h2 = h1 @ w2.T + b2
    z = h2
    for _ in range(k_prop):
        z = adj_norm @ z
    return jax.nn.log_softmax(z, axis=1)


if __name__ == "__main__":
    key = jax.random.PRNGKey(0)
    N = 512           # number of graph nodes
    IN_CH = 32        # in_channels
    HID = 64          # hidden_channels
    OUT_CH = 8        # out_channels (num classes)
    K_PROP = 2        # propagation steps

    k_x, k_adj, k_w1, k_b1, k_w2, k_b2 = jax.random.split(key, 6)

    # node features
    x = jax.random.normal(k_x, (N, IN_CH), dtype=jnp.float32)

    # deterministic symmetric adjacency with self-loops, symmetric-normalized:
    # A_hat = D^-1/2 (A + I) D^-1/2   (plain-JAX glue, not part of the kernel)
    a_rand = jax.random.uniform(k_adj, (N, N)) < 0.1
    a = jnp.logical_or(a_rand, a_rand.T).astype(jnp.float32)
    a = jnp.minimum(a + jnp.eye(N, dtype=jnp.float32), 1.0)
    deg = jnp.sum(a, axis=1)
    d_inv_sqrt = 1.0 / jnp.sqrt(deg)
    adj_norm = a * d_inv_sqrt[:, None] * d_inv_sqrt[None, :]

    # deterministic parameter init (PyTorch Linear weight layout: (out, in))
    w1 = jax.random.normal(k_w1, (HID, IN_CH), dtype=jnp.float32) * (1.0 / IN_CH ** 0.5)
    b1 = jax.random.normal(k_b1, (1, HID), dtype=jnp.float32) * 0.01
    w2 = jax.random.normal(k_w2, (OUT_CH, HID), dtype=jnp.float32) * (1.0 / HID ** 0.5)
    b2 = jax.random.normal(k_b2, (1, OUT_CH), dtype=jnp.float32) * 0.01

    out = smpgnn_forward(x, adj_norm, w1, b1, w2, b2, k_prop=K_PROP)
    out = jax.block_until_ready(out)

    ref = _reference(x, adj_norm, w1, b1, w2, b2, k_prop=K_PROP)
    assert out.shape == (N, OUT_CH)
    # bf16 adjacency / activation stream => small quantization error vs. the
    # f32 reference.
    assert jnp.allclose(out, ref, atol=5e-2, rtol=5e-2), (
        float(jnp.max(jnp.abs(out - ref))))

    print("KERNEL_OK")
</pallas_src>

<mosaic_0001>
module attributes {stable_mosaic.version = 11 : i64} {
  func.func @_mlp_kernel(%arg0: i32, %arg1: memref<256x32xf32, #tpu.memory_space<vmem>>, %arg2: memref<32x128xf32, #tpu.memory_space<vmem>>, %arg3: memref<1x128xf32, #tpu.memory_space<vmem>>, %arg4: memref<128x128xf32, #tpu.memory_space<vmem>>, %arg5: memref<1x128xf32, #tpu.memory_space<vmem>>, %arg6: memref<256x128xbf16, #tpu.memory_space<vmem>>) attributes {dimension_semantics = [#tpu.dimension_semantics<parallel>], iteration_bounds = array<i64: 2>, scalar_prefetch = 0 : i64, scratch_operands = 0 : i64, tpu.core_type = #tpu.core_type<tc>, window_params = [{transform_indices = @transform_0, window_bounds = array<i64: 256, 32>}, {pipeline_mode = #tpu.pipeline_mode<synchronous>, transform_indices = @transform_1, window_bounds = array<i64: 32, 128>}, {pipeline_mode = #tpu.pipeline_mode<synchronous>, transform_indices = @transform_2, window_bounds = array<i64: 1, 128>}, {pipeline_mode = #tpu.pipeline_mode<synchronous>, transform_indices = @transform_3, window_bounds = array<i64: 128, 128>}, {pipeline_mode = #tpu.pipeline_mode<synchronous>, transform_indices = @transform_4, window_bounds = array<i64: 1, 128>}, {transform_indices = @transform_5, window_bounds = array<i64: 256, 128>}]} {
    %c0 = arith.constant 0 : index
    %c0_0 = arith.constant 0 : index
    %0 = vector.load %arg1[%c0, %c0_0] : memref<256x32xf32, #tpu.memory_space<vmem>>, vector<256x32xf32>
    %c0_1 = arith.constant 0 : index
    %c0_2 = arith.constant 0 : index
    %1 = vector.load %arg2[%c0_1, %c0_2] : memref<32x128xf32, #tpu.memory_space<vmem>>, vector<32x128xf32>
    %cst = arith.constant dense<0.000000e+00> : vector<256x128xf32>
    %2 = tpu.matmul %0, %1, %cst {dimension_numbers = #tpu.dot_dimension_numbers<[1], [0], [0], [1], [0, 0, 1, 1], [], []>} : vector<256x32xf32>, vector<32x128xf32>, vector<256x128xf32> -> vector<256x128xf32>
    %c0_3 = arith.constant 0 : index
    %c0_4 = arith.constant 0 : index
    %3 = vector.load %arg3[%c0_3, %c0_4] : memref<1x128xf32, #tpu.memory_space<vmem>>, vector<1x128xf32>
    %4 = vector.broadcast %3 : vector<1x128xf32> to vector<256x128xf32>
    %5 = arith.addf %2, %4 : vector<256x128xf32>
    %cst_5 = arith.constant 0.000000e+00 : f32
    %6 = vector.broadcast %cst_5 : f32 to vector<256x128xf32>
    %7 = arith.maximumf %5, %6 : vector<256x128xf32>
    %c0_6 = arith.constant 0 : index
    %c0_7 = arith.constant 0 : index
    %8 = vector.load %arg4[%c0_6, %c0_7] : memref<128x128xf32, #tpu.memory_space<vmem>>, vector<128x128xf32>
    %cst_8 = arith.constant dense<0.000000e+00> : vector<256x128xf32>
    %9 = tpu.matmul %7, %8, %cst_8 {dimension_numbers = #tpu.dot_dimension_numbers<[1], [0], [0], [1], [0, 0, 1, 1], [], []>} : vector<256x128xf32>, vector<128x128xf32>, vector<256x128xf32> -> vector<256x128xf32>
    %c0_9 = arith.constant 0 : index
    %c0_10 = arith.constant 0 : index
    %10 = vector.load %arg5[%c0_9, %c0_10] : memref<1x128xf32, #tpu.memory_space<vmem>>, vector<1x128xf32>
    %11 = vector.broadcast %10 : vector<1x128xf32> to vector<256x128xf32>
    %12 = arith.addf %9, %11 : vector<256x128xf32>
    %13 = arith.truncf %12 : vector<256x128xf32> to vector<256x128xbf16>
    %c0_11 = arith.constant 0 : index
    %c0_12 = arith.constant 0 : index
    %14 = vector.load %arg6[%c0_11, %c0_12] : memref<256x128xbf16, #tpu.memory_space<vmem>>, vector<256x128xbf16>
    tpu.vector_store %arg6[%c0_11, %c0_12], %13 {strides = array<i32>} : memref<256x128xbf16, #tpu.memory_space<vmem>>, vector<256x128xbf16>,
    return
  }
  func.func @transform_0(%arg0: i32) -> (i32, i32) {
    %c0_i32 = arith.constant 0 : i32
    %c0_i32_0 = arith.constant 0 : i32
    return %arg0, %c0_i32 : i32, i32
  }
  func.func @transform_1(%arg0: i32) -> (i32, i32) {
    %c0_i32 = arith.constant 0 : i32
    %c0_i32_0 = arith.constant 0 : i32
    %c0_i32_1 = arith.constant 0 : i32
    return %c0_i32, %c0_i32_0 : i32, i32
  }
  func.func @transform_2(%arg0: i32) -> (i32, i32) {
    %c0_i32 = arith.constant 0 : i32
    %c0_i32_0 = arith.constant 0 : i32
    %c0_i32_1 = arith.constant 0 : i32
    return %c0_i32, %c0_i32_0 : i32, i32
  }
  func.func @transform_3(%arg0: i32) -> (i32, i32) {
    %c0_i32 = arith.constant 0 : i32
    %c0_i32_0 = arith.constant 0 : i32
    %c0_i32_1 = arith.constant 0 : i32
    return %c0_i32, %c0_i32_0 : i32, i32
  }
  func.func @transform_4(%arg0: i32) -> (i32, i32) {
    %c0_i32 = arith.constant 0 : i32
    %c0_i32_0 = arith.constant 0 : i32
    %c0_i32_1 = arith.constant 0 : i32
    return %c0_i32, %c0_i32_0 : i32, i32
  }
  func.func @transform_5(%arg0: i32) -> (i32, i32) {
    %c0_i32 = arith.constant 0 : i32
    %c0_i32_0 = arith.constant 0 : i32
    return %arg0, %c0_i32 : i32, i32
  }
}

module attributes {stable_mosaic.version = 11 : i64} {
  func.func @_prop_step_kernel(%arg0: i32, %arg1: i32, %arg2: memref<256x256xbf16, #tpu.memory_space<vmem>>, %arg3: memref<256x128xbf16, #tpu.memory_space<vmem>>, %arg4: memref<256x128xbf16, #tpu.memory_space<vmem>>, %arg5: memref<256x128xf32, #tpu.memory_space<vmem>>) attributes {dimension_semantics = [#tpu.dimension_semantics<parallel>, #tpu.dimension_semantics<arbitrary>], iteration_bounds = array<i64: 2, 2>, scalar_prefetch = 0 : i64, scratch_operands = 1 : i64, tpu.core_type = #tpu.core_type<tc>, window_params = [{transform_indices = @transform_0, window_bounds = array<i64: 256, 256>}, {transform_indices = @transform_1, window_bounds = array<i64: 256, 128>}, {transform_indices = @transform_2, window_bounds = array<i64: 256, 128>}]} {
    %c0_i32 = arith.constant 0 : i32
    %0 = arith.cmpi eq, %arg1, %c0_i32 : i32
    %1 = arith.extui %0 : i1 to i32
    %c0_i32_0 = arith.constant 0 : i32
    %2 = arith.cmpi ne, %1, %c0_i32_0 : i32
    scf.if %2 {
      %cst_9 = arith.constant 0.000000e+00 : f32
      %12 = vector.broadcast %cst_9 : f32 to vector<256x128xf32>
      %c0_10 = arith.constant 0 : index
      %c0_11 = arith.constant 0 : index
      %13 = vector.load %arg5[%c0_10, %c0_11] : memref<256x128xf32, #tpu.memory_space<vmem>>, vector<256x128xf32>
      tpu.vector_store %arg5[%c0_10, %c0_11], %12 {strides = array<i32>} : memref<256x128xf32, #tpu.memory_space<vmem>>, vector<256x128xf32>,
    } else {
    }
    %c0 = arith.constant 0 : index
    %c0_1 = arith.constant 0 : index
    %3 = vector.load %arg5[%c0, %c0_1] : memref<256x128xf32, #tpu.memory_space<vmem>>, vector<256x128xf32>
    %c0_2 = arith.constant 0 : index
    %c0_3 = arith.constant 0 : index
    %4 = vector.load %arg2[%c0_2, %c0_3] : memref<256x256xbf16, #tpu.memory_space<vmem>>, vector<256x256xbf16>
    %c0_4 = arith.constant 0 : index
    %c0_5 = arith.constant 0 : index
    %5 = vector.load %arg3[%c0_4, %c0_5] : memref<256x128xbf16, #tpu.memory_space<vmem>>, vector<256x128xbf16>
    %cst = arith.constant dense<0.000000e+00> : vector<256x128xf32>
    %6 = tpu.matmul %4, %5, %cst {dimension_numbers = #tpu.dot_dimension_numbers<[1], [0], [0], [1], [0, 0, 1, 1], [], []>} : vector<256x256xbf16>, vector<256x128xbf16>, vector<256x128xf32> -> vector<256x128xf32>
    %7 = arith.addf %3, %6 : vector<256x128xf32>
    %c0_6 = arith.constant 0 : index
    %c0_7 = arith.constant 0 : index
    %8 = vector.load %arg5[%c0_6, %c0_7] : memref<256x128xf32, #tpu.memory_space<vmem>>, vector<256x128xf32>
    tpu.vector_store %arg5[%c0_6, %c0_7], %7 {strides = array<i32>} : memref<256x128xf32, #tpu.memory_space<vmem>>, vector<256x128xf32>,
    %c1_i32 = arith.constant 1 : i32
    %9 = arith.cmpi eq, %arg1, %c1_i32 : i32
    %10 = arith.extui %9 : i1 to i32
    %c0_i32_8 = arith.constant 0 : i32
    %11 = arith.cmpi ne, %10, %c0_i32_8 : i32
    scf.if %11 {
      %c0_9 = arith.constant 0 : index
      %c0_10 = arith.constant 0 : index
      %12 = vector.load %arg5[%c0_9, %c0_10] : memref<256x128xf32, #tpu.memory_space<vmem>>, vector<256x128xf32>
      %13 = arith.truncf %12 : vector<256x128xf32> to vector<256x128xbf16>
      %c0_11 = arith.constant 0 : index
      %c0_12 = arith.constant 0 : index
      %14 = vector.load %arg4[%c0_11, %c0_12] : memref<256x128xbf16, #tpu.memory_space<vmem>>, vector<256x128xbf16>
      tpu.vector_store %arg4[%c0_11, %c0_12], %13 {strides = array<i32>} : memref<256x128xbf16, #tpu.memory_space<vmem>>, vector<256x128xbf16>,
    } else {
    }
    return
  }
  func.func @transform_0(%arg0: i32, %arg1: i32) -> (i32, i32) {
    %c0_i32 = arith.constant 0 : i32
    return %arg0, %arg1 : i32, i32
  }
  func.func @transform_1(%arg0: i32, %arg1: i32) -> (i32, i32) {
    %c0_i32 = arith.constant 0 : i32
    %c0_i32_0 = arith.constant 0 : i32
    return %arg1, %c0_i32 : i32, i32
  }
  func.func @transform_2(%arg0: i32, %arg1: i32) -> (i32, i32) {
    %c0_i32 = arith.constant 0 : i32
    %c0_i32_0 = arith.constant 0 : i32
    return %arg0, %c0_i32 : i32, i32
  }
}

module attributes {stable_mosaic.version = 11 : i64} {
  func.func @_prop_step_kernel(%arg0: i32, %arg1: i32, %arg2: memref<256x256xbf16, #tpu.memory_space<vmem>>, %arg3: memref<256x128xbf16, #tpu.memory_space<vmem>>, %arg4: memref<256x128xf32, #tpu.memory_space<vmem>>, %arg5: memref<256x128xf32, #tpu.memory_space<vmem>>) attributes {dimension_semantics = [#tpu.dimension_semantics<parallel>, #tpu.dimension_semantics<arbitrary>], iteration_bounds = array<i64: 2, 2>, scalar_prefetch = 0 : i64, scratch_operands = 1 : i64, tpu.core_type = #tpu.core_type<tc>, window_params = [{transform_indices = @transform_0, window_bounds = array<i64: 256, 256>}, {transform_indices = @transform_1, window_bounds = array<i64: 256, 128>}, {transform_indices = @transform_2, window_bounds = array<i64: 256, 128>}]} {
    %c0_i32 = arith.constant 0 : i32
    %0 = arith.cmpi eq, %arg1, %c0_i32 : i32
    %1 = arith.extui %0 : i1 to i32
    %c0_i32_0 = arith.constant 0 : i32
    %2 = arith.cmpi ne, %1, %c0_i32_0 : i32
    scf.if %2 {
      %cst_9 = arith.constant 0.000000e+00 : f32
      %12 = vector.broadcast %cst_9 : f32 to vector<256x128xf32>
      %c0_10 = arith.constant 0 : index
      %c0_11 = arith.constant 0 : index
      %13 = vector.load %arg5[%c0_10, %c0_11] : memref<256x128xf32, #tpu.memory_space<vmem>>, vector<256x128xf32>
      tpu.vector_store %arg5[%c0_10, %c0_11], %12 {strides = array<i32>} : memref<256x128xf32, #tpu.memory_space<vmem>>, vector<256x128xf32>,
    } else {
    }
    %c0 = arith.constant 0 : index
    %c0_1 = arith.constant 0 : index
    %3 = vector.load %arg5[%c0, %c0_1] : memref<256x128xf32, #tpu.memory_space<vmem>>, vector<256x128xf32>
    %c0_2 = arith.constant 0 : index
    %c0_3 = arith.constant 0 : index
    %4 = vector.load %arg2[%c0_2, %c0_3] : memref<256x256xbf16, #tpu.memory_space<vmem>>, vector<256x256xbf16>
    %c0_4 = arith.constant 0 : index
    %c0_5 = arith.constant 0 : index
    %5 = vector.load %arg3[%c0_4, %c0_5] : memref<256x128xbf16, #tpu.memory_space<vmem>>, vector<256x128xbf16>
    %cst = arith.constant dense<0.000000e+00> : vector<256x128xf32>
    %6 = tpu.matmul %4, %5, %cst {dimension_numbers = #tpu.dot_dimension_numbers<[1], [0], [0], [1], [0, 0, 1, 1], [], []>} : vector<256x256xbf16>, vector<256x128xbf16>, vector<256x128xf32> -> vector<256x128xf32>
    %7 = arith.addf %3, %6 : vector<256x128xf32>
    %c0_6 = arith.constant 0 : index
    %c0_7 = arith.constant 0 : index
    %8 = vector.load %arg5[%c0_6, %c0_7] : memref<256x128xf32, #tpu.memory_space<vmem>>, vector<256x128xf32>
    tpu.vector_store %arg5[%c0_6, %c0_7], %7 {strides = array<i32>} : memref<256x128xf32, #tpu.memory_space<vmem>>, vector<256x128xf32>,
    %c1_i32 = arith.constant 1 : i32
    %9 = arith.cmpi eq, %arg1, %c1_i32 : i32
    %10 = arith.extui %9 : i1 to i32
    %c0_i32_8 = arith.constant 0 : i32
    %11 = arith.cmpi ne, %10, %c0_i32_8 : i32
    scf.if %11 {
      %c0_9 = arith.constant 0 : index
      %c0_10 = arith.constant 0 : index
      %12 = vector.load %arg5[%c0_9, %c0_10] : memref<256x128xf32, #tpu.memory_space<vmem>>, vector<256x128xf32>
      %13 = tpu.iota {dimensions = array<i32: 1>} : vector<256x128xi32>
      %c8_i32 = arith.constant 8 : i32
      %14 = vector.broadcast %c8_i32 : i32 to vector<256x128xi32>
      %15 = arith.cmpi slt, %13, %14 : vector<256x128xi32>
      %cst_11 = arith.constant -1.000000e+30 : f32
      %16 = vector.broadcast %cst_11 : f32 to vector<256x128xf32>
      %17 = arith.select %15, %12, %16 : vector<256x128xi1>, vector<256x128xf32>
      %cst_12 = arith.constant dense<0xFF800000> : vector<256xf32>
      %18 = vector.multi_reduction <maximumf>, %17, %cst_12 [1] : vector<256x128xf32> to vector<256xf32>
      %19 = vector.shape_cast %18 : vector<256xf32> to vector<256x1xf32>
      %20 = vector.broadcast %19 : vector<256x1xf32> to vector<256x128xf32>
      %21 = arith.subf %17, %20 : vector<256x128xf32>
      %22 = math.exp %21 : vector<256x128xf32>
      %cst_13 = arith.constant 0.000000e+00 : f32
      %23 = vector.broadcast %cst_13 : f32 to vector<256x128xf32>
      %24 = arith.select %15, %22, %23 : vector<256x128xi1>, vector<256x128xf32>
      %cst_14 = arith.constant dense<0.000000e+00> : vector<256xf32>
      %25 = vector.multi_reduction <add>, %24, %cst_14 [1] : vector<256x128xf32> to vector<256xf32>
      %26 = vector.shape_cast %25 : vector<256xf32> to vector<256x1xf32>
      %27 = math.log %26 : vector<256x1xf32>
      %28 = arith.addf %27, %19 : vector<256x1xf32>
      %29 = vector.broadcast %28 : vector<256x1xf32> to vector<256x128xf32>
      %30 = arith.subf %17, %29 : vector<256x128xf32>
      %c0_15 = arith.constant 0 : index
      %c0_16 = arith.constant 0 : index
      %31 = vector.load %arg4[%c0_15, %c0_16] : memref<256x128xf32, #tpu.memory_space<vmem>>, vector<256x128xf32>
      tpu.vector_store %arg4[%c0_15, %c0_16], %30 {strides = array<i32>} : memref<256x128xf32, #tpu.memory_space<vmem>>, vector<256x128xf32>,
    } else {
    }
    return
  }
  func.func @transform_0(%arg0: i32, %arg1: i32) -> (i32, i32) {
    %c0_i32 = arith.constant 0 : i32
    return %arg0, %arg1 : i32, i32
  }
  func.func @transform_1(%arg0: i32, %arg1: i32) -> (i32, i32) {
    %c0_i32 = arith.constant 0 : i32
    %c0_i32_0 = arith.constant 0 : i32
    return %arg1, %c0_i32 : i32, i32
  }
  func.func @transform_2(%arg0: i32, %arg1: i32) -> (i32, i32) {
    %c0_i32 = arith.constant 0 : i32
    %c0_i32_0 = arith.constant 0 : i32
    return %arg0, %c0_i32 : i32, i32
  }
}

</mosaic_0001>

<bundles_post_ra>
// kernel: smpgnn_forward.3
= control target key start
LH: loop header
LB: loop body
LE: loop exit
PB: predicated region body
PF: predicated region fallthrough
CT: control target
= control target key end

     0   :  { %s1615_s18 = smov 0   ;;  %s1854_s0 = inlined_call_operand.vmem [shape: f32[512,32], index: 0, kind: input, shape index: {}]   ;;  %s1855_s1 = inlined_call_operand.vmem [shape: f32[32,128], index: 1, kind: input, shape index: {}]   ;;  %s1856_s2 = inlined_call_operand.vmem [shape: f32[1,128], index: 2, kind: input, shape index: {}]   ;;  %s1857_s3 = inlined_call_operand.vmem [shape: f32[128,128], index: 3, kind: input, shape index: {}]   ;;  %s1858_s4 = inlined_call_operand.vmem [shape: f32[1,128], index: 4, kind: input, shape index: {}]   ;;  %s1859_s5 = inlined_call_operand.vmem [shape: bf16[512,128], index: 5, kind: output, shape index: {}]  }
   0x1 LB: > { %s1089_s19 = sadd.s32 4294967295, %s1583_s18   ;;  %p1093_p0 = scmp.ge.s32.totalorder %s1583_s18, 1  ;;  %s1583_s18 = sphi %s1615_s18, %s15_s18  }
   0x2   : > { %p188_p1 = scmp.lt.s32.totalorder %s1583_s18, 3 }
   0x4   : > { %p189_p2 = pnand %p1093_p0, %p188_p1 }
   0x5   : > { %v260_v0 = vld [vmem:[%s1855_s1] sm:$0xff] (!%p189_p2)  ;;  %v261_v1 = vld [vmem:[%s1855_s1 + $0x8] sm:$0xff] (!%p189_p2)  ;;  %v262_v2 = vld [vmem:[%s1855_s1 + $0x10] sm:$0xff] (!%p189_p2)  ;;  %s1094_s26 = sshll.u32 (!%p189_p2), %s1089_s19, 5  ;;  %vm271_vm0 = vcmask (!%p189_p2), 261120  }
   0x6   : > { %192 = sbr.rel (%p189_p2) target bundleno = 514 (0x202), region = 40  ;;  %v1513_v3 = vpack.c.bf16 (!%p189_p2), %v261_v1, %v260_v0  ;;  %v263_v4 = vld [vmem:[%s1855_s1 + $0x18] sm:$0xff] (!%p189_p2)  ;;  %p217_p3 = scmp.lt.s32.totalorder (!%p189_p2), %s1094_s26, 63  ;;  %v625_v5 = vld [vmem:[%s1857_s3] sm:$0xff] (!%p189_p2)  ;;  %v626_v6 = vld [vmem:[%s1857_s3 + $0x8] sm:$0xff] (!%p189_p2) }
   0x7   : > { %v1517_v7 = vpack.c.bf16 (!%p189_p2), %v263_v4, %v262_v2  ;;  %v1521_v8 = vpack.c.bf16 (!%p189_p2), %v626_v6, %v625_v5  ;;  %v627_v9 = vld [vmem:[%s1857_s3 + $0x10] sm:$0xff] (!%p189_p2)  ;;  %v628_v10 = vld [vmem:[%s1857_s3 + $0x18] sm:$0xff] (!%p189_p2)  ;;  %v629_v12 = vld [vmem:[%s1857_s3 + $0x20] sm:$0xff] (!%p189_p2) }
   0x8   : > { %1514 = vmatprep.subr.bf16.mxu0 (!%p189_p2), %v1513_v3  ;;  %v1525_v11 = vpack.c.bf16 (!%p189_p2), %v628_v10, %v627_v9  ;;  %v630_v13 = vld [vmem:[%s1857_s3 + $0x28] sm:$0xff] (!%p189_p2)  ;;  %v631_v18 = vld [vmem:[%s1857_s3 + $0x30] sm:$0xff] (!%p189_p2)  ;;  %v632_v19 = vld [vmem:[%s1857_s3 + $0x38] sm:$0xff] (!%p189_p2) }
   0x9   : > { %1516 = vmatpush3.bf16.msra.mxu0 (!%p189_p2), %v1513_v3  ;;  %1553 = vmatprep.subr.bf16.mxu1 (!%p189_p2), %v1521_v8  ;;  %v1529_v16 = vpack.c.bf16 (!%p189_p2), %v630_v13, %v629_v12  ;;  %v1533_v21 = vpack.c.bf16 (!%p189_p2), %v632_v19, %v631_v18  ;;  %v633_v23 = vld [vmem:[%s1857_s3 + $0x40] sm:$0xff] (!%p189_p2)  ;;  %v634_v24 = vld [vmem:[%s1857_s3 + $0x48] sm:$0xff] (!%p189_p2)  ;;  %v635_v28 = vld [vmem:[%s1857_s3 + $0x50] sm:$0xff] (!%p189_p2) }
   0xa   : > { %1518 = vmatprep.subr.bf16.mxu0 (!%p189_p2), %v1517_v7  ;;  %1561 = vmatpush3.bf16.msra.mxu1 (!%p189_p2), %v1521_v8  ;;  %v1537_v26 = vpack.c.bf16 (!%p189_p2), %v634_v24, %v633_v23  ;;  %v636_v29 = vld [vmem:[%s1857_s3 + $0x58] sm:$0xff] (!%p189_p2)  ;;  %v637_v33 = vld [vmem:[%s1857_s3 + $0x60] sm:$0xff] (!%p189_p2)  ;;  %v638_v34 = vld [vmem:[%s1857_s3 + $0x68] sm:$0xff] (!%p189_p2) }
   0xb   : > { %1554 = vmatprep.subr.bf16.mxu1 (!%p189_p2), %v1525_v11  ;;  %v1541_v31 = vpack.c.bf16 (!%p189_p2), %v636_v29, %v635_v28  ;;  %v1545_v36 = vpack.c.bf16 (!%p189_p2), %v638_v34, %v637_v33  ;;  %v639_v59 = vld [vmem:[%s1857_s3 + $0x70] sm:$0xff] (!%p189_p2)  ;;  %v640_v60 = vld [vmem:[%s1857_s3 + $0x78] sm:$0xff] (!%p189_p2)  ;;  %v1758_v62 = vld [vmem:[%s1856_s2] ss:$0 sm:$0xff] (!%p189_p2) }
   0xc   : > { %v1549_v61 = vpack.c.bf16 (!%p189_p2), %v640_v60, %v639_v59 }
   0xd   : > { %s1861_s26 = smov (!%p217_p3, %s1094_s26), 63  ;;  %1520 = vmatpush3.bf16.msra.mxu0 %v1517_v7 }
   0xe   : > { %s1095_s12 = sshll.u32 %s1861_s26, 3  ;;  %1522 = vmatprep.subr.bf16.mxu0 %v1521_v8  ;;  %1562 = vmatpush3.bf16.msra.mxu1 %v1525_v11  ;;  %s1097_s22 = sshll.u32 %s1861_s26, 2 }
   0xf   : > { %s1659_s20 = scalar_lea.vmem %s1854_s0, %s1095_s12  ;;  %1555 = vmatprep.subr.bf16.mxu1 %v1529_v16  ;;  %s1803_s25 = scalar_lea.vmem %s1859_s5, %s1097_s22 }
  0x10   : > { %v228_v14 = vld [vmem:[%s1659_s20] sm:$0xff]  ;;  %v229_v15 = vld [vmem:[%s1659_s20 + $0x8] sm:$0xff]  ;;  %v230_v17 = vld [vmem:[%s1659_s20 + $0x10] sm:$0xff] }
  0x11   : > { %1385 = vmatprep.mubr.msk.f32.mxu0 %vm271_vm0, %v228_v14  ;;  %v231_v20 = vld [vmem:[%s1659_s20 + $0x18] sm:$0xff]  ;;  %v232_v22 = vld [vmem:[%s1659_s20 + $0x20] sm:$0xff]  ;;  %v233_v25 = vld [vmem:[%s1659_s20 + $0x28] sm:$0xff] }
  0x12   : > { %1386 = vmatmul.mubr.msk.f32.vlgmr.msra.gmra.mrb[0].mxu0 %vm271_vm0, %v229_v15  ;;  %1563 = vmatpush3.bf16.msra.mxu1 %v1529_v16  ;;  %v234_v27 = vld [vmem:[%s1659_s20 + $0x30] sm:$0xff]  ;;  %v235_v30 = vld [vmem:[%s1659_s20 + $0x38] sm:$0xff]  ;;  %v236_v32 = vld [vmem:[%s1659_s20 + $0x40] sm:$0xff] }
  0x13   : > { %1388 = vmatprep.mubr.msk.f32.mxu0 %vm271_vm0, %v230_v17  ;;  %1524 = vmatpush3.bf16.msra.mxu0 %v1521_v8  ;;  %v237_v35 = vld [vmem:[%s1659_s20 + $0x48] sm:$0xff]  ;;  %v238_v37 = vld [vmem:[%s1659_s20 + $0x50] sm:$0xff]  ;;  %v239_v38 = vld [vmem:[%s1659_s20 + $0x58] sm:$0xff] }
  0x14   : > { %1526 = vmatprep.subr.bf16.mxu0 %v1525_v11  ;;  %1556 = vmatprep.subr.bf16.mxu1 %v1533_v21  ;;  %v240_v39 = vld [vmem:[%s1659_s20 + $0x60] sm:$0xff]  ;;  %v241_v40 = vld [vmem:[%s1659_s20 + $0x68] sm:$0xff]  ;;  %v242_v41 = vld [vmem:[%s1659_s20 + $0x70] sm:$0xff] }
  0x15   : > { %v243_v42 = vld [vmem:[%s1659_s20 + $0x78] sm:$0xff]  ;;  %v244_v43 = vld [vmem:[%s1659_s20 + $0x80] sm:$0xff]  ;;  %v245_v44 = vld [vmem:[%s1659_s20 + $0x88] sm:$0xff] }
  0x16   : > { %1389 = vmatmul.mubr.msk.f32.gmra.mrb[2].mxu0 %vm271_vm0, %v231_v20  ;;  %1564 = vmatpush3.bf16.msra.mxu1 %v1533_v21  ;;  %v246_v45 = vld [vmem:[%s1659_s20 + $0x90] sm:$0xff]  ;;  %v247_v46 = vld [vmem:[%s1659_s20 + $0x98] sm:$0xff]  ;;  %v248_v47 = vld [vmem:[%s1659_s20 + $0xa0] sm:$0xff] }
  0x17   : > { %1391 = vmatprep.mubr.msk.f32.mxu0 %vm271_vm0, %v232_v22  ;;  %1528 = vmatpush3.bf16.msra.mxu0 %v1525_v11  ;;  %v249_v48 = vld [vmem:[%s1659_s20 + $0xa8] sm:$0xff]  ;;  %v250_v49 = vld [vmem:[%s1659_s20 + $0xb0] sm:$0xff]  ;;  %v251_v50 = vld [vmem:[%s1659_s20 + $0xb8] sm:$0xff] }
  0x18   : > { %1530 = vmatprep.subr.bf16.mxu0 %v1529_v16  ;;  %1557 = vmatprep.subr.bf16.mxu1 %v1537_v26  ;;  %v252_v51 = vld [vmem:[%s1659_s20 + $0xc0] sm:$0xff]  ;;  %v253_v52 = vld [vmem:[%s1659_s20 + $0xc8] sm:$0xff]  ;;  %v254_v53 = vld [vmem:[%s1659_s20 + $0xd0] sm:$0xff] }
  0x19   : > { %v255_v54 = vld [vmem:[%s1659_s20 + $0xd8] sm:$0xff]  ;;  %v256_v55 = vld [vmem:[%s1659_s20 + $0xe0] sm:$0xff]  ;;  %v257_v56 = vld [vmem:[%s1659_s20 + $0xe8] sm:$0xff] }
  0x1a   : > { %1392 = vmatmul.mubr.msk.f32.gmra.mrb[4].mxu0 %vm271_vm0, %v233_v25  ;;  %1565 = vmatpush3.bf16.msra.mxu1 %v1537_v26  ;;  %v258_v57 = vld [vmem:[%s1659_s20 + $0xf0] sm:$0xff]  ;;  %v259_v58 = vld [vmem:[%s1659_s20 + $0xf8] sm:$0xff] }
  0x1b   : > { %1394 = vmatprep.mubr.msk.f32.mxu0 %vm271_vm0, %v234_v27  ;;  %1532 = vmatpush3.bf16.msra.mxu0 %v1529_v16 }
  0x1c   : > { %1534 = vmatprep.subr.bf16.mxu0 %v1533_v21  ;;  %1558 = vmatprep.subr.bf16.mxu1 %v1541_v31 }
  0x1e   : > { %1395 = vmatmul.mubr.msk.f32.gmra.mrb[6].mxu0 %vm271_vm0, %v235_v30  ;;  %1566 = vmatpush3.bf16.msra.mxu1 %v1541_v31 }
  0x1f   : > { %1397 = vmatprep.mubr.msk.f32.mxu0 %vm271_vm0, %v236_v32  ;;  %1536 = vmatpush3.bf16.msra.mxu0 %v1533_v21 }
  0x20   : > { %1538 = vmatprep.subr.bf16.mxu0 %v1537_v26  ;;  %1559 = vmatprep.subr.bf16.mxu1 %v1545_v36 }
  0x22   : > { %1398 = vmatmul.mubr.msk.f32.gmra.mrb[8].mxu0 %vm271_vm0, %v237_v35  ;;  %1567 = vmatpush3.bf16.msra.mxu1 %v1545_v36 }
  0x23   : > { %1400 = vmatprep.mubr.msk.f32.mxu0 %vm271_vm0, %v238_v37  ;;  %1540 = vmatpush3.bf16.msra.mxu0 %v1537_v26 }
  0x24   : > { %1542 = vmatprep.subr.bf16.mxu0 %v1541_v31  ;;  %1560 = vmatprep.subr.bf16.mxu1 %v1549_v61 }
  0x26   : > { %1401 = vmatmul.mubr.msk.f32.gmra.mrb[10].mxu0 %vm271_vm0, %v239_v38  ;;  %1568 = vmatpush3.bf16.msra.mxu1 %v1549_v61 }
  0x27   : > { %1403 = vmatprep.mubr.msk.f32.mxu0 %vm271_vm0, %v240_v39  ;;  %1544 = vmatpush3.bf16.msra.mxu0 %v1541_v31 }
  0x28   : > { %1546 = vmatprep.subr.bf16.mxu0 %v1545_v36 }
  0x2a   : > { %1404 = vmatmul.mubr.msk.f32.gmra.mrb[12].mxu0 %vm271_vm0, %v241_v40 }
  0x2b   : > { %1406 = vmatprep.mubr.msk.f32.mxu0 %vm271_vm0, %v242_v41  ;;  %1548 = vmatpush3.bf16.msra.mxu0 %v1545_v36 }
  0x2c   : > { %1550 = vmatprep.subr.bf16.mxu0 %v1549_v61 }
  0x2e   : > { %1407 = vmatmul.mubr.msk.f32.gmra.mrb[14].mxu0 %vm271_vm0, %v243_v42 }
  0x2f   : > { %1409 = vmatprep.mubr.msk.f32.mxu0 %vm271_vm0, %v244_v43  ;;  %1552 = vmatpush3.bf16.msra.mxu0 %v1549_v61 }
  0x32   : > { %1410 = vmatmul.mubr.msk.f32.gmra.mrb[16].mxu0 %vm271_vm0, %v245_v44 }
  0x33   : > { %1412 = vmatprep.mubr.msk.f32.mxu0 %vm271_vm0, %v246_v45 }
  0x36   : > { %1413 = vmatmul.mubr.msk.f32.gmra.mrb[18].mxu0 %vm271_vm0, %v247_v46 }
  0x37   : > { %1415 = vmatprep.mubr.msk.f32.mxu0 %vm271_vm0, %v248_v47 }
  0x3a   : > { %1416 = vmatmul.mubr.msk.f32.gmra.mrb[20].mxu0 %vm271_vm0, %v249_v48 }
  0x3b   : > { %1418 = vmatprep.mubr.msk.f32.mxu0 %vm271_vm0, %v250_v49 }
  0x3e   : > { %1419 = vmatmul.mubr.msk.f32.gmra.mrb[22].mxu0 %vm271_vm0, %v251_v50 }
  0x3f   : > { %1421 = vmatprep.mubr.msk.f32.mxu0 %vm271_vm0, %v252_v51 }
  0x42   : > { %1422 = vmatmul.mubr.msk.f32.gmra.mrb[24].mxu0 %vm271_vm0, %v253_v52 }
  0x43   : > { %1424 = vmatprep.mubr.msk.f32.mxu0 %vm271_vm0, %v254_v53 }
  0x46   : > { %1425 = vmatmul.mubr.msk.f32.gmra.mrb[26].mxu0 %vm271_vm0, %v255_v54 }
  0x47   : > { %1427 = vmatprep.mubr.msk.f32.mxu0 %vm271_vm0, %v256_v55 }
  0x4a   : > { %1428 = vmatmul.mubr.msk.f32.gmra.mrb[28].mxu0 %vm271_vm0, %v257_v56 }
  0x4b   : > { %1430 = vmatprep.mubr.msk.f32.mxu0 %vm271_vm0, %v258_v57 }
  0x4e   : > { %1431 = vmatmul.mubr.msk.f32.gmra.mrb[30].mxu0 %vm271_vm0, %v259_v58 }
  0xe5   : > { %v1387_v63 = vpop.f32.mrb[0].mxu0 }
  0xe6   : > { %v440_v0 = vadd.f32 %v1387_v63, %v1758_v62  ;;  %v434_v1 = vpop.f32.mrb[1].mxu0 }
  0xe7   : > { %v435_v2 = vadd.f32 %v1758_v62, %v434_v1 }
  0xe8   : > { %v594_v5 = vmax.f32 %v440_v0, 0.0 }
  0xe9   : > { %v593_v3 = vmax.f32 %v435_v2, 0.0  ;;  %v1390_v4 = vpop.f32.mrb[2].mxu0 }
  0xea   : > { %v450_v6 = vadd.f32 %v1390_v4, %v1758_v62  ;;  %v444_v7 = vpop.f32.mrb[3].mxu0 }
  0xeb   : > { %v445_v8 = vadd.f32 %v1758_v62, %v444_v7  ;;  %1465 = vmatprep.mubr.f32.mxu0 %v593_v3 }
  0xec   : > { %1466 = vmatmul.mubr.f32.vlgmr.msra.gmra.mrb[32].mxu0 %v594_v5  ;;  %v596_v11 = vmax.f32 %v450_v6, 0.0 }
  0xed   : > { %v595_v9 = vmax.f32 %v445_v8, 0.0  ;;  %v1393_v10 = vpop.f32.mrb[4].mxu0 }
  0xee   : > { %v460_v12 = vadd.f32 %v1393_v10, %v1758_v62  ;;  %v454_v13 = vpop.f32.mrb[5].mxu0 }
  0xef   : > { %v455_v14 = vadd.f32 %v1758_v62, %v454_v13  ;;  %1468 = vmatprep.mubr.f32.mxu0 %v595_v9 }
  0xf0   : > { %1469 = vmatmul.mubr.f32.gmra.mrb[34].mxu0 %v596_v11  ;;  %v598_v17 = vmax.f32 %v460_v12, 0.0 }
  0xf1   : > { %v597_v15 = vmax.f32 %v455_v14, 0.0  ;;  %v1396_v16 = vpop.f32.mrb[6].mxu0 }
  0xf2   : > { %v470_v18 = vadd.f32 %v1396_v16, %v1758_v62  ;;  %v464_v19 = vpop.f32.mrb[7].mxu0 }
  0xf3   : > { %1471 = vmatprep.mubr.f32.mxu0 %v597_v15  ;;  %v465_v20 = vadd.f32 %v1758_v62, %v464_v19 }
  0xf4   : > { %1472 = vmatmul.mubr.f32.gmra.mrb[36].mxu0 %v598_v17  ;;  %v600_v23 = vmax.f32 %v470_v18, 0.0 }
  0xf5   : > { %v1399_v21 = vpop.f32.mrb[8].mxu0  ;;  %v599_v22 = vmax.f32 %v465_v20, 0.0 }
  0xf6   : > { %v480_v24 = vadd.f32 %v1399_v21, %v1758_v62  ;;  %v474_v25 = vpop.f32.mrb[9].mxu0 }
  0xf7   : > { %v475_v26 = vadd.f32 %v1758_v62, %v474_v25  ;;  %1474 = vmatprep.mubr.f32.mxu1 %v599_v22 }
  0xf8   : > { %1475 = vmatmul.mubr.f32.vlgmr.msra.gmra.mrb[0].mxu1 %v600_v23  ;;  %v602_v29 = vmax.f32 %v480_v24, 0.0 }
  0xf9   : > { %v601_v27 = vmax.f32 %v475_v26, 0.0  ;;  %v1402_v28 = vpop.f32.mrb[10].mxu0 }
  0xfa   : > { %v490_v30 = vadd.f32 %v1402_v28, %v1758_v62  ;;  %v484_v31 = vpop.f32.mrb[11].mxu0 }
  0xfb   : > { %v485_v32 = vadd.f32 %v1758_v62, %v484_v31  ;;  %1477 = vmatprep.mubr.f32.mxu1 %v601_v27 }
  0xfc   : > { %1478 = vmatmul.mubr.f32.gmra.mrb[2].mxu1 %v602_v29  ;;  %v604_v35 = vmax.f32 %v490_v30, 0.0 }
  0xfd   : > { %v603_v33 = vmax.f32 %v485_v32, 0.0  ;;  %v1405_v34 = vpop.f32.mrb[12].mxu0  ;;  %v1795_v32 = vld [vmem:[%s1858_s4] ss:$0 sm:$0xff] }
  0xfe   : > { %v500_v36 = vadd.f32 %v1405_v34, %v1758_v62  ;;  %v494_v37 = vpop.f32.mrb[13].mxu0 }
  0xff   : > { %v495_v38 = vadd.f32 %v1758_v62, %v494_v37  ;;  %1480 = vmatprep.mubr.f32.mxu1 %v603_v33 }
 0x100   : > { %1481 = vmatmul.mubr.f32.gmra.mrb[4].mxu1 %v604_v35  ;;  %v606_v41 = vmax.f32 %v500_v36, 0.0 }
 0x101   : > { %v605_v39 = vmax.f32 %v495_v38, 0.0  ;;  %v1408_v40 = vpop.f32.mrb[14].mxu0 }
 0x102   : > { %v510_v42 = vadd.f32 %v1408_v40, %v1758_v62  ;;  %v504_v43 = vpop.f32.mrb[15].mxu0 }
 0x103   : > { %v505_v44 = vadd.f32 %v1758_v62, %v504_v43  ;;  %1483 = vmatprep.mubr.f32.mxu1 %v605_v39 }
 0x104   : > { %1484 = vmatmul.mubr.f32.gmra.mrb[6].mxu1 %v606_v41  ;;  %v608_v47 = vmax.f32 %v510_v42, 0.0 }
 0x105   : > { %v607_v45 = vmax.f32 %v505_v44, 0.0  ;;  %v1411_v46 = vpop.f32.mrb[16].mxu0 }
 0x106   : > { %v520_v48 = vadd.f32 %v1411_v46, %v1758_v62  ;;  %v514_v49 = vpop.f32.mrb[17].mxu0 }
 0x107   : > { %v515_v50 = vadd.f32 %v1758_v62, %v514_v49  ;;  %1486 = vmatprep.mubr.f32.mxu1 %v607_v45 }
 0x108   : > { %1487 = vmatmul.mubr.f32.gmra.mrb[8].mxu1 %v608_v47  ;;  %v610_v53 = vmax.f32 %v520_v48, 0.0 }
 0x109   : > { %v609_v51 = vmax.f32 %v515_v50, 0.0  ;;  %v1414_v52 = vpop.f32.mrb[18].mxu0 }
 0x10a   : > { %v530_v54 = vadd.f32 %v1414_v52, %v1758_v62  ;;  %v524_v55 = vpop.f32.mrb[19].mxu0 }
 0x10b   : > { %v525_v56 = vadd.f32 %v1758_v62, %v524_v55  ;;  %1489 = vmatprep.mubr.f32.mxu1 %v609_v51 }
 0x10c   : > { %1490 = vmatmul.mubr.f32.gmra.mrb[10].mxu1 %v610_v53  ;;  %v612_v59 = vmax.f32 %v530_v54, 0.0 }
 0x10d   : > { %v611_v57 = vmax.f32 %v525_v56, 0.0  ;;  %v1417_v58 = vpop.f32.mrb[20].mxu0 }
 0x10e   : > { %v540_v60 = vadd.f32 %v1417_v58, %v1758_v62  ;;  %v534_v61 = vpop.f32.mrb[21].mxu0 }
 0x10f   : > { %v535_v63 = vadd.f32 %v1758_v62, %v534_v61  ;;  %1492 = vmatprep.mubr.f32.mxu1 %v611_v57 }
 0x110   : > { %1493 = vmatmul.mubr.f32.gmra.mrb[12].mxu1 %v612_v59  ;;  %v614_v2 = vmax.f32 %v540_v60, 0.0 }
 0x111   : > { %v613_v0 = vmax.f32 %v535_v63, 0.0  ;;  %v1420_v1 = vpop.f32.mrb[22].mxu0 }
 0x112   : > { %v550_v3 = vadd.f32 %v1420_v1, %v1758_v62  ;;  %v544_v4 = vpop.f32.mrb[23].mxu0 }
 0x113   : > { %v545_v5 = vadd.f32 %v1758_v62, %v544_v4  ;;  %1495 = vmatprep.mubr.f32.mxu1 %v613_v0 }
 0x114   : > { %1496 = vmatmul.mubr.f32.gmra.mrb[14].mxu1 %v614_v2  ;;  %v616_v8 = vmax.f32 %v550_v3, 0.0 }
 0x115   : > { %v615_v6 = vmax.f32 %v545_v5, 0.0  ;;  %v1423_v7 = vpop.f32.mrb[24].mxu0 }
 0x116   : > { %v560_v9 = vadd.f32 %v1423_v7, %v1758_v62  ;;  %v554_v10 = vpop.f32.mrb[25].mxu0 }
 0x117   : > { %v555_v11 = vadd.f32 %v1758_v62, %v554_v10  ;;  %1498 = vmatprep.mubr.f32.mxu1 %v615_v6 }
 0x118   : > { %1499 = vmatmul.mubr.f32.gmra.mrb[16].mxu1 %v616_v8  ;;  %v618_v14 = vmax.f32 %v560_v9, 0.0 }
 0x119   : > { %v617_v12 = vmax.f32 %v555_v11, 0.0  ;;  %v1426_v13 = vpop.f32.mrb[26].mxu0 }
 0x11a   : > { %v570_v15 = vadd.f32 %v1426_v13, %v1758_v62  ;;  %v564_v16 = vpop.f32.mrb[27].mxu0 }
 0x11b   : > { %v565_v17 = vadd.f32 %v1758_v62, %v564_v16  ;;  %1501 = vmatprep.mubr.f32.mxu1 %v617_v12 }
 0x11c   : > { %1502 = vmatmul.mubr.f32.gmra.mrb[18].mxu1 %v618_v14  ;;  %v620_v20 = vmax.f32 %v570_v15, 0.0 }
 0x11d   : > { %v619_v18 = vmax.f32 %v565_v17, 0.0  ;;  %v1429_v19 = vpop.f32.mrb[28].mxu0 }
 0x11e   : > { %v580_v21 = vadd.f32 %v1429_v19, %v1758_v62  ;;  %v574_v22 = vpop.f32.mrb[29].mxu0 }
 0x11f   : > { %v575_v23 = vadd.f32 %v1758_v62, %v574_v22  ;;  %1504 = vmatprep.mubr.f32.mxu1 %v619_v18 }
 0x120   : > { %1505 = vmatmul.mubr.f32.gmra.mrb[20].mxu1 %v620_v20  ;;  %v622_v26 = vmax.f32 %v580_v21, 0.0 }
 0x121   : > { %v621_v24 = vmax.f32 %v575_v23, 0.0  ;;  %v1432_v25 = vpop.f32.mrb[30].mxu0 }
 0x122   : > { %v590_v27 = vadd.f32 %v1432_v25, %v1758_v62  ;;  %v584_v28 = vpop.f32.mrb[31].mxu0 }
 0x123   : > { %v585_v29 = vadd.f32 %v1758_v62, %v584_v28  ;;  %1507 = vmatprep.mubr.f32.mxu1 %v621_v24 }
 0x124   : > { %1508 = vmatmul.mubr.f32.gmra.mrb[22].mxu1 %v622_v26  ;;  %v624_v31 = vmax.f32 %v590_v27, 0.0 }
 0x125   : > { %v623_v30 = vmax.f32 %v585_v29, 0.0 }
 0x127   : > { %1510 = vmatprep.mubr.f32.mxu1 %v623_v30 }
 0x128   : > { %1511 = vmatmul.mubr.f32.gmra.mrb[24].mxu1 %v624_v31 }
 0x1bf   : > { %v1467_v33 = vpop.f32.mrb[32].mxu0 }
 0x1c0   : > { %v720_v34 = vadd.f32 %v1467_v33, %v1795_v32  ;;  %v714_v35 = vpop.f32.mrb[33].mxu0 }
 0x1c1   : > { %v715_v36 = vadd.f32 %v1795_v32, %v714_v35 }
 0x1c3   : > { %v1201_v62 = vpack.c.bf16 %v720_v34, %v715_v36  ;;  %v1470_v37 = vpop.f32.mrb[34].mxu0 }
 0x1c4   : > { %v730_v38 = vadd.f32 %v1470_v37, %v1795_v32  ;;  %v724_v39 = vpop.f32.mrb[35].mxu0 }
 0x1c5   : > { %1202 = vst [vmem:[%s1803_s25] sm:$0xff] %v1201_v62   ;;  %v725_v40 = vadd.f32 %v1795_v32, %v724_v39 }
 0x1c7   : > { %v1206_v41 = vpack.c.bf16 %v730_v38, %v725_v40  ;;  %v1473_v42 = vpop.f32.mrb[36].mxu0 }
 0x1c8   : > { %v740_v43 = vadd.f32 %v1473_v42, %v1795_v32  ;;  %v734_v44 = vpop.f32.mrb[37].mxu0 }
 0x1c9   : > { %1278 = vst [vmem:[%s1803_s25 + $0x8] sm:$0xff] %v1206_v41   ;;  %v735_v45 = vadd.f32 %v1795_v32, %v734_v44 }
 0x1cb   : > { %v1211_v46 = vpack.c.bf16 %v740_v43, %v735_v45  ;;  %v1476_v47 = vpop.f32.mrb[0].mxu1 }
 0x1cc   : > { %v750_v48 = vadd.f32 %v1476_v47, %v1795_v32  ;;  %v744_v49 = vpop.f32.mrb[1].mxu1 }
 0x1cd   : > { %1279 = vst [vmem:[%s1803_s25 + $0x10] sm:$0xff] %v1211_v46   ;;  %v745_v50 = vadd.f32 %v1795_v32, %v744_v49 }
 0x1cf   : > { %v1216_v51 = vpack.c.bf16 %v750_v48, %v745_v50  ;;  %v1479_v52 = vpop.f32.mrb[2].mxu1 }
 0x1d0   : > { %v760_v53 = vadd.f32 %v1479_v52, %v1795_v32  ;;  %v754_v54 = vpop.f32.mrb[3].mxu1 }
 0x1d1   : > { %1280 = vst [vmem:[%s1803_s25 + $0x18] sm:$0xff] %v1216_v51   ;;  %v755_v55 = vadd.f32 %v1795_v32, %v754_v54 }
 0x1d3   : > { %v1221_v56 = vpack.c.bf16 %v760_v53, %v755_v55  ;;  %v1482_v57 = vpop.f32.mrb[4].mxu1 }
 0x1d4   : > { %v770_v58 = vadd.f32 %v1482_v57, %v1795_v32  ;;  %v764_v59 = vpop.f32.mrb[5].mxu1 }
 0x1d5   : > { %1281 = vst [vmem:[%s1803_s25 + $0x20] sm:$0xff] %v1221_v56   ;;  %v765_v60 = vadd.f32 %v1795_v32, %v764_v59 }
 0x1d7   : > { %v1226_v61 = vpack.c.bf16 %v770_v58, %v765_v60  ;;  %v1485_v63 = vpop.f32.mrb[6].mxu1 }
 0x1d8   : > { %v780_v0 = vadd.f32 %v1485_v63, %v1795_v32  ;;  %v774_v1 = vpop.f32.mrb[7].mxu1 }
 0x1d9   : > { %1282 = vst [vmem:[%s1803_s25 + $0x28] sm:$0xff] %v1226_v61   ;;  %v775_v2 = vadd.f32 %v1795_v32, %v774_v1 }
 0x1db   : > { %v1231_v3 = vpack.c.bf16 %v780_v0, %v775_v2  ;;  %v1488_v4 = vpop.f32.mrb[8].mxu1 }
 0x1dc   : > { %v790_v5 = vadd.f32 %v1488_v4, %v1795_v32  ;;  %v784_v6 = vpop.f32.mrb[9].mxu1 }
 0x1dd   : > { %1283 = vst [vmem:[%s1803_s25 + $0x30] sm:$0xff] %v1231_v3   ;;  %v785_v7 = vadd.f32 %v1795_v32, %v784_v6 }
 0x1df   : > { %v1236_v8 = vpack.c.bf16 %v790_v5, %v785_v7  ;;  %v1491_v9 = vpop.f32.mrb[10].mxu1 }
 0x1e0   : > { %v800_v10 = vadd.f32 %v1491_v9, %v1795_v32  ;;  %v794_v11 = vpop.f32.mrb[11].mxu1 }
 0x1e1   : > { %1284 = vst [vmem:[%s1803_s25 + $0x38] sm:$0xff] %v1236_v8   ;;  %v795_v12 = vadd.f32 %v1795_v32, %v794_v11 }
 0x1e3   : > { %v1241_v13 = vpack.c.bf16 %v800_v10, %v795_v12  ;;  %v1494_v14 = vpop.f32.mrb[12].mxu1 }
 0x1e4   : > { %v810_v15 = vadd.f32 %v1494_v14, %v1795_v32  ;;  %v804_v16 = vpop.f32.mrb[13].mxu1 }
 0x1e5   : > { %1285 = vst [vmem:[%s1803_s25 + $0x40] sm:$0xff] %v1241_v13   ;;  %v805_v17 = vadd.f32 %v1795_v32, %v804_v16 }
 0x1e7   : > { %v1246_v18 = vpack.c.bf16 %v810_v15, %v805_v17  ;;  %v1497_v19 = vpop.f32.mrb[14].mxu1 }
 0x1e8   : > { %v820_v20 = vadd.f32 %v1497_v19, %v1795_v32  ;;  %v814_v21 = vpop.f32.mrb[15].mxu1 }
 0x1e9   : > { %1286 = vst [vmem:[%s1803_s25 + $0x48] sm:$0xff] %v1246_v18   ;;  %v815_v22 = vadd.f32 %v1795_v32, %v814_v21 }
 0x1eb   : > { %v1251_v23 = vpack.c.bf16 %v820_v20, %v815_v22  ;;  %v1500_v24 = vpop.f32.mrb[16].mxu1 }
 0x1ec   : > { %v830_v25 = vadd.f32 %v1500_v24, %v1795_v32  ;;  %v824_v26 = vpop.f32.mrb[17].mxu1 }
 0x1ed   : > { %1287 = vst [vmem:[%s1803_s25 + $0x50] sm:$0xff] %v1251_v23   ;;  %v825_v27 = vadd.f32 %v1795_v32, %v824_v26 }
 0x1ef   : > { %v1256_v28 = vpack.c.bf16 %v830_v25, %v825_v27  ;;  %v1503_v29 = vpop.f32.mrb[18].mxu1 }
 0x1f0   : > { %v840_v30 = vadd.f32 %v1503_v29, %v1795_v32  ;;  %v834_v31 = vpop.f32.mrb[19].mxu1 }
 0x1f1   : > { %1288 = vst [vmem:[%s1803_s25 + $0x58] sm:$0xff] %v1256_v28   ;;  %v835_v33 = vadd.f32 %v1795_v32, %v834_v31 }
 0x1f3   : > { %v1261_v34 = vpack.c.bf16 %v840_v30, %v835_v33  ;;  %v1506_v35 = vpop.f32.mrb[20].mxu1 }
 0x1f4   : > { %v850_v36 = vadd.f32 %v1506_v35, %v1795_v32  ;;  %v844_v62 = vpop.f32.mrb[21].mxu1 }
 0x1f5   : > { %1289 = vst [vmem:[%s1803_s25 + $0x60] sm:$0xff] %v1261_v34   ;;  %v845_v37 = vadd.f32 %v1795_v32, %v844_v62 }
 0x1f7   : > { %v1266_v38 = vpack.c.bf16 %v850_v36, %v845_v37  ;;  %v1509_v39 = vpop.f32.mrb[22].mxu1 }
 0x1f8   : > { %v860_v40 = vadd.f32 %v1509_v39, %v1795_v32  ;;  %v854_v41 = vpop.f32.mrb[23].mxu1 }
 0x1f9   : > { %1290 = vst [vmem:[%s1803_s25 + $0x68] sm:$0xff] %v1266_v38   ;;  %v855_v42 = vadd.f32 %v1795_v32, %v854_v41 }
 0x1fb   : > { %v1271_v43 = vpack.c.bf16 %v860_v40, %v855_v42  ;;  %v1512_v44 = vpop.f32.mrb[24].mxu1 }
 0x1fc   : > { %v870_v45 = vadd.f32 %v1512_v44, %v1795_v32  ;;  %v864_v46 = vpop.f32.mrb[25].mxu1 }
 0x1fd   : > { %1291 = vst [vmem:[%s1803_s25 + $0x70] sm:$0xff] %v1271_v43   ;;  %v865_v47 = vadd.f32 %v1795_v32, %v864_v46 }
 0x1ff   : > { %v1276_v48 = vpack.c.bf16 %v870_v45, %v865_v47 }
 0x201   : > { %1292 = vst [vmem:[%s1803_s25 + $0x78] sm:$0xff] %v1276_v48  }
 0x202 PF: > { %s15_s18 = sadd.s32 1, %s1583_s18  }
 0x203   : > { %p12_p4 = scmp.ge.s32.totalorder %s15_s18, 4  }
 0x205   :  { %14 = sbr.rel (!%p12_p4) target bundleno = 1 (0x1), region = 70 }

// kernel: smpgnn_forward.4
= control target key start
LH: loop header
LB: loop body
LE: loop exit
PB: predicated region body
PF: predicated region fallthrough
CT: control target
= control target key end

     0   :  { %s1792_s9 = smov 0   ;;  %s1794_s10 = smov 0   ;;  %s2024_s0 = inlined_call_operand.vmem [shape: bf16[512,512], index: 0, kind: input, shape index: {}]   ;;  %s2025_s1 = inlined_call_operand.vmem [shape: bf16[512,128], index: 1, kind: input, shape index: {}]   ;;  %s2026_s2 = inlined_call_operand.vmem [shape: bf16[512,128], index: 2, kind: output, shape index: {}]  }
   0x1   :  { %s1796_s11 = smov 0   ;;  %s1798_s12 = smov 0  }
   0x2   :  { %s1800_s13 = smov 0   ;;  %s1802_s14 = smov 0  }
   0x3   :  { %s1804_s15 = smov 0  }
   0x4 LB: > { %s21_s16 = sadd.s32 1, %s1766_s13  ;;  %s24_s17 = sadd.s32 1, %s1770_s14  ;;  %s1774_s15 = sphi %s1804_s15, %s12_s15   ;;  %s1770_s14 = sphi %s1802_s14, %s2032_s14   ;;  %s1766_s13 = sphi %s1800_s13, %s2031_s13   ;;  %s1762_s12 = sphi %s1798_s12, %s2030_s12   ;;  %s1758_s11 = sphi %s1796_s11, %s2029_s11   ;;  %s1754_s10 = sphi %s1794_s10, %s2028_s10   ;;  %s1750_s9 = sphi %s1792_s9, %s2027_s9  }
   0x5   : > { %p22_p0 = scmp.ge.s32.totalorder %s21_s16, 2  ;;  %p40_p1 = scmp.ne.s32.totalorder %s1754_s10, %s1750_s9 }
   0x6   : > { %p41_p2 = scmp.eq.s32.totalorder %s1774_s15, 0  ;;  %s33_s21 = sadd.s32 1, %s1754_s10 }
   0x7   : > { %s2034_s16 = smov (%p22_p0, %s21_s16), 0  ;;  %s2036_s17 = smov (!%p22_p0, %s24_s17), %s1770_s14 }
   0x8   : > { %p42_p3 = por %p41_p2, %p40_p1  ;;  %p26_p4 = scmp.ge.s32.totalorder %s2036_s17, 2 }
   0x9   : > { %s29_s18 = ssub.s32 %s1766_s13, %s2034_s16  ;;  %p1247_p6 = scmp.ge.s32.totalorder %s1774_s15, 4 }
   0xa   : > { %s2038_s17 = smov (%p26_p4, %s2036_s17), 0 }
   0xb   : > { %s28_s19 = ssub.s32 %s1770_s14, %s2038_s17  ;;  %118 = sbr.rel (%p1247_p6) target bundleno = 41 (0x29), region = 16 }
   0xc   : > { %s30_s20 = sor.u32 %s29_s18, %s28_s19 }
   0xd   : > { %p31_p5 = scmp.eq.s32.totalorder %s30_s20, 0 }
   0xf   : > { %s1843_s22 = scalar_select %p31_p5, %s1754_s10, %s33_s21  }
  0x12   : > { %121 = sbr.rel (!%p42_p3) target bundleno = 41 (0x29), region = 20  ;;  %s123_s23 = sand.u32 (%p42_p3), 1, %s1754_s10  }
  0x13   : > { %s1250_s24 = sshll.u32 (%p42_p3), %s1766_s13, 1  ;;  %s1248_s25 = sshll.u32 (%p42_p3), %s123_s23, 8 }
  0x14   : > { %s1343_s26 = sshll.u32 (%p42_p3), %s1770_s14, 7  ;;  %s1857_s4 = scalar_lea.vmem (%p42_p3), [#allocation3], %s1248_s25 }
  0x15   : > { %s129_s27 = sadd.s32 (%p42_p3), %s1343_s26, %s1250_s24 }
  0x16   : > { %s1252_s28 = sshll.u32 (%p42_p3), %s129_s27, 2 }
  0x17   : > { %s1852_s3 = scalar_lea.vmem (%p42_p3), %s2024_s0, %s1252_s28 }
  0x18   : > { %v221_v0 = vld [vmem:[%s1852_s3] sm:$0xff] (%p42_p3)  ;;  %v223_v1 = vld [vmem:[%s1852_s3 + $0x10] sm:$0xff] (%p42_p3) }
  0x19   : > { %v225_v2 = vld [vmem:[%s1852_s3 + $0x20] sm:$0xff]  ;;  %222 = vst [vmem:[%s1857_s4] sm:$0xff] %v221_v0  ;;  %224 = vst [vmem:[%s1857_s4 + $0x8] sm:$0xff] %v223_v1  ;;  %v227_v3 = vld [vmem:[%s1852_s3 + $0x30] sm:$0xff] }
  0x1a   : > { %226 = vst [vmem:[%s1857_s4 + $0x10] sm:$0xff] %v225_v2  ;;  %v229_v4 = vld [vmem:[%s1852_s3 + $0x40] sm:$0xff]  ;;  %v231_v5 = vld [vmem:[%s1852_s3 + $0x50] sm:$0xff]  ;;  %228 = vst [vmem:[%s1857_s4 + $0x18] sm:$0xff] %v227_v3 }
  0x1b   : > { %230 = vst [vmem:[%s1857_s4 + $0x20] sm:$0xff] %v229_v4  ;;  %232 = vst [vmem:[%s1857_s4 + $0x28] sm:$0xff] %v231_v5  ;;  %v233_v6 = vld [vmem:[%s1852_s3 + $0x60] sm:$0xff]  ;;  %v235_v7 = vld [vmem:[%s1852_s3 + $0x70] sm:$0xff] }
  0x1c   : > { %v237_v8 = vld [vmem:[%s1852_s3 + $0x80] sm:$0xff]  ;;  %234 = vst [vmem:[%s1857_s4 + $0x30] sm:$0xff] %v233_v6  ;;  %236 = vst [vmem:[%s1857_s4 + $0x38] sm:$0xff] %v235_v7  ;;  %v239_v9 = vld [vmem:[%s1852_s3 + $0x90] sm:$0xff] }
  0x1d   : > { %238 = vst [vmem:[%s1857_s4 + $0x40] sm:$0xff] %v237_v8  ;;  %v241_v10 = vld [vmem:[%s1852_s3 + $0xa0] sm:$0xff]  ;;  %v243_v11 = vld [vmem:[%s1852_s3 + $0xb0] sm:$0xff]  ;;  %240 = vst [vmem:[%s1857_s4 + $0x48] sm:$0xff] %v239_v9 }
  0x1e   : > { %242 = vst [vmem:[%s1857_s4 + $0x50] sm:$0xff] %v241_v10  ;;  %244 = vst [vmem:[%s1857_s4 + $0x58] sm:$0xff] %v243_v11  ;;  %v245_v12 = vld [vmem:[%s1852_s3 + $0xc0] sm:$0xff]  ;;  %v247_v13 = vld [vmem:[%s1852_s3 + $0xd0] sm:$0xff] }
  0x1f   : > { %v249_v14 = vld [vmem:[%s1852_s3 + $0xe0] sm:$0xff]  ;;  %246 = vst [vmem:[%s1857_s4 + $0x60] sm:$0xff] %v245_v12  ;;  %248 = vst [vmem:[%s1857_s4 + $0x68] sm:$0xff] %v247_v13  ;;  %v251_v15 = vld [vmem:[%s1852_s3 + $0xf0] sm:$0xff] }
  0x20   : > { %250 = vst [vmem:[%s1857_s4 + $0x70] sm:$0xff] %v249_v14  ;;  %v253_v16 = vld [vmem:[%s1852_s3 + $0x100] sm:$0xff]  ;;  %v255_v17 = vld [vmem:[%s1852_s3 + $0x110] sm:$0xff]  ;;  %252 = vst [vmem:[%s1857_s4 + $0x78] sm:$0xff] %v251_v15 }
  0x21   : > { %254 = vst [vmem:[%s1857_s4 + $0x80] sm:$0xff] %v253_v16  ;;  %256 = vst [vmem:[%s1857_s4 + $0x88] sm:$0xff] %v255_v17  ;;  %v257_v18 = vld [vmem:[%s1852_s3 + $0x120] sm:$0xff]  ;;  %v259_v19 = vld [vmem:[%s1852_s3 + $0x130] sm:$0xff] }
  0x22   : > { %v261_v20 = vld [vmem:[%s1852_s3 + $0x140] sm:$0xff]  ;;  %258 = vst [vmem:[%s1857_s4 + $0x90] sm:$0xff] %v257_v18  ;;  %260 = vst [vmem:[%s1857_s4 + $0x98] sm:$0xff] %v259_v19  ;;  %v263_v21 = vld [vmem:[%s1852_s3 + $0x150] sm:$0xff] }
  0x23   : > { %262 = vst [vmem:[%s1857_s4 + $0xa0] sm:$0xff] %v261_v20  ;;  %v265_v22 = vld [vmem:[%s1852_s3 + $0x160] sm:$0xff]  ;;  %v267_v23 = vld [vmem:[%s1852_s3 + $0x170] sm:$0xff]  ;;  %264 = vst [vmem:[%s1857_s4 + $0xa8] sm:$0xff] %v263_v21 }
  0x24   : > { %266 = vst [vmem:[%s1857_s4 + $0xb0] sm:$0xff] %v265_v22  ;;  %268 = vst [vmem:[%s1857_s4 + $0xb8] sm:$0xff] %v267_v23  ;;  %v269_v24 = vld [vmem:[%s1852_s3 + $0x180] sm:$0xff]  ;;  %v271_v25 = vld [vmem:[%s1852_s3 + $0x190] sm:$0xff] }
  0x25   : > { %v273_v26 = vld [vmem:[%s1852_s3 + $0x1a0] sm:$0xff]  ;;  %270 = vst [vmem:[%s1857_s4 + $0xc0] sm:$0xff] %v269_v24  ;;  %272 = vst [vmem:[%s1857_s4 + $0xc8] sm:$0xff] %v271_v25  ;;  %v275_v27 = vld [vmem:[%s1852_s3 + $0x1b0] sm:$0xff] }
  0x26   : > { %274 = vst [vmem:[%s1857_s4 + $0xd0] sm:$0xff] %v273_v26  ;;  %v277_v28 = vld [vmem:[%s1852_s3 + $0x1c0] sm:$0xff]  ;;  %v279_v29 = vld [vmem:[%s1852_s3 + $0x1d0] sm:$0xff]  ;;  %276 = vst [vmem:[%s1857_s4 + $0xd8] sm:$0xff] %v275_v27 }
  0x27   : > { %278 = vst [vmem:[%s1857_s4 + $0xe0] sm:$0xff] %v277_v28  ;;  %280 = vst [vmem:[%s1857_s4 + $0xe8] sm:$0xff] %v279_v29  ;;  %v281_v30 = vld [vmem:[%s1852_s3 + $0x1e0] sm:$0xff]  ;;  %v283_v31 = vld [vmem:[%s1852_s3 + $0x1f0] sm:$0xff] }
  0x28   : > { %282 = vst [vmem:[%s1857_s4 + $0xf0] sm:$0xff] %v281_v30  ;;  %284 = vst [vmem:[%s1857_s4 + $0xf8] sm:$0xff] %v283_v31 }
  0x29 PF: > { %p1253_p7 = scmp.ge.s32.totalorder %s1774_s15, 1  ;;  %p298_p8 = scmp.lt.s32.totalorder %s1774_s15, 5 }
  0x2b   : > { %p299_p9 = pnand %p1253_p7, %p298_p8 }
  0x2c   : > { %s305_s5 = sand.u32 (!%p299_p9), 1, %s1750_s9   ;;  %s1255_s6 = sshll.u32 (!%p299_p9), %s1758_s11, 5 }
  0x2d   : > { %302 = sbr.rel (%p299_p9) target bundleno = 390 (0x186), region = 62  ;;  %s1254_s7 = sshll.u32 (!%p299_p9), %s305_s5, 8 }
  0x2e   : > { %p334_p10 = scmp.lt.s32.totalorder (!%p299_p9), %s1255_s6, 63  ;;  %s1257_s8 = sshll.u32 (!%p299_p9), %s1762_s12, 5 }
  0x2f   : > { %p340_p11 = scmp.lt.s32.totalorder (!%p299_p9), %s1257_s8, 63  ;;  %s1935_s9 = scalar_lea.vmem (!%p299_p9), [#allocation3], %s1254_s7 }
  0x30   : > { %p1259_p12 = scmp.ne.s32.totalorder (!%p299_p9), %s1758_s11, 0 }
  0x34   : > { %s2040_s6 = smov (!%p334_p10, %s1255_s6), 63  ;;  %s2042_s8 = smov (!%p340_p11, %s1257_s8), 63 }
  0x35   : > { %s1256_s18 = sshll.u32 %s2040_s6, 2  ;;  %s1258_s23 = sshll.u32 %s2042_s8, 2  ;;  %v1776_v32 = vmov (!%p1259_p12), 0.0  }
  0x36   : > { %s1928_s21 = scalar_lea.vmem %s2025_s1, %s1256_s18  ;;  %s1933_s26 = scalar_lea.vmem %s2026_s2, %s1258_s23  ;;  %350 = vst [vmem:[#allocation2] sm:$0xff] (!%p1259_p12), %v1776_v32  ;;  %351 = vst [vmem:[#allocation2 + $0x8] sm:$0xff] (!%p1259_p12), %v1776_v32 }
  0x37   : > { %349 = sbr.rel (%p1259_p12) target bundleno = 70 (0x46), region = 70  ;;  %352 = vst [vmem:[#allocation2 + $0x10] sm:$0xff] (!%p1259_p12), %v1776_v32  ;;  %353 = vst [vmem:[#allocation2 + $0x18] sm:$0xff] (!%p1259_p12), %v1776_v32 }
  0x38   : > { %354 = vst [vmem:[#allocation2 + $0x20] sm:$0xff] (!%p1259_p12), %v1776_v32  ;;  %355 = vst [vmem:[#allocation2 + $0x28] sm:$0xff] (!%p1259_p12), %v1776_v32 }
  0x39   : > { %356 = vst [vmem:[#allocation2 + $0x30] sm:$0xff] (!%p1259_p12), %v1776_v32  ;;  %357 = vst [vmem:[#allocation2 + $0x38] sm:$0xff] (!%p1259_p12), %v1776_v32 }
  0x3a   : > { %358 = vst [vmem:[#allocation2 + $0x40] sm:$0xff] (!%p1259_p12), %v1776_v32  ;;  %359 = vst [vmem:[#allocation2 + $0x48] sm:$0xff] (!%p1259_p12), %v1776_v32 }
  0x3b   : > { %360 = vst [vmem:[#allocation2 + $0x50] sm:$0xff] (!%p1259_p12), %v1776_v32  ;;  %361 = vst [vmem:[#allocation2 + $0x58] sm:$0xff] (!%p1259_p12), %v1776_v32 }
  0x3c   : > { %362 = vst [vmem:[#allocation2 + $0x60] sm:$0xff] (!%p1259_p12), %v1776_v32  ;;  %363 = vst [vmem:[#allocation2 + $0x68] sm:$0xff] (!%p1259_p12), %v1776_v32 }
  0x3d   : > { %364 = vst [vmem:[#allocation2 + $0x70] sm:$0xff] (!%p1259_p12), %v1776_v32  ;;  %365 = vst [vmem:[#allocation2 + $0x78] sm:$0xff] (!%p1259_p12), %v1776_v32 }
  0x3e   : > { %366 = vst [vmem:[#allocation2 + $0x80] sm:$0xff] %v1776_v32  ;;  %367 = vst [vmem:[#allocation2 + $0x88] sm:$0xff] %v1776_v32 }
  0x3f   : > { %368 = vst [vmem:[#allocation2 + $0x90] sm:$0xff] %v1776_v32  ;;  %369 = vst [vmem:[#allocation2 + $0x98] sm:$0xff] %v1776_v32 }
  0x40   : > { %370 = vst [vmem:[#allocation2 + $0xa0] sm:$0xff] %v1776_v32  ;;  %371 = vst [vmem:[#allocation2 + $0xa8] sm:$0xff] %v1776_v32 }
  0x41   : > { %372 = vst [vmem:[#allocation2 + $0xb0] sm:$0xff] %v1776_v32  ;;  %373 = vst [vmem:[#allocation2 + $0xb8] sm:$0xff] %v1776_v32 }
  0x42   : > { %374 = vst [vmem:[#allocation2 + $0xc0] sm:$0xff] %v1776_v32  ;;  %375 = vst [vmem:[#allocation2 + $0xc8] sm:$0xff] %v1776_v32 }
  0x43   : > { %376 = vst [vmem:[#allocation2 + $0xd0] sm:$0xff] %v1776_v32  ;;  %377 = vst [vmem:[#allocation2 + $0xd8] sm:$0xff] %v1776_v32 }
  0x44   : > { %378 = vst [vmem:[#allocation2 + $0xe0] sm:$0xff] %v1776_v32  ;;  %379 = vst [vmem:[#allocation2 + $0xe8] sm:$0xff] %v1776_v32 }
  0x45   : > { %380 = vst [vmem:[#allocation2 + $0xf0] sm:$0xff] %v1776_v32  ;;  %381 = vst [vmem:[#allocation2 + $0xf8] sm:$0xff] %v1776_v32 }
  0x46 PF: > { %v1656_v33 = vld [vmem:[%s1928_s21 + $0x40] sm:$0xff]   ;;  %v1658_v35 = vld [vmem:[%s1928_s21 + $0x48] sm:$0xff]   ;;  %v1660_v37 = vld [vmem:[%s1928_s21 + $0x50] sm:$0xff]   ;;  %p1308_p13 = scmp.ne.s32.totalorder %s1758_s11, 1 }
  0x47   : > { %v1657_v34 = vld [vmem:[%s1928_s21] sm:$0xff]   ;;  %1471 = vmatprep.subr.bf16.mxu0 %v1656_v33  ;;  %1583 = vmatprep.subr.bf16.mxu1 %v1656_v33  ;;  %v1659_v36 = vld [vmem:[%s1928_s21 + $0x8] sm:$0xff]   ;;  %v1661_v38 = vld [vmem:[%s1928_s21 + $0x10] sm:$0xff]  }
  0x48   : > { %1472 = vmatpush3.bf16.msra.mxu0 %v1657_v34  ;;  %1591 = vmatpush3.bf16.msra.mxu1 %v1657_v34  ;;  %v1662_v39 = vld [vmem:[%s1928_s21 + $0x58] sm:$0xff]   ;;  %v1664_v41 = vld [vmem:[%s1928_s21 + $0x60] sm:$0xff]   ;;  %v1666_v43 = vld [vmem:[%s1928_s21 + $0x68] sm:$0xff]  }
  0x49   : > { %1473 = vmatprep.subr.bf16.mxu0 %v1658_v35  ;;  %1584 = vmatprep.subr.bf16.mxu1 %v1658_v35  ;;  %v1663_v40 = vld [vmem:[%s1928_s21 + $0x18] sm:$0xff]   ;;  %v1665_v42 = vld [vmem:[%s1928_s21 + $0x20] sm:$0xff]   ;;  %v1667_v46 = vld [vmem:[%s1928_s21 + $0x28] sm:$0xff]  }
  0x4a   : > { %v1674_v44 = vld [vmem:[%s1935_s9 + $0x4] ss:$8 sps:$4 sm:$0xff]   ;;  %v1668_v47 = vld [vmem:[%s1928_s21 + $0x70] sm:$0xff]   ;;  %v1670_v49 = vld [vmem:[%s1928_s21 + $0x78] sm:$0xff]  }
  0x4b   : > { %v1677_v45 = vld [vmem:[%s1935_s9 + $0x84] ss:$8 sps:$4 sm:$0xff]   ;;  %766 = vmatprep.mubr.bf16.mxu0 %v1674_v44  ;;  %v1669_v48 = vld [vmem:[%s1928_s21 + $0x30] sm:$0xff]   ;;  %v1671_v50 = vld [vmem:[%s1928_s21 + $0x38] sm:$0xff]  }
  0x4c   : > { %1474 = vmatpush3.bf16.msra.mxu0 %v1659_v36  ;;  %1592 = vmatpush3.bf16.msra.mxu1 %v1659_v36  ;;  %v1672_v51 = vld [vmem:[%s1935_s9] ss:$8 sps:$4 sm:$0xff]   ;;  %v1678_v53 = vld [vmem:[%s1935_s9 + $0x14] ss:$8 sps:$4 sm:$0xff]   ;;  %v1682_v55 = vld [vmem:[%s1935_s9 + $0x10] ss:$8 sps:$4 sm:$0xff]  }
  0x4d   : > { %1475 = vmatprep.subr.bf16.mxu0 %v1660_v37  ;;  %1585 = vmatprep.subr.bf16.mxu1 %v1660_v37  ;;  %v1675_v52 = vld [vmem:[%s1935_s9 + $0x80] ss:$8 sps:$4 sm:$0xff]   ;;  %v1680_v54 = vld [vmem:[%s1935_s9 + $0x94] ss:$8 sps:$4 sm:$0xff]   ;;  %v1683_v56 = vld [vmem:[%s1935_s9 + $0x90] ss:$8 sps:$4 sm:$0xff]  }
  0x4e   : > { %830 = vmatprep.mubr.bf16.mxu1 %v1677_v45  ;;  %v1684_v57 = vld [vmem:[%s1935_s9 + $0x24] ss:$8 sps:$4 sm:$0xff]   ;;  %v1688_v59 = vld [vmem:[%s1935_s9 + $0x20] ss:$8 sps:$4 sm:$0xff]   ;;  %v1690_v61 = vld [vmem:[%s1935_s9 + $0x34] ss:$8 sps:$4 sm:$0xff]  }
  0x4f   : > { %v1686_v58 = vld [vmem:[%s1935_s9 + $0xa4] ss:$8 sps:$4 sm:$0xff]   ;;  %v1689_v60 = vld [vmem:[%s1935_s9 + $0xa0] ss:$8 sps:$4 sm:$0xff]   ;;  %v1692_v62 = vld [vmem:[%s1935_s9 + $0xb4] ss:$8 sps:$4 sm:$0xff]  }
  0x50   : > { %1476 = vmatpush3.bf16.msra.mxu0 %v1661_v38  ;;  %1593 = vmatpush3.bf16.msra.mxu1 %v1661_v38  ;;  %v1694_v63 = vld [vmem:[%s1935_s9 + $0x30] ss:$8 sps:$4 sm:$0xff]   ;;  %v1696_v1 = vld [vmem:[%s1935_s9 + $0x44] ss:$8 sps:$4 sm:$0xff]   ;;  %v1700_v3 = vld [vmem:[%s1935_s9 + $0x40] ss:$8 sps:$4 sm:$0xff]  }
  0x51   : > { %1477 = vmatprep.subr.bf16.mxu0 %v1662_v39  ;;  %1586 = vmatprep.subr.bf16.mxu1 %v1662_v39  ;;  %v1695_v0 = vld [vmem:[%s1935_s9 + $0xb0] ss:$8 sps:$4 sm:$0xff]   ;;  %v1698_v2 = vld [vmem:[%s1935_s9 + $0xc4] ss:$8 sps:$4 sm:$0xff]   ;;  %v1701_v4 = vld [vmem:[%s1935_s9 + $0xc0] ss:$8 sps:$4 sm:$0xff]  }
  0x52   : > { %v1702_v5 = vld [vmem:[%s1935_s9 + $0x54] ss:$8 sps:$4 sm:$0xff]   ;;  %v1706_v7 = vld [vmem:[%s1935_s9 + $0x50] ss:$8 sps:$4 sm:$0xff]   ;;  %v1708_v9 = vld [vmem:[%s1935_s9 + $0x64] ss:$8 sps:$4 sm:$0xff]  }
  0x53   : > { %v1704_v6 = vld [vmem:[%s1935_s9 + $0xd4] ss:$8 sps:$4 sm:$0xff]   ;;  %v1707_v8 = vld [vmem:[%s1935_s9 + $0xd0] ss:$8 sps:$4 sm:$0xff]   ;;  %v1710_v10 = vld [vmem:[%s1935_s9 + $0xe4] ss:$8 sps:$4 sm:$0xff]  }
  0x54   : > { %1478 = vmatpush3.bf16.msra.mxu0 %v1663_v40  ;;  %1594 = vmatpush3.bf16.msra.mxu1 %v1663_v40  ;;  %v1712_v11 = vld [vmem:[%s1935_s9 + $0x60] ss:$8 sps:$4 sm:$0xff]   ;;  %v1714_v13 = vld [vmem:[%s1935_s9 + $0x74] ss:$8 sps:$4 sm:$0xff]   ;;  %v1718_v15 = vld [vmem:[%s1935_s9 + $0x70] ss:$8 sps:$4 sm:$0xff]  }
  0x55   : > { %1479 = vmatprep.subr.bf16.mxu0 %v1664_v41  ;;  %1587 = vmatprep.subr.bf16.mxu1 %v1664_v41  ;;  %v1713_v12 = vld [vmem:[%s1935_s9 + $0xe0] ss:$8 sps:$4 sm:$0xff]   ;;  %v1716_v14 = vld [vmem:[%s1935_s9 + $0xf4] ss:$8 sps:$4 sm:$0xff]   ;;  %v1719_v16 = vld [vmem:[%s1935_s9 + $0xf0] ss:$8 sps:$4 sm:$0xff]  }
  0x56   : > { %v382_v19 = vld [vmem:[#allocation2] sm:$0xff]  ;;  %v383_v27 = vld [vmem:[#allocation2 + $0x8] sm:$0xff]  ;;  %v384_v39 = vld [vmem:[#allocation2 + $0x10] sm:$0xff] }
  0x57   : > { %v398_v21 = vld [vmem:[#allocation2 + $0x80] sm:$0xff]  ;;  %v399_v29 = vld [vmem:[#allocation2 + $0x88] sm:$0xff]  ;;  %v400_v41 = vld [vmem:[#allocation2 + $0x90] sm:$0xff] }
  0x58   : > { %1480 = vmatpush3.bf16.msra.mxu0 %v1665_v42  ;;  %1595 = vmatpush3.bf16.msra.mxu1 %v1665_v42 }
  0x59   : > { %1481 = vmatprep.subr.bf16.mxu0 %v1666_v43  ;;  %1588 = vmatprep.subr.bf16.mxu1 %v1666_v43 }
  0x5c   : > { %1482 = vmatpush3.bf16.msra.mxu0 %v1667_v46  ;;  %1596 = vmatpush3.bf16.msra.mxu1 %v1667_v46 }
  0x5d   : > { %1483 = vmatprep.subr.bf16.mxu0 %v1668_v47  ;;  %1589 = vmatprep.subr.bf16.mxu1 %v1668_v47  ;;  %v385_v47 = vld [vmem:[#allocation2 + $0x18] sm:$0xff] }
  0x60   : > { %1484 = vmatpush3.bf16.msra.mxu0 %v1669_v48  ;;  %1597 = vmatpush3.bf16.msra.mxu1 %v1669_v48 }
  0x61   : > { %1485 = vmatprep.subr.bf16.mxu0 %v1670_v49  ;;  %1590 = vmatprep.subr.bf16.mxu1 %v1670_v49  ;;  %v401_v49 = vld [vmem:[#allocation2 + $0x98] sm:$0xff] }
  0x64   : > { %1486 = vmatpush3.bf16.msra.mxu0 %v1671_v50  ;;  %1598 = vmatpush3.bf16.msra.mxu1 %v1671_v50 }
  0x67   : > { %767 = vmatmul.mubr.bf16.vlgmr.msra.gmra.mrb[0].mxu0 %v1672_v51  ;;  %831 = vmatmul.mubr.bf16.vlgmr.msra.gmra.mrb[0].mxu1 %v1675_v52 }
  0x68   : > { %774 = vmatprep.mubr.bf16.mxu0 %v1678_v53  ;;  %838 = vmatprep.mubr.bf16.mxu1 %v1680_v54 }
  0x6f   : > { %775 = vmatmul.mubr.bf16.gmra.mrb[4].mxu0 %v1682_v55  ;;  %839 = vmatmul.mubr.bf16.gmra.mrb[4].mxu1 %v1683_v56 }
  0x70   : > { %782 = vmatprep.mubr.bf16.mxu0 %v1684_v57  ;;  %846 = vmatprep.mubr.bf16.mxu1 %v1686_v58 }
  0x77   : > { %783 = vmatmul.mubr.bf16.gmra.mrb[8].mxu0 %v1688_v59  ;;  %847 = vmatmul.mubr.bf16.gmra.mrb[8].mxu1 %v1689_v60  ;;  %v386_v59 = vld [vmem:[#allocation2 + $0x20] sm:$0xff] }
  0x78   : > { %790 = vmatprep.mubr.bf16.mxu0 %v1690_v61  ;;  %854 = vmatprep.mubr.bf16.mxu1 %v1692_v62  ;;  %v402_v61 = vld [vmem:[#allocation2 + $0xa0] sm:$0xff] }
  0x7f   : > { %791 = vmatmul.mubr.bf16.gmra.mrb[12].mxu0 %v1694_v63  ;;  %855 = vmatmul.mubr.bf16.gmra.mrb[12].mxu1 %v1695_v0 }
  0x80   : > { %798 = vmatprep.mubr.bf16.mxu0 %v1696_v1  ;;  %862 = vmatprep.mubr.bf16.mxu1 %v1698_v2 }
  0x87   : > { %799 = vmatmul.mubr.bf16.gmra.mrb[16].mxu0 %v1700_v3  ;;  %863 = vmatmul.mubr.bf16.gmra.mrb[16].mxu1 %v1701_v4  ;;  %v387_v3 = vld [vmem:[#allocation2 + $0x28] sm:$0xff] }
  0x88   : > { %806 = vmatprep.mubr.bf16.mxu0 %v1702_v5  ;;  %870 = vmatprep.mubr.bf16.mxu1 %v1704_v6  ;;  %v403_v5 = vld [vmem:[#allocation2 + $0xa8] sm:$0xff] }
  0x8f   : > { %807 = vmatmul.mubr.bf16.gmra.mrb[20].mxu0 %v1706_v7  ;;  %871 = vmatmul.mubr.bf16.gmra.mrb[20].mxu1 %v1707_v8 }
  0x90   : > { %814 = vmatprep.mubr.bf16.mxu0 %v1708_v9  ;;  %878 = vmatprep.mubr.bf16.mxu1 %v1710_v10 }
  0x97   : > { %815 = vmatmul.mubr.bf16.gmra.mrb[24].mxu0 %v1712_v11  ;;  %879 = vmatmul.mubr.bf16.gmra.mrb[24].mxu1 %v1713_v12 }
  0x98   : > { %822 = vmatprep.mubr.bf16.mxu0 %v1714_v13  ;;  %886 = vmatprep.mubr.bf16.mxu1 %v1716_v14 }
  0x9f   : > { %823 = vmatmul.mubr.bf16.gmra.mrb[28].mxu0 %v1718_v15  ;;  %887 = vmatmul.mubr.bf16.gmra.mrb[28].mxu1 %v1719_v16  ;;  %v388_v15 = vld [vmem:[#allocation2 + $0x30] sm:$0xff] }
 0x13a   : > { %v1487_v17 = vpop.f32.mrb[0].mxu0  ;;  %v1535_v18 = vpop.f32.mrb[0].mxu1 }
 0x13b   : > { %v1488_v20 = vpop.f32.mrb[1].mxu0  ;;  %v1536_v22 = vpop.f32.mrb[1].mxu1 }
 0x13c   : > { %v1489_v23 = vadd.f32 %v1488_v20, %v1487_v17  ;;  %v1537_v24 = vadd.f32 %v1536_v22, %v1535_v18  ;;  %v1490_v25 = vpop.f32.mrb[2].mxu0  ;;  %v1538_v26 = vpop.f32.mrb[2].mxu1  ;;  %v404_v17 = vld [vmem:[#allocation2 + $0xb0] sm:$0xff] }
 0x13d   : > { %v1491_v28 = vpop.f32.mrb[3].mxu0  ;;  %v1539_v30 = vpop.f32.mrb[3].mxu1 }
 0x13e   : > { %v895_v31 = vadd.f32 %v1489_v23, %v382_v19  ;;  %v911_v32 = vadd.f32 %v1537_v24, %v398_v21  ;;  %v1492_v33 = vadd.f32 %v1491_v28, %v1490_v25  ;;  %v1540_v34 = vadd.f32 %v1539_v30, %v1538_v26  ;;  %v389_v23 = vld [vmem:[#allocation2 + $0x38] sm:$0xff] }
 0x13f   : > { %v405_v25 = vld [vmem:[#allocation2 + $0xb8] sm:$0xff] }
 0x140   : > { %927 = vst [vmem:[#allocation2] sm:$0xff] %v895_v31  ;;  %943 = vst [vmem:[#allocation2 + $0x80] sm:$0xff] %v911_v32  ;;  %v896_v35 = vadd.f32 %v1492_v33, %v383_v27  ;;  %v912_v36 = vadd.f32 %v1540_v34, %v399_v29 }
 0x142   : > { %928 = vst [vmem:[#allocation2 + $0x8] sm:$0xff] %v896_v35  ;;  %944 = vst [vmem:[#allocation2 + $0x88] sm:$0xff] %v912_v36  ;;  %v1493_v37 = vpop.f32.mrb[4].mxu0  ;;  %v1541_v38 = vpop.f32.mrb[4].mxu1  ;;  %v390_v35 = vld [vmem:[#allocation2 + $0x40] sm:$0xff] }
 0x143   : > { %v1494_v40 = vpop.f32.mrb[5].mxu0  ;;  %v1542_v42 = vpop.f32.mrb[5].mxu1 }
 0x144   : > { %v1495_v43 = vadd.f32 %v1494_v40, %v1493_v37  ;;  %v1543_v44 = vadd.f32 %v1542_v42, %v1541_v38  ;;  %v1496_v45 = vpop.f32.mrb[6].mxu0  ;;  %v1544_v46 = vpop.f32.mrb[6].mxu1  ;;  %v406_v37 = vld [vmem:[#allocation2 + $0xc0] sm:$0xff] }
 0x145   : > { %v1497_v48 = vpop.f32.mrb[7].mxu0  ;;  %v1545_v50 = vpop.f32.mrb[7].mxu1 }
 0x146   : > { %v897_v51 = vadd.f32 %v1495_v43, %v384_v39  ;;  %v913_v52 = vadd.f32 %v1543_v44, %v400_v41  ;;  %v1498_v53 = vadd.f32 %v1497_v48, %v1496_v45  ;;  %v1546_v54 = vadd.f32 %v1545_v50, %v1544_v46  ;;  %v391_v43 = vld [vmem:[#allocation2 + $0x48] sm:$0xff] }
 0x147   : > { %v407_v45 = vld [vmem:[#allocation2 + $0xc8] sm:$0xff] }
 0x148   : > { %929 = vst [vmem:[#allocation2 + $0x10] sm:$0xff] %v897_v51  ;;  %945 = vst [vmem:[#allocation2 + $0x90] sm:$0xff] %v913_v52  ;;  %v898_v55 = vadd.f32 %v1498_v53, %v385_v47  ;;  %v914_v56 = vadd.f32 %v1546_v54, %v401_v49 }
 0x14a   : > { %930 = vst [vmem:[#allocation2 + $0x18] sm:$0xff] %v898_v55  ;;  %946 = vst [vmem:[#allocation2 + $0x98] sm:$0xff] %v914_v56  ;;  %v1499_v57 = vpop.f32.mrb[8].mxu0  ;;  %v1547_v58 = vpop.f32.mrb[8].mxu1  ;;  %v392_v55 = vld [vmem:[#allocation2 + $0x50] sm:$0xff] }
 0x14b   : > { %v1500_v60 = vpop.f32.mrb[9].mxu0  ;;  %v1548_v62 = vpop.f32.mrb[9].mxu1 }
 0x14c   : > { %v1501_v63 = vadd.f32 %v1500_v60, %v1499_v57  ;;  %v1549_v0 = vadd.f32 %v1548_v62, %v1547_v58  ;;  %v1502_v1 = vpop.f32.mrb[10].mxu0  ;;  %v1550_v2 = vpop.f32.mrb[10].mxu1  ;;  %v408_v57 = vld [vmem:[#allocation2 + $0xd0] sm:$0xff] }
 0x14d   : > { %v1503_v4 = vpop.f32.mrb[11].mxu0  ;;  %v1551_v6 = vpop.f32.mrb[11].mxu1 }
 0x14e   : > { %v899_v7 = vadd.f32 %v1501_v63, %v386_v59  ;;  %v915_v8 = vadd.f32 %v1549_v0, %v402_v61  ;;  %v1504_v9 = vadd.f32 %v1503_v4, %v1502_v1  ;;  %v1552_v10 = vadd.f32 %v1551_v6, %v1550_v2  ;;  %v393_v63 = vld [vmem:[#allocation2 + $0x58] sm:$0xff] }
 0x14f   : > { %v409_v1 = vld [vmem:[#allocation2 + $0xd8] sm:$0xff] }
 0x150   : > { %931 = vst [vmem:[#allocation2 + $0x20] sm:$0xff] %v899_v7  ;;  %947 = vst [vmem:[#allocation2 + $0xa0] sm:$0xff] %v915_v8  ;;  %v900_v11 = vadd.f32 %v1504_v9, %v387_v3  ;;  %v916_v12 = vadd.f32 %v1552_v10, %v403_v5 }
 0x152   : > { %932 = vst [vmem:[#allocation2 + $0x28] sm:$0xff] %v900_v11  ;;  %948 = vst [vmem:[#allocation2 + $0xa8] sm:$0xff] %v916_v12  ;;  %v1505_v13 = vpop.f32.mrb[12].mxu0  ;;  %v1553_v14 = vpop.f32.mrb[12].mxu1  ;;  %v394_v11 = vld [vmem:[#allocation2 + $0x60] sm:$0xff] }
 0x153   : > { %v1506_v16 = vpop.f32.mrb[13].mxu0  ;;  %v1554_v18 = vpop.f32.mrb[13].mxu1 }
 0x154   : > { %v1507_v19 = vadd.f32 %v1506_v16, %v1505_v13  ;;  %v1555_v20 = vadd.f32 %v1554_v18, %v1553_v14  ;;  %v1508_v21 = vpop.f32.mrb[14].mxu0  ;;  %v1556_v22 = vpop.f32.mrb[14].mxu1  ;;  %v410_v13 = vld [vmem:[#allocation2 + $0xe0] sm:$0xff] }
 0x155   : > { %v1509_v24 = vpop.f32.mrb[15].mxu0  ;;  %v1557_v26 = vpop.f32.mrb[15].mxu1 }
 0x156   : > { %v901_v27 = vadd.f32 %v1507_v19, %v388_v15  ;;  %v917_v28 = vadd.f32 %v1555_v20, %v404_v17  ;;  %v1510_v29 = vadd.f32 %v1509_v24, %v1508_v21  ;;  %v1558_v30 = vadd.f32 %v1557_v26, %v1556_v22  ;;  %v395_v19 = vld [vmem:[#allocation2 + $0x68] sm:$0xff] }
 0x157   : > { %v411_v21 = vld [vmem:[#allocation2 + $0xe8] sm:$0xff] }
 0x158   : > { %933 = vst [vmem:[#allocation2 + $0x30] sm:$0xff] %v901_v27  ;;  %949 = vst [vmem:[#allocation2 + $0xb0] sm:$0xff] %v917_v28  ;;  %v902_v31 = vadd.f32 %v1510_v29, %v389_v23  ;;  %v918_v32 = vadd.f32 %v1558_v30, %v405_v25 }
 0x15a   : > { %934 = vst [vmem:[#allocation2 + $0x38] sm:$0xff] %v902_v31  ;;  %950 = vst [vmem:[#allocation2 + $0xb8] sm:$0xff] %v918_v32  ;;  %v1511_v33 = vpop.f32.mrb[16].mxu0  ;;  %v1559_v34 = vpop.f32.mrb[16].mxu1  ;;  %v396_v31 = vld [vmem:[#allocation2 + $0x70] sm:$0xff] }
 0x15b   : > { %v1512_v36 = vpop.f32.mrb[17].mxu0  ;;  %v1560_v38 = vpop.f32.mrb[17].mxu1 }
 0x15c   : > { %v1513_v39 = vadd.f32 %v1512_v36, %v1511_v33  ;;  %v1561_v40 = vadd.f32 %v1560_v38, %v1559_v34  ;;  %v1514_v41 = vpop.f32.mrb[18].mxu0  ;;  %v1562_v42 = vpop.f32.mrb[18].mxu1  ;;  %v412_v33 = vld [vmem:[#allocation2 + $0xf0] sm:$0xff] }
 0x15d   : > { %v1515_v44 = vpop.f32.mrb[19].mxu0  ;;  %v1563_v46 = vpop.f32.mrb[19].mxu1 }
 0x15e   : > { %v903_v47 = vadd.f32 %v1513_v39, %v390_v35  ;;  %v919_v48 = vadd.f32 %v1561_v40, %v406_v37  ;;  %v1516_v49 = vadd.f32 %v1515_v44, %v1514_v41  ;;  %v1564_v50 = vadd.f32 %v1563_v46, %v1562_v42  ;;  %v397_v39 = vld [vmem:[#allocation2 + $0x78] sm:$0xff] }
 0x15f   : > { %v413_v41 = vld [vmem:[#allocation2 + $0xf8] sm:$0xff] }
 0x160   : > { %935 = vst [vmem:[#allocation2 + $0x40] sm:$0xff] %v903_v47  ;;  %951 = vst [vmem:[#allocation2 + $0xc0] sm:$0xff] %v919_v48  ;;  %v904_v51 = vadd.f32 %v1516_v49, %v391_v43  ;;  %v920_v52 = vadd.f32 %v1564_v50, %v407_v45  ;;  %v963_v49 = vld [vmem:[#allocation2] sm:$0xff] (!%p1308_p13)  ;;  %v964_v50 = vld [vmem:[#allocation2 + $0x8] sm:$0xff] (!%p1308_p13) }
 0x162   : > { %936 = vst [vmem:[#allocation2 + $0x48] sm:$0xff] %v904_v51  ;;  %952 = vst [vmem:[#allocation2 + $0xc8] sm:$0xff] %v920_v52  ;;  %v1517_v53 = vpop.f32.mrb[20].mxu0  ;;  %v1565_v54 = vpop.f32.mrb[20].mxu1  ;;  %v965_v51 = vld [vmem:[#allocation2 + $0x10] sm:$0xff] (!%p1308_p13)  ;;  %v1379_v52 = vpack.c.bf16 (!%p1308_p13), %v964_v50, %v963_v49 }
 0x163   : > { %v1518_v56 = vpop.f32.mrb[21].mxu0  ;;  %v1566_v58 = vpop.f32.mrb[21].mxu1 }
 0x164   : > { %v1519_v59 = vadd.f32 %v1518_v56, %v1517_v53  ;;  %v1567_v60 = vadd.f32 %v1566_v58, %v1565_v54  ;;  %v1520_v61 = vpop.f32.mrb[22].mxu0  ;;  %v1568_v62 = vpop.f32.mrb[22].mxu1  ;;  %v966_v53 = vld [vmem:[#allocation2 + $0x18] sm:$0xff] (!%p1308_p13)  ;;  %v967_v54 = vld [vmem:[#allocation2 + $0x20] sm:$0xff] (!%p1308_p13)  ;;  %v969_v58 = vld [vmem:[#allocation2 + $0x30] sm:$0xff] (!%p1308_p13)  ;;  %1380 = vst [vmem:[%s1933_s26] sm:$0xff] (!%p1308_p13), %v1379_v52  }
 0x165   : > { %v1521_v0 = vpop.f32.mrb[23].mxu0  ;;  %v1569_v2 = vpop.f32.mrb[23].mxu1  ;;  %v1384_v56 = vpack.c.bf16 (!%p1308_p13), %v966_v53, %v965_v51 }
 0x166   : > { %v905_v3 = vadd.f32 %v1519_v59, %v392_v55  ;;  %v921_v4 = vadd.f32 %v1567_v60, %v408_v57  ;;  %v1522_v5 = vadd.f32 %v1521_v0, %v1520_v61  ;;  %v1570_v6 = vadd.f32 %v1569_v2, %v1568_v62  ;;  %v968_v55 = vld [vmem:[#allocation2 + $0x28] sm:$0xff] (!%p1308_p13)  ;;  %v970_v59 = vld [vmem:[#allocation2 + $0x38] sm:$0xff] (!%p1308_p13) }
 0x167   : > { %v1389_v57 = vpack.c.bf16 (!%p1308_p13), %v968_v55, %v967_v54  ;;  %v971_v60 = vld [vmem:[#allocation2 + $0x40] sm:$0xff] (!%p1308_p13)  ;;  %v1394_v61 = vpack.c.bf16 (!%p1308_p13), %v970_v59, %v969_v58  ;;  %1456 = vst [vmem:[%s1933_s26 + $0x8] sm:$0xff] (!%p1308_p13), %v1384_v56  }
 0x168   : > { %937 = vst [vmem:[#allocation2 + $0x50] sm:$0xff] %v905_v3  ;;  %953 = vst [vmem:[#allocation2 + $0xd0] sm:$0xff] %v921_v4  ;;  %v906_v7 = vadd.f32 %v1522_v5, %v393_v63  ;;  %v922_v8 = vadd.f32 %v1570_v6, %v409_v1 }
 0x169   : > { %v972_v62 = vld [vmem:[#allocation2 + $0x48] sm:$0xff] (!%p1308_p13)  ;;  %1457 = vst [vmem:[%s1933_s26 + $0x10] sm:$0xff] (!%p1308_p13), %v1389_v57   ;;  %1458 = vst [vmem:[%s1933_s26 + $0x18] sm:$0xff] (!%p1308_p13), %v1394_v61  }
 0x16a   : > { %938 = vst [vmem:[#allocation2 + $0x58] sm:$0xff] %v906_v7  ;;  %954 = vst [vmem:[#allocation2 + $0xd8] sm:$0xff] %v922_v8  ;;  %v1523_v9 = vpop.f32.mrb[24].mxu0  ;;  %v1571_v10 = vpop.f32.mrb[24].mxu1  ;;  %v1399_v1 = vpack.c.bf16 (!%p1308_p13), %v972_v62, %v971_v60  ;;  %v979_v8 = vld [vmem:[#allocation2 + $0x80] sm:$0xff] (!%p1308_p13) }
 0x16b   : > { %v1524_v12 = vpop.f32.mrb[25].mxu0  ;;  %v1572_v14 = vpop.f32.mrb[25].mxu1 }
 0x16c   : > { %v1525_v15 = vadd.f32 %v1524_v12, %v1523_v9  ;;  %v1573_v16 = vadd.f32 %v1572_v14, %v1571_v10  ;;  %v1526_v17 = vpop.f32.mrb[26].mxu0  ;;  %v1574_v18 = vpop.f32.mrb[26].mxu1  ;;  %v980_v9 = vld [vmem:[#allocation2 + $0x88] sm:$0xff] (!%p1308_p13)  ;;  %1459 = vst [vmem:[%s1933_s26 + $0x20] sm:$0xff] (!%p1308_p13), %v1399_v1   ;;  %v981_v12 = vld [vmem:[#allocation2 + $0x90] sm:$0xff] (!%p1308_p13)  ;;  %v983_v14 = vld [vmem:[#allocation2 + $0xa0] sm:$0xff] (!%p1308_p13) }
 0x16d   : > { %v1527_v20 = vpop.f32.mrb[27].mxu0  ;;  %v1575_v22 = vpop.f32.mrb[27].mxu1 }
 0x16e   : > { %v907_v23 = vadd.f32 %v1525_v15, %v394_v11  ;;  %v923_v24 = vadd.f32 %v1573_v16, %v410_v13  ;;  %v1528_v25 = vadd.f32 %v1527_v20, %v1526_v17  ;;  %v1576_v26 = vadd.f32 %v1575_v22, %v1574_v18  ;;  %v982_v13 = vld [vmem:[#allocation2 + $0x98] sm:$0xff] (!%p1308_p13)  ;;  %v984_v16 = vld [vmem:[#allocation2 + $0xa8] sm:$0xff] (!%p1308_p13)  ;;  %v985_v17 = vld [vmem:[#allocation2 + $0xb0] sm:$0xff] (!%p1308_p13) }
 0x16f   : > { %v973_v63 = vld [vmem:[#allocation2 + $0x50] sm:$0xff] (!%p1308_p13)  ;;  %v1419_v11 = vpack.c.bf16 (!%p1308_p13), %v980_v9, %v979_v8  ;;  %v1424_v15 = vpack.c.bf16 (!%p1308_p13), %v982_v13, %v981_v12  ;;  %v986_v18 = vld [vmem:[#allocation2 + $0xb8] sm:$0xff] (!%p1308_p13)  ;;  %v988_v22 = vld [vmem:[#allocation2 + $0xc8] sm:$0xff] (!%p1308_p13) }
 0x170   : > { %939 = vst [vmem:[#allocation2 + $0x60] sm:$0xff] %v907_v23  ;;  %955 = vst [vmem:[#allocation2 + $0xe0] sm:$0xff] %v923_v24  ;;  %v908_v27 = vadd.f32 %v1528_v25, %v395_v19  ;;  %v924_v28 = vadd.f32 %v1576_v26, %v411_v21  ;;  %v1429_v19 = vpack.c.bf16 (!%p1308_p13), %v984_v16, %v983_v14  ;;  %v987_v21 = vld [vmem:[#allocation2 + $0xc0] sm:$0xff] (!%p1308_p13)  ;;  %v989_v23 = vld [vmem:[#allocation2 + $0xd0] sm:$0xff] (!%p1308_p13) }
 0x171   : > { %v974_v0 = vld [vmem:[#allocation2 + $0x58] sm:$0xff] (!%p1308_p13)  ;;  %1463 = vst [vmem:[%s1933_s26 + $0x40] sm:$0xff] (!%p1308_p13), %v1419_v11   ;;  %v1434_v20 = vpack.c.bf16 (!%p1308_p13), %v986_v18, %v985_v17  ;;  %1464 = vst [vmem:[%s1933_s26 + $0x48] sm:$0xff] (!%p1308_p13), %v1424_v15   ;;  %v1439_v24 = vpack.c.bf16 (!%p1308_p13), %v988_v22, %v987_v21 }
 0x172   : > { %940 = vst [vmem:[#allocation2 + $0x68] sm:$0xff] %v908_v27  ;;  %956 = vst [vmem:[#allocation2 + $0xe8] sm:$0xff] %v924_v28  ;;  %v1529_v29 = vpop.f32.mrb[28].mxu0  ;;  %v1577_v30 = vpop.f32.mrb[28].mxu1  ;;  %v1404_v2 = vpack.c.bf16 (!%p1308_p13), %v974_v0, %v973_v63  ;;  %v990_v25 = vld [vmem:[#allocation2 + $0xd8] sm:$0xff] (!%p1308_p13) }
 0x173   : > { %v1530_v32 = vpop.f32.mrb[29].mxu0  ;;  %v1578_v34 = vpop.f32.mrb[29].mxu1  ;;  %1465 = vst [vmem:[%s1933_s26 + $0x50] sm:$0xff] (!%p1308_p13), %v1429_v19   ;;  %1466 = vst [vmem:[%s1933_s26 + $0x58] sm:$0xff] (!%p1308_p13), %v1434_v20   ;;  %v1444_v28 = vpack.c.bf16 (!%p1308_p13), %v990_v25, %v989_v23 }
 0x174   : > { %v1531_v35 = vadd.f32 %v1530_v32, %v1529_v29  ;;  %v1579_v36 = vadd.f32 %v1578_v34, %v1577_v30  ;;  %v1532_v37 = vpop.f32.mrb[30].mxu0  ;;  %v1580_v38 = vpop.f32.mrb[30].mxu1  ;;  %962 = sbr.rel (%p1308_p13) target bundleno = 390 (0x186), region = 74  ;;  %1460 = vst [vmem:[%s1933_s26 + $0x28] sm:$0xff] (!%p1308_p13), %v1404_v2   ;;  %1467 = vst [vmem:[%s1933_s26 + $0x60] sm:$0xff] (!%p1308_p13), %v1439_v24  }
 0x175   : > { %v1533_v40 = vpop.f32.mrb[31].mxu0  ;;  %v1581_v42 = vpop.f32.mrb[31].mxu1  ;;  %1468 = vst [vmem:[%s1933_s26 + $0x68] sm:$0xff] (!%p1308_p13), %v1444_v28  }
 0x176   : > { %v909_v43 = vadd.f32 %v1531_v35, %v396_v31  ;;  %v925_v44 = vadd.f32 %v1579_v36, %v412_v33  ;;  %v1534_v45 = vadd.f32 %v1533_v40, %v1532_v37  ;;  %v1582_v46 = vadd.f32 %v1581_v42, %v1580_v38 }
 0x177   : > { %v975_v3 = vld [vmem:[#allocation2 + $0x60] sm:$0xff] (!%p1308_p13) }
 0x178   : > { %941 = vst [vmem:[#allocation2 + $0x70] sm:$0xff] %v909_v43  ;;  %957 = vst [vmem:[#allocation2 + $0xf0] sm:$0xff] %v925_v44  ;;  %v910_v47 = vadd.f32 %v1534_v45, %v397_v39  ;;  %v926_v48 = vadd.f32 %v1582_v46, %v413_v41  ;;  %v991_v26 = vld [vmem:[#allocation2 + $0xe0] sm:$0xff] (!%p1308_p13) }
 0x179   : > { %v976_v4 = vld [vmem:[#allocation2 + $0x68] sm:$0xff] (!%p1308_p13) }
 0x17a   : > { %942 = vst [vmem:[#allocation2 + $0x78] sm:$0xff] %v910_v47  ;;  %958 = vst [vmem:[#allocation2 + $0xf8] sm:$0xff] %v926_v48  ;;  %v1409_v6 = vpack.c.bf16 (!%p1308_p13), %v976_v4, %v975_v3  ;;  %v992_v27 = vld [vmem:[#allocation2 + $0xe8] sm:$0xff] (!%p1308_p13) }
 0x17b   : > { %v1449_v29 = vpack.c.bf16 %v992_v27, %v991_v26 }
 0x17c   : > { %1461 = vst [vmem:[%s1933_s26 + $0x30] sm:$0xff] %v1409_v6  }
 0x17d   : > { %1469 = vst [vmem:[%s1933_s26 + $0x70] sm:$0xff] %v1449_v29  }
 0x17f   : > { %v977_v5 = vld [vmem:[#allocation2 + $0x70] sm:$0xff] }
 0x180   : > { %v993_v30 = vld [vmem:[#allocation2 + $0xf0] sm:$0xff] }
 0x181   : > { %v978_v7 = vld [vmem:[#allocation2 + $0x78] sm:$0xff] }
 0x182   : > { %v1414_v10 = vpack.c.bf16 %v978_v7, %v977_v5  ;;  %v994_v31 = vld [vmem:[#allocation2 + $0xf8] sm:$0xff] }
 0x183   : > { %v1454_v32 = vpack.c.bf16 %v994_v31, %v993_v30 }
 0x184   : > { %1462 = vst [vmem:[%s1933_s26 + $0x38] sm:$0xff] %v1414_v10  }
 0x185   : > { %1470 = vst [vmem:[%s1933_s26 + $0x78] sm:$0xff] %v1454_v32  }
 0x186 PF: > { %s12_s15 = sadd.s32 1, %s1774_s15   ;;  %s2027_s9 = smov %s1754_s10 }
 0x187   : > { %p9_p0 = scmp.ge.s32.totalorder %s12_s15, 6   ;;  %s2028_s10 = smov %s1843_s22 }
 0x188   : > { %s2029_s11 = smov %s1766_s13  ;;  %s2030_s12 = smov %s1770_s14 }
 0x189   : > { %s2031_s13 = smov %s2034_s16  ;;  %s2032_s14 = smov %s2038_s17 }
 0x18a   :  { %11 = sbr.rel (!%p9_p0) target bundleno = 4 (0x4), region = 112 }

// kernel: smpgnn_forward.5
= control target key start
LH: loop header
LB: loop body
LE: loop exit
PB: predicated region body
PF: predicated region fallthrough
CT: control target
= control target key end

     0   :  { %s2052_s9 = smov 0   ;;  %s2054_s10 = smov 0   ;;  %s2719_s0 = inlined_call_operand.vmem [shape: bf16[512,512], index: 0, kind: input, shape index: {}]   ;;  %s2720_s1 = inlined_call_operand.vmem [shape: bf16[512,128], index: 1, kind: input, shape index: {}]   ;;  %s2721_s2 = inlined_call_operand.vmem [shape: f32[512,128], index: 2, kind: output, shape index: {}]  }
   0x1   :  { %s2056_s11 = smov 0   ;;  %s2058_s12 = smov 0  }
   0x2   :  { %s2060_s13 = smov 0   ;;  %s2062_s14 = smov 0  }
   0x3   :  { %s2064_s15 = smov 0  }
   0x4 LB: > { %s21_s16 = sadd.s32 1, %s2026_s13  ;;  %s24_s17 = sadd.s32 1, %s2030_s14  ;;  %s2034_s15 = sphi %s2064_s15, %s12_s15   ;;  %s2030_s14 = sphi %s2062_s14, %s2769_s14   ;;  %s2026_s13 = sphi %s2060_s13, %s2768_s13   ;;  %s2022_s12 = sphi %s2058_s12, %s2767_s12   ;;  %s2018_s11 = sphi %s2056_s11, %s2766_s11   ;;  %s2014_s10 = sphi %s2054_s10, %s2765_s10   ;;  %s2010_s9 = sphi %s2052_s9, %s2764_s9  }
   0x5   : > { %p22_p0 = scmp.ge.s32.totalorder %s21_s16, 2  ;;  %p40_p1 = scmp.ne.s32.totalorder %s2014_s10, %s2010_s9 }
   0x6   : > { %p41_p2 = scmp.eq.s32.totalorder %s2034_s15, 0  ;;  %s33_s21 = sadd.s32 1, %s2014_s10 }
   0x7   : > { %s2771_s16 = smov (%p22_p0, %s21_s16), 0  ;;  %s2773_s17 = smov (!%p22_p0, %s24_s17), %s2030_s14 }
   0x8   : > { %p42_p3 = por %p41_p2, %p40_p1  ;;  %p26_p4 = scmp.ge.s32.totalorder %s2773_s17, 2 }
   0x9   : > { %s29_s18 = ssub.s32 %s2026_s13, %s2771_s16  ;;  %p1538_p6 = scmp.ge.s32.totalorder %s2034_s15, 4 }
   0xa   : > { %s2775_s17 = smov (%p26_p4, %s2773_s17), 0 }
   0xb   : > { %s28_s19 = ssub.s32 %s2030_s14, %s2775_s17  ;;  %118 = sbr.rel (%p1538_p6) target bundleno = 41 (0x29), region = 16 }
   0xc   : > { %s30_s20 = sor.u32 %s29_s18, %s28_s19 }
   0xd   : > { %p31_p5 = scmp.eq.s32.totalorder %s30_s20, 0 }
   0xf   : > { %s2103_s22 = scalar_select %p31_p5, %s2014_s10, %s33_s21  }
  0x12   : > { %121 = sbr.rel (!%p42_p3) target bundleno = 41 (0x29), region = 20  ;;  %s123_s23 = sand.u32 (%p42_p3), 1, %s2014_s10  }
  0x13   : > { %s1541_s24 = sshll.u32 (%p42_p3), %s2026_s13, 1  ;;  %s1539_s25 = sshll.u32 (%p42_p3), %s123_s23, 8 }
  0x14   : > { %s1602_s26 = sshll.u32 (%p42_p3), %s2030_s14, 7  ;;  %s2117_s4 = scalar_lea.vmem (%p42_p3), [#allocation3], %s1539_s25 }
  0x15   : > { %s129_s27 = sadd.s32 (%p42_p3), %s1602_s26, %s1541_s24 }
  0x16   : > { %s1543_s28 = sshll.u32 (%p42_p3), %s129_s27, 2 }
  0x17   : > { %s2112_s3 = scalar_lea.vmem (%p42_p3), %s2719_s0, %s1543_s28 }
  0x18   : > { %v221_v0 = vld [vmem:[%s2112_s3] sm:$0xff] (%p42_p3)  ;;  %v223_v1 = vld [vmem:[%s2112_s3 + $0x10] sm:$0xff] (%p42_p3) }
  0x19   : > { %v225_v2 = vld [vmem:[%s2112_s3 + $0x20] sm:$0xff]  ;;  %222 = vst [vmem:[%s2117_s4] sm:$0xff] %v221_v0  ;;  %224 = vst [vmem:[%s2117_s4 + $0x8] sm:$0xff] %v223_v1  ;;  %v227_v3 = vld [vmem:[%s2112_s3 + $0x30] sm:$0xff] }
  0x1a   : > { %226 = vst [vmem:[%s2117_s4 + $0x10] sm:$0xff] %v225_v2  ;;  %v229_v4 = vld [vmem:[%s2112_s3 + $0x40] sm:$0xff]  ;;  %v231_v5 = vld [vmem:[%s2112_s3 + $0x50] sm:$0xff]  ;;  %228 = vst [vmem:[%s2117_s4 + $0x18] sm:$0xff] %v227_v3 }
  0x1b   : > { %230 = vst [vmem:[%s2117_s4 + $0x20] sm:$0xff] %v229_v4  ;;  %232 = vst [vmem:[%s2117_s4 + $0x28] sm:$0xff] %v231_v5  ;;  %v233_v6 = vld [vmem:[%s2112_s3 + $0x60] sm:$0xff]  ;;  %v235_v7 = vld [vmem:[%s2112_s3 + $0x70] sm:$0xff] }
  0x1c   : > { %v237_v8 = vld [vmem:[%s2112_s3 + $0x80] sm:$0xff]  ;;  %234 = vst [vmem:[%s2117_s4 + $0x30] sm:$0xff] %v233_v6  ;;  %236 = vst [vmem:[%s2117_s4 + $0x38] sm:$0xff] %v235_v7  ;;  %v239_v9 = vld [vmem:[%s2112_s3 + $0x90] sm:$0xff] }
  0x1d   : > { %238 = vst [vmem:[%s2117_s4 + $0x40] sm:$0xff] %v237_v8  ;;  %v241_v10 = vld [vmem:[%s2112_s3 + $0xa0] sm:$0xff]  ;;  %v243_v11 = vld [vmem:[%s2112_s3 + $0xb0] sm:$0xff]  ;;  %240 = vst [vmem:[%s2117_s4 + $0x48] sm:$0xff] %v239_v9 }
  0x1e   : > { %242 = vst [vmem:[%s2117_s4 + $0x50] sm:$0xff] %v241_v10  ;;  %244 = vst [vmem:[%s2117_s4 + $0x58] sm:$0xff] %v243_v11  ;;  %v245_v12 = vld [vmem:[%s2112_s3 + $0xc0] sm:$0xff]  ;;  %v247_v13 = vld [vmem:[%s2112_s3 + $0xd0] sm:$0xff] }
  0x1f   : > { %v249_v14 = vld [vmem:[%s2112_s3 + $0xe0] sm:$0xff]  ;;  %246 = vst [vmem:[%s2117_s4 + $0x60] sm:$0xff] %v245_v12  ;;  %248 = vst [vmem:[%s2117_s4 + $0x68] sm:$0xff] %v247_v13  ;;  %v251_v15 = vld [vmem:[%s2112_s3 + $0xf0] sm:$0xff] }
  0x20   : > { %250 = vst [vmem:[%s2117_s4 + $0x70] sm:$0xff] %v249_v14  ;;  %v253_v16 = vld [vmem:[%s2112_s3 + $0x100] sm:$0xff]  ;;  %v255_v17 = vld [vmem:[%s2112_s3 + $0x110] sm:$0xff]  ;;  %252 = vst [vmem:[%s2117_s4 + $0x78] sm:$0xff] %v251_v15 }
  0x21   : > { %254 = vst [vmem:[%s2117_s4 + $0x80] sm:$0xff] %v253_v16  ;;  %256 = vst [vmem:[%s2117_s4 + $0x88] sm:$0xff] %v255_v17  ;;  %v257_v18 = vld [vmem:[%s2112_s3 + $0x120] sm:$0xff]  ;;  %v259_v19 = vld [vmem:[%s2112_s3 + $0x130] sm:$0xff] }
  0x22   : > { %v261_v20 = vld [vmem:[%s2112_s3 + $0x140] sm:$0xff]  ;;  %258 = vst [vmem:[%s2117_s4 + $0x90] sm:$0xff] %v257_v18  ;;  %260 = vst [vmem:[%s2117_s4 + $0x98] sm:$0xff] %v259_v19  ;;  %v263_v21 = vld [vmem:[%s2112_s3 + $0x150] sm:$0xff] }
  0x23   : > { %262 = vst [vmem:[%s2117_s4 + $0xa0] sm:$0xff] %v261_v20  ;;  %v265_v22 = vld [vmem:[%s2112_s3 + $0x160] sm:$0xff]  ;;  %v267_v23 = vld [vmem:[%s2112_s3 + $0x170] sm:$0xff]  ;;  %264 = vst [vmem:[%s2117_s4 + $0xa8] sm:$0xff] %v263_v21 }
  0x24   : > { %266 = vst [vmem:[%s2117_s4 + $0xb0] sm:$0xff] %v265_v22  ;;  %268 = vst [vmem:[%s2117_s4 + $0xb8] sm:$0xff] %v267_v23  ;;  %v269_v24 = vld [vmem:[%s2112_s3 + $0x180] sm:$0xff]  ;;  %v271_v25 = vld [vmem:[%s2112_s3 + $0x190] sm:$0xff] }
  0x25   : > { %v273_v26 = vld [vmem:[%s2112_s3 + $0x1a0] sm:$0xff]  ;;  %270 = vst [vmem:[%s2117_s4 + $0xc0] sm:$0xff] %v269_v24  ;;  %272 = vst [vmem:[%s2117_s4 + $0xc8] sm:$0xff] %v271_v25  ;;  %v275_v27 = vld [vmem:[%s2112_s3 + $0x1b0] sm:$0xff] }
  0x26   : > { %274 = vst [vmem:[%s2117_s4 + $0xd0] sm:$0xff] %v273_v26  ;;  %v277_v28 = vld [vmem:[%s2112_s3 + $0x1c0] sm:$0xff]  ;;  %v279_v29 = vld [vmem:[%s2112_s3 + $0x1d0] sm:$0xff]  ;;  %276 = vst [vmem:[%s2117_s4 + $0xd8] sm:$0xff] %v275_v27 }
  0x27   : > { %278 = vst [vmem:[%s2117_s4 + $0xe0] sm:$0xff] %v277_v28  ;;  %280 = vst [vmem:[%s2117_s4 + $0xe8] sm:$0xff] %v279_v29  ;;  %v281_v30 = vld [vmem:[%s2112_s3 + $0x1e0] sm:$0xff]  ;;  %v283_v31 = vld [vmem:[%s2112_s3 + $0x1f0] sm:$0xff] }
  0x28   : > { %282 = vst [vmem:[%s2117_s4 + $0xf0] sm:$0xff] %v281_v30  ;;  %284 = vst [vmem:[%s2117_s4 + $0xf8] sm:$0xff] %v283_v31 }
  0x29 PF: > { %p1544_p7 = scmp.ge.s32.totalorder %s2034_s15, 1  ;;  %p298_p8 = scmp.lt.s32.totalorder %s2034_s15, 5 }
  0x2b   : > { %p299_p9 = pnand %p1544_p7, %p298_p8 }
  0x2c   : > { %s305_s5 = sand.u32 (!%p299_p9), 1, %s2010_s9   ;;  %s1546_s6 = sshll.u32 (!%p299_p9), %s2018_s11, 5 }
  0x2d   : > { %302 = sbr.rel (%p299_p9) target bundleno = 767 (0x2ff), region = 62  ;;  %s1545_s7 = sshll.u32 (!%p299_p9), %s305_s5, 8 }
  0x2e   : > { %p334_p10 = scmp.lt.s32.totalorder (!%p299_p9), %s1546_s6, 63  ;;  %s1548_s8 = sshll.u32 (!%p299_p9), %s2022_s12, 5 }
  0x2f   : > { %p340_p11 = scmp.lt.s32.totalorder (!%p299_p9), %s1548_s8, 63  ;;  %s2195_s9 = scalar_lea.vmem (!%p299_p9), [#allocation3], %s1545_s7 }
  0x30   : > { %p1550_p12 = scmp.ne.s32.totalorder (!%p299_p9), %s2018_s11, 0 }
  0x34   : > { %s2777_s6 = smov (!%p334_p10, %s1546_s6), 63  ;;  %s2779_s8 = smov (!%p340_p11, %s1548_s8), 63 }
  0x35   : > { %s1547_s18 = sshll.u32 %s2777_s6, 2  ;;  %s1549_s23 = sshll.u32 %s2779_s8, 3  ;;  %v2036_v32 = vmov (!%p1550_p12), 0.0  }
  0x36   : > { %s2188_s21 = scalar_lea.vmem %s2720_s1, %s1547_s18  ;;  %s2193_s26 = scalar_lea.vmem %s2721_s2, %s1549_s23  ;;  %350 = vst [vmem:[#allocation2] sm:$0xff] (!%p1550_p12), %v2036_v32  ;;  %351 = vst [vmem:[#allocation2 + $0x8] sm:$0xff] (!%p1550_p12), %v2036_v32 }
  0x37   : > { %349 = sbr.rel (%p1550_p12) target bundleno = 70 (0x46), region = 70  ;;  %352 = vst [vmem:[#allocation2 + $0x10] sm:$0xff] (!%p1550_p12), %v2036_v32  ;;  %353 = vst [vmem:[#allocation2 + $0x18] sm:$0xff] (!%p1550_p12), %v2036_v32 }
  0x38   : > { %354 = vst [vmem:[#allocation2 + $0x20] sm:$0xff] (!%p1550_p12), %v2036_v32  ;;  %355 = vst [vmem:[#allocation2 + $0x28] sm:$0xff] (!%p1550_p12), %v2036_v32 }
  0x39   : > { %356 = vst [vmem:[#allocation2 + $0x30] sm:$0xff] (!%p1550_p12), %v2036_v32  ;;  %357 = vst [vmem:[#allocation2 + $0x38] sm:$0xff] (!%p1550_p12), %v2036_v32 }
  0x3a   : > { %358 = vst [vmem:[#allocation2 + $0x40] sm:$0xff] (!%p1550_p12), %v2036_v32  ;;  %359 = vst [vmem:[#allocation2 + $0x48] sm:$0xff] (!%p1550_p12), %v2036_v32 }
  0x3b   : > { %360 = vst [vmem:[#allocation2 + $0x50] sm:$0xff] (!%p1550_p12), %v2036_v32  ;;  %361 = vst [vmem:[#allocation2 + $0x58] sm:$0xff] (!%p1550_p12), %v2036_v32 }
  0x3c   : > { %362 = vst [vmem:[#allocation2 + $0x60] sm:$0xff] (!%p1550_p12), %v2036_v32  ;;  %363 = vst [vmem:[#allocation2 + $0x68] sm:$0xff] (!%p1550_p12), %v2036_v32 }
  0x3d   : > { %364 = vst [vmem:[#allocation2 + $0x70] sm:$0xff] (!%p1550_p12), %v2036_v32  ;;  %365 = vst [vmem:[#allocation2 + $0x78] sm:$0xff] (!%p1550_p12), %v2036_v32 }
  0x3e   : > { %366 = vst [vmem:[#allocation2 + $0x80] sm:$0xff] %v2036_v32  ;;  %367 = vst [vmem:[#allocation2 + $0x88] sm:$0xff] %v2036_v32 }
  0x3f   : > { %368 = vst [vmem:[#allocation2 + $0x90] sm:$0xff] %v2036_v32  ;;  %369 = vst [vmem:[#allocation2 + $0x98] sm:$0xff] %v2036_v32 }
  0x40   : > { %370 = vst [vmem:[#allocation2 + $0xa0] sm:$0xff] %v2036_v32  ;;  %371 = vst [vmem:[#allocation2 + $0xa8] sm:$0xff] %v2036_v32 }
  0x41   : > { %372 = vst [vmem:[#allocation2 + $0xb0] sm:$0xff] %v2036_v32  ;;  %373 = vst [vmem:[#allocation2 + $0xb8] sm:$0xff] %v2036_v32 }
  0x42   : > { %374 = vst [vmem:[#allocation2 + $0xc0] sm:$0xff] %v2036_v32  ;;  %375 = vst [vmem:[#allocation2 + $0xc8] sm:$0xff] %v2036_v32 }
  0x43   : > { %376 = vst [vmem:[#allocation2 + $0xd0] sm:$0xff] %v2036_v32  ;;  %377 = vst [vmem:[#allocation2 + $0xd8] sm:$0xff] %v2036_v32 }
  0x44   : > { %378 = vst [vmem:[#allocation2 + $0xe0] sm:$0xff] %v2036_v32  ;;  %379 = vst [vmem:[#allocation2 + $0xe8] sm:$0xff] %v2036_v32 }
  0x45   : > { %380 = vst [vmem:[#allocation2 + $0xf0] sm:$0xff] %v2036_v32  ;;  %381 = vst [vmem:[#allocation2 + $0xf8] sm:$0xff] %v2036_v32 }
  0x46 PF: > { %v1788_v33 = vld [vmem:[%s2188_s21 + $0x40] sm:$0xff]   ;;  %v1790_v35 = vld [vmem:[%s2188_s21 + $0x48] sm:$0xff]   ;;  %v1792_v37 = vld [vmem:[%s2188_s21 + $0x50] sm:$0xff]   ;;  %p1599_p13 = scmp.ne.s32.totalorder %s2018_s11, 1 }
  0x47   : > { %v1789_v34 = vld [vmem:[%s2188_s21] sm:$0xff]   ;;  %1603 = vmatprep.subr.bf16.mxu0 %v1788_v33  ;;  %1715 = vmatprep.subr.bf16.mxu1 %v1788_v33  ;;  %v1791_v36 = vld [vmem:[%s2188_s21 + $0x8] sm:$0xff]   ;;  %v1793_v38 = vld [vmem:[%s2188_s21 + $0x10] sm:$0xff]  }
  0x48   : > { %1604 = vmatpush3.bf16.msra.mxu0 %v1789_v34  ;;  %1723 = vmatpush3.bf16.msra.mxu1 %v1789_v34  ;;  %v1794_v39 = vld [vmem:[%s2188_s21 + $0x58] sm:$0xff]   ;;  %v1796_v41 = vld [vmem:[%s2188_s21 + $0x60] sm:$0xff]   ;;  %v1798_v43 = vld [vmem:[%s2188_s21 + $0x68] sm:$0xff]  }
  0x49   : > { %1605 = vmatprep.subr.bf16.mxu0 %v1790_v35  ;;  %1716 = vmatprep.subr.bf16.mxu1 %v1790_v35  ;;  %v1795_v40 = vld [vmem:[%s2188_s21 + $0x18] sm:$0xff]   ;;  %v1797_v42 = vld [vmem:[%s2188_s21 + $0x20] sm:$0xff]   ;;  %v1799_v46 = vld [vmem:[%s2188_s21 + $0x28] sm:$0xff]  }
  0x4a   : > { %v1806_v44 = vld [vmem:[%s2195_s9 + $0x4] ss:$8 sps:$4 sm:$0xff]   ;;  %v1800_v47 = vld [vmem:[%s2188_s21 + $0x70] sm:$0xff]   ;;  %v1802_v49 = vld [vmem:[%s2188_s21 + $0x78] sm:$0xff]  }
  0x4b   : > { %v1809_v45 = vld [vmem:[%s2195_s9 + $0x84] ss:$8 sps:$4 sm:$0xff]   ;;  %766 = vmatprep.mubr.bf16.mxu0 %v1806_v44  ;;  %v1801_v48 = vld [vmem:[%s2188_s21 + $0x30] sm:$0xff]   ;;  %v1803_v50 = vld [vmem:[%s2188_s21 + $0x38] sm:$0xff]  }
  0x4c   : > { %1606 = vmatpush3.bf16.msra.mxu0 %v1791_v36  ;;  %1724 = vmatpush3.bf16.msra.mxu1 %v1791_v36  ;;  %v1804_v51 = vld [vmem:[%s2195_s9] ss:$8 sps:$4 sm:$0xff]   ;;  %v1810_v53 = vld [vmem:[%s2195_s9 + $0x14] ss:$8 sps:$4 sm:$0xff]   ;;  %v1814_v55 = vld [vmem:[%s2195_s9 + $0x10] ss:$8 sps:$4 sm:$0xff]  }
  0x4d   : > { %1607 = vmatprep.subr.bf16.mxu0 %v1792_v37  ;;  %1717 = vmatprep.subr.bf16.mxu1 %v1792_v37  ;;  %v1807_v52 = vld [vmem:[%s2195_s9 + $0x80] ss:$8 sps:$4 sm:$0xff]   ;;  %v1812_v54 = vld [vmem:[%s2195_s9 + $0x94] ss:$8 sps:$4 sm:$0xff]   ;;  %v1815_v56 = vld [vmem:[%s2195_s9 + $0x90] ss:$8 sps:$4 sm:$0xff]  }
  0x4e   : > { %830 = vmatprep.mubr.bf16.mxu1 %v1809_v45  ;;  %v1816_v57 = vld [vmem:[%s2195_s9 + $0x24] ss:$8 sps:$4 sm:$0xff]   ;;  %v1820_v59 = vld [vmem:[%s2195_s9 + $0x20] ss:$8 sps:$4 sm:$0xff]   ;;  %v1822_v61 = vld [vmem:[%s2195_s9 + $0x34] ss:$8 sps:$4 sm:$0xff]  }
  0x4f   : > { %v1818_v58 = vld [vmem:[%s2195_s9 + $0xa4] ss:$8 sps:$4 sm:$0xff]   ;;  %v1821_v60 = vld [vmem:[%s2195_s9 + $0xa0] ss:$8 sps:$4 sm:$0xff]   ;;  %v1824_v62 = vld [vmem:[%s2195_s9 + $0xb4] ss:$8 sps:$4 sm:$0xff]  }
  0x50   : > { %1608 = vmatpush3.bf16.msra.mxu0 %v1793_v38  ;;  %1725 = vmatpush3.bf16.msra.mxu1 %v1793_v38  ;;  %v1826_v63 = vld [vmem:[%s2195_s9 + $0x30] ss:$8 sps:$4 sm:$0xff]   ;;  %v1828_v1 = vld [vmem:[%s2195_s9 + $0x44] ss:$8 sps:$4 sm:$0xff]   ;;  %v1832_v3 = vld [vmem:[%s2195_s9 + $0x40] ss:$8 sps:$4 sm:$0xff]  }
  0x51   : > { %1609 = vmatprep.subr.bf16.mxu0 %v1794_v39  ;;  %1718 = vmatprep.subr.bf16.mxu1 %v1794_v39  ;;  %v1827_v0 = vld [vmem:[%s2195_s9 + $0xb0] ss:$8 sps:$4 sm:$0xff]   ;;  %v1830_v2 = vld [vmem:[%s2195_s9 + $0xc4] ss:$8 sps:$4 sm:$0xff]   ;;  %v1833_v4 = vld [vmem:[%s2195_s9 + $0xc0] ss:$8 sps:$4 sm:$0xff]  }
  0x52   : > { %v1834_v5 = vld [vmem:[%s2195_s9 + $0x54] ss:$8 sps:$4 sm:$0xff]   ;;  %v1838_v7 = vld [vmem:[%s2195_s9 + $0x50] ss:$8 sps:$4 sm:$0xff]   ;;  %v1840_v9 = vld [vmem:[%s2195_s9 + $0x64] ss:$8 sps:$4 sm:$0xff]  }
  0x53   : > { %v1836_v6 = vld [vmem:[%s2195_s9 + $0xd4] ss:$8 sps:$4 sm:$0xff]   ;;  %v1839_v8 = vld [vmem:[%s2195_s9 + $0xd0] ss:$8 sps:$4 sm:$0xff]   ;;  %v1842_v10 = vld [vmem:[%s2195_s9 + $0xe4] ss:$8 sps:$4 sm:$0xff]  }
  0x54   : > { %1610 = vmatpush3.bf16.msra.mxu0 %v1795_v40  ;;  %1726 = vmatpush3.bf16.msra.mxu1 %v1795_v40  ;;  %v1844_v11 = vld [vmem:[%s2195_s9 + $0x60] ss:$8 sps:$4 sm:$0xff]   ;;  %v1846_v13 = vld [vmem:[%s2195_s9 + $0x74] ss:$8 sps:$4 sm:$0xff]   ;;  %v1850_v15 = vld [vmem:[%s2195_s9 + $0x70] ss:$8 sps:$4 sm:$0xff]  }
  0x55   : > { %1611 = vmatprep.subr.bf16.mxu0 %v1796_v41  ;;  %1719 = vmatprep.subr.bf16.mxu1 %v1796_v41  ;;  %v1845_v12 = vld [vmem:[%s2195_s9 + $0xe0] ss:$8 sps:$4 sm:$0xff]   ;;  %v1848_v14 = vld [vmem:[%s2195_s9 + $0xf4] ss:$8 sps:$4 sm:$0xff]   ;;  %v1851_v16 = vld [vmem:[%s2195_s9 + $0xf0] ss:$8 sps:$4 sm:$0xff]  }
  0x56   : > { %v382_v19 = vld [vmem:[#allocation2] sm:$0xff]  ;;  %v383_v27 = vld [vmem:[#allocation2 + $0x8] sm:$0xff]  ;;  %v384_v39 = vld [vmem:[#allocation2 + $0x10] sm:$0xff] }
  0x57   : > { %v398_v21 = vld [vmem:[#allocation2 + $0x80] sm:$0xff]  ;;  %v399_v29 = vld [vmem:[#allocation2 + $0x88] sm:$0xff]  ;;  %v400_v41 = vld [vmem:[#allocation2 + $0x90] sm:$0xff] }
  0x58   : > { %1612 = vmatpush3.bf16.msra.mxu0 %v1797_v42  ;;  %1727 = vmatpush3.bf16.msra.mxu1 %v1797_v42 }
  0x59   : > { %1613 = vmatprep.subr.bf16.mxu0 %v1798_v43  ;;  %1720 = vmatprep.subr.bf16.mxu1 %v1798_v43 }
  0x5c   : > { %1614 = vmatpush3.bf16.msra.mxu0 %v1799_v46  ;;  %1728 = vmatpush3.bf16.msra.mxu1 %v1799_v46 }
  0x5d   : > { %1615 = vmatprep.subr.bf16.mxu0 %v1800_v47  ;;  %1721 = vmatprep.subr.bf16.mxu1 %v1800_v47  ;;  %v385_v47 = vld [vmem:[#allocation2 + $0x18] sm:$0xff] }
  0x60   : > { %1616 = vmatpush3.bf16.msra.mxu0 %v1801_v48  ;;  %1729 = vmatpush3.bf16.msra.mxu1 %v1801_v48 }
  0x61   : > { %1617 = vmatprep.subr.bf16.mxu0 %v1802_v49  ;;  %1722 = vmatprep.subr.bf16.mxu1 %v1802_v49  ;;  %v401_v49 = vld [vmem:[#allocation2 + $0x98] sm:$0xff] }
  0x64   : > { %1618 = vmatpush3.bf16.msra.mxu0 %v1803_v50  ;;  %1730 = vmatpush3.bf16.msra.mxu1 %v1803_v50 }
  0x67   : > { %767 = vmatmul.mubr.bf16.vlgmr.msra.gmra.mrb[0].mxu0 %v1804_v51  ;;  %831 = vmatmul.mubr.bf16.vlgmr.msra.gmra.mrb[0].mxu1 %v1807_v52 }
  0x68   : > { %774 = vmatprep.mubr.bf16.mxu0 %v1810_v53  ;;  %838 = vmatprep.mubr.bf16.mxu1 %v1812_v54 }
  0x6f   : > { %775 = vmatmul.mubr.bf16.gmra.mrb[4].mxu0 %v1814_v55  ;;  %839 = vmatmul.mubr.bf16.gmra.mrb[4].mxu1 %v1815_v56 }
  0x70   : > { %782 = vmatprep.mubr.bf16.mxu0 %v1816_v57  ;;  %846 = vmatprep.mubr.bf16.mxu1 %v1818_v58 }
  0x77   : > { %783 = vmatmul.mubr.bf16.gmra.mrb[8].mxu0 %v1820_v59  ;;  %847 = vmatmul.mubr.bf16.gmra.mrb[8].mxu1 %v1821_v60  ;;  %v386_v59 = vld [vmem:[#allocation2 + $0x20] sm:$0xff] }
  0x78   : > { %790 = vmatprep.mubr.bf16.mxu0 %v1822_v61  ;;  %854 = vmatprep.mubr.bf16.mxu1 %v1824_v62  ;;  %v402_v61 = vld [vmem:[#allocation2 + $0xa0] sm:$0xff] }
  0x7f   : > { %791 = vmatmul.mubr.bf16.gmra.mrb[12].mxu0 %v1826_v63  ;;  %855 = vmatmul.mubr.bf16.gmra.mrb[12].mxu1 %v1827_v0 }
  0x80   : > { %798 = vmatprep.mubr.bf16.mxu0 %v1828_v1  ;;  %862 = vmatprep.mubr.bf16.mxu1 %v1830_v2 }
  0x87   : > { %799 = vmatmul.mubr.bf16.gmra.mrb[16].mxu0 %v1832_v3  ;;  %863 = vmatmul.mubr.bf16.gmra.mrb[16].mxu1 %v1833_v4  ;;  %v387_v3 = vld [vmem:[#allocation2 + $0x28] sm:$0xff] }
  0x88   : > { %806 = vmatprep.mubr.bf16.mxu0 %v1834_v5  ;;  %870 = vmatprep.mubr.bf16.mxu1 %v1836_v6  ;;  %v403_v5 = vld [vmem:[#allocation2 + $0xa8] sm:$0xff] }
  0x8f   : > { %807 = vmatmul.mubr.bf16.gmra.mrb[20].mxu0 %v1838_v7  ;;  %871 = vmatmul.mubr.bf16.gmra.mrb[20].mxu1 %v1839_v8 }
  0x90   : > { %814 = vmatprep.mubr.bf16.mxu0 %v1840_v9  ;;  %878 = vmatprep.mubr.bf16.mxu1 %v1842_v10 }
  0x97   : > { %815 = vmatmul.mubr.bf16.gmra.mrb[24].mxu0 %v1844_v11  ;;  %879 = vmatmul.mubr.bf16.gmra.mrb[24].mxu1 %v1845_v12 }
  0x98   : > { %822 = vmatprep.mubr.bf16.mxu0 %v1846_v13  ;;  %886 = vmatprep.mubr.bf16.mxu1 %v1848_v14 }
  0x9f   : > { %823 = vmatmul.mubr.bf16.gmra.mrb[28].mxu0 %v1850_v15  ;;  %887 = vmatmul.mubr.bf16.gmra.mrb[28].mxu1 %v1851_v16  ;;  %v388_v15 = vld [vmem:[#allocation2 + $0x30] sm:$0xff] }
 0x13a   : > { %v1619_v17 = vpop.f32.mrb[0].mxu0  ;;  %v1667_v18 = vpop.f32.mrb[0].mxu1 }
 0x13b   : > { %v1620_v20 = vpop.f32.mrb[1].mxu0  ;;  %v1668_v22 = vpop.f32.mrb[1].mxu1 }
 0x13c   : > { %v1621_v23 = vadd.f32 %v1620_v20, %v1619_v17  ;;  %v1669_v24 = vadd.f32 %v1668_v22, %v1667_v18  ;;  %v1622_v25 = vpop.f32.mrb[2].mxu0  ;;  %v1670_v26 = vpop.f32.mrb[2].mxu1  ;;  %v404_v17 = vld [vmem:[#allocation2 + $0xb0] sm:$0xff] }
 0x13d   : > { %v1623_v28 = vpop.f32.mrb[3].mxu0  ;;  %v1671_v30 = vpop.f32.mrb[3].mxu1 }
 0x13e   : > { %v895_v31 = vadd.f32 %v1621_v23, %v382_v19  ;;  %v911_v32 = vadd.f32 %v1669_v24, %v398_v21  ;;  %v1624_v33 = vadd.f32 %v1623_v28, %v1622_v25  ;;  %v1672_v34 = vadd.f32 %v1671_v30, %v1670_v26  ;;  %v389_v23 = vld [vmem:[#allocation2 + $0x38] sm:$0xff] }
 0x13f   : > { %v405_v25 = vld [vmem:[#allocation2 + $0xb8] sm:$0xff] }
 0x140   : > { %927 = vst [vmem:[#allocation2] sm:$0xff] %v895_v31  ;;  %943 = vst [vmem:[#allocation2 + $0x80] sm:$0xff] %v911_v32  ;;  %v896_v35 = vadd.f32 %v1624_v33, %v383_v27  ;;  %v912_v36 = vadd.f32 %v1672_v34, %v399_v29 }
 0x142   : > { %928 = vst [vmem:[#allocation2 + $0x8] sm:$0xff] %v896_v35  ;;  %944 = vst [vmem:[#allocation2 + $0x88] sm:$0xff] %v912_v36  ;;  %v1625_v37 = vpop.f32.mrb[4].mxu0  ;;  %v1673_v38 = vpop.f32.mrb[4].mxu1  ;;  %v390_v35 = vld [vmem:[#allocation2 + $0x40] sm:$0xff] }
 0x143   : > { %v1626_v40 = vpop.f32.mrb[5].mxu0  ;;  %v1674_v42 = vpop.f32.mrb[5].mxu1 }
 0x144   : > { %v1627_v43 = vadd.f32 %v1626_v40, %v1625_v37  ;;  %v1675_v44 = vadd.f32 %v1674_v42, %v1673_v38  ;;  %v1628_v45 = vpop.f32.mrb[6].mxu0  ;;  %v1676_v46 = vpop.f32.mrb[6].mxu1  ;;  %v406_v37 = vld [vmem:[#allocation2 + $0xc0] sm:$0xff] }
 0x145   : > { %v1629_v48 = vpop.f32.mrb[7].mxu0  ;;  %v1677_v50 = vpop.f32.mrb[7].mxu1 }
 0x146   : > { %v897_v51 = vadd.f32 %v1627_v43, %v384_v39  ;;  %v913_v52 = vadd.f32 %v1675_v44, %v400_v41  ;;  %v1630_v53 = vadd.f32 %v1629_v48, %v1628_v45  ;;  %v1678_v54 = vadd.f32 %v1677_v50, %v1676_v46  ;;  %v391_v43 = vld [vmem:[#allocation2 + $0x48] sm:$0xff] }
 0x147   : > { %v407_v45 = vld [vmem:[#allocation2 + $0xc8] sm:$0xff] }
 0x148   : > { %929 = vst [vmem:[#allocation2 + $0x10] sm:$0xff] %v897_v51  ;;  %945 = vst [vmem:[#allocation2 + $0x90] sm:$0xff] %v913_v52  ;;  %v898_v55 = vadd.f32 %v1630_v53, %v385_v47  ;;  %v914_v56 = vadd.f32 %v1678_v54, %v401_v49 }
 0x14a   : > { %930 = vst [vmem:[#allocation2 + $0x18] sm:$0xff] %v898_v55  ;;  %946 = vst [vmem:[#allocation2 + $0x98] sm:$0xff] %v914_v56  ;;  %v1631_v57 = vpop.f32.mrb[8].mxu0  ;;  %v1679_v58 = vpop.f32.mrb[8].mxu1  ;;  %v392_v55 = vld [vmem:[#allocation2 + $0x50] sm:$0xff] }
 0x14b   : > { %v1632_v60 = vpop.f32.mrb[9].mxu0  ;;  %v1680_v62 = vpop.f32.mrb[9].mxu1 }
 0x14c   : > { %v1633_v63 = vadd.f32 %v1632_v60, %v1631_v57  ;;  %v1681_v0 = vadd.f32 %v1680_v62, %v1679_v58  ;;  %v1634_v1 = vpop.f32.mrb[10].mxu0  ;;  %v1682_v2 = vpop.f32.mrb[10].mxu1  ;;  %v408_v57 = vld [vmem:[#allocation2 + $0xd0] sm:$0xff] }
 0x14d   : > { %v1635_v4 = vpop.f32.mrb[11].mxu0  ;;  %v1683_v6 = vpop.f32.mrb[11].mxu1 }
 0x14e   : > { %v899_v7 = vadd.f32 %v1633_v63, %v386_v59  ;;  %v915_v8 = vadd.f32 %v1681_v0, %v402_v61  ;;  %v1636_v9 = vadd.f32 %v1635_v4, %v1634_v1  ;;  %v1684_v10 = vadd.f32 %v1683_v6, %v1682_v2  ;;  %v393_v63 = vld [vmem:[#allocation2 + $0x58] sm:$0xff] }
 0x14f   : > { %v409_v1 = vld [vmem:[#allocation2 + $0xd8] sm:$0xff] }
 0x150   : > { %931 = vst [vmem:[#allocation2 + $0x20] sm:$0xff] %v899_v7  ;;  %947 = vst [vmem:[#allocation2 + $0xa0] sm:$0xff] %v915_v8  ;;  %v900_v11 = vadd.f32 %v1636_v9, %v387_v3  ;;  %v916_v12 = vadd.f32 %v1684_v10, %v403_v5 }
 0x152   : > { %932 = vst [vmem:[#allocation2 + $0x28] sm:$0xff] %v900_v11  ;;  %948 = vst [vmem:[#allocation2 + $0xa8] sm:$0xff] %v916_v12  ;;  %v1637_v13 = vpop.f32.mrb[12].mxu0  ;;  %v1685_v14 = vpop.f32.mrb[12].mxu1  ;;  %v394_v11 = vld [vmem:[#allocation2 + $0x60] sm:$0xff] }
 0x153   : > { %v1638_v16 = vpop.f32.mrb[13].mxu0  ;;  %v1686_v18 = vpop.f32.mrb[13].mxu1 }
 0x154   : > { %v1639_v19 = vadd.f32 %v1638_v16, %v1637_v13  ;;  %v1687_v20 = vadd.f32 %v1686_v18, %v1685_v14  ;;  %v1640_v21 = vpop.f32.mrb[14].mxu0  ;;  %v1688_v22 = vpop.f32.mrb[14].mxu1  ;;  %v410_v13 = vld [vmem:[#allocation2 + $0xe0] sm:$0xff] }
 0x155   : > { %v1641_v24 = vpop.f32.mrb[15].mxu0  ;;  %v1689_v26 = vpop.f32.mrb[15].mxu1 }
 0x156   : > { %v901_v27 = vadd.f32 %v1639_v19, %v388_v15  ;;  %v917_v28 = vadd.f32 %v1687_v20, %v404_v17  ;;  %v1642_v29 = vadd.f32 %v1641_v24, %v1640_v21  ;;  %v1690_v30 = vadd.f32 %v1689_v26, %v1688_v22  ;;  %v395_v19 = vld [vmem:[#allocation2 + $0x68] sm:$0xff] }
 0x157   : > { %v411_v21 = vld [vmem:[#allocation2 + $0xe8] sm:$0xff] }
 0x158   : > { %933 = vst [vmem:[#allocation2 + $0x30] sm:$0xff] %v901_v27  ;;  %949 = vst [vmem:[#allocation2 + $0xb0] sm:$0xff] %v917_v28  ;;  %v902_v31 = vadd.f32 %v1642_v29, %v389_v23  ;;  %v918_v32 = vadd.f32 %v1690_v30, %v405_v25 }
 0x15a   : > { %934 = vst [vmem:[#allocation2 + $0x38] sm:$0xff] %v902_v31  ;;  %950 = vst [vmem:[#allocation2 + $0xb8] sm:$0xff] %v918_v32  ;;  %v1643_v33 = vpop.f32.mrb[16].mxu0  ;;  %v1691_v34 = vpop.f32.mrb[16].mxu1  ;;  %v396_v31 = vld [vmem:[#allocation2 + $0x70] sm:$0xff] }
 0x15b   : > { %v1644_v36 = vpop.f32.mrb[17].mxu0  ;;  %v1692_v38 = vpop.f32.mrb[17].mxu1 }
 0x15c   : > { %v1645_v39 = vadd.f32 %v1644_v36, %v1643_v33  ;;  %v1693_v40 = vadd.f32 %v1692_v38, %v1691_v34  ;;  %v1646_v41 = vpop.f32.mrb[18].mxu0  ;;  %v1694_v42 = vpop.f32.mrb[18].mxu1  ;;  %v412_v33 = vld [vmem:[#allocation2 + $0xf0] sm:$0xff] }
 0x15d   : > { %v1647_v44 = vpop.f32.mrb[19].mxu0  ;;  %v1695_v46 = vpop.f32.mrb[19].mxu1 }
 0x15e   : > { %v903_v47 = vadd.f32 %v1645_v39, %v390_v35  ;;  %v919_v48 = vadd.f32 %v1693_v40, %v406_v37  ;;  %v1648_v49 = vadd.f32 %v1647_v44, %v1646_v41  ;;  %v1696_v50 = vadd.f32 %v1695_v46, %v1694_v42  ;;  %v397_v39 = vld [vmem:[#allocation2 + $0x78] sm:$0xff] }
 0x15f   : > { %v413_v41 = vld [vmem:[#allocation2 + $0xf8] sm:$0xff] }
 0x160   : > { %935 = vst [vmem:[#allocation2 + $0x40] sm:$0xff] %v903_v47  ;;  %951 = vst [vmem:[#allocation2 + $0xc0] sm:$0xff] %v919_v48  ;;  %v904_v51 = vadd.f32 %v1648_v49, %v391_v43  ;;  %v920_v52 = vadd.f32 %v1696_v50, %v407_v45 }
 0x162   : > { %936 = vst [vmem:[#allocation2 + $0x48] sm:$0xff] %v904_v51  ;;  %952 = vst [vmem:[#allocation2 + $0xc8] sm:$0xff] %v920_v52  ;;  %v1649_v53 = vpop.f32.mrb[20].mxu0  ;;  %v1697_v54 = vpop.f32.mrb[20].mxu1 }
 0x163   : > { %v1650_v56 = vpop.f32.mrb[21].mxu0  ;;  %v1698_v58 = vpop.f32.mrb[21].mxu1 }
 0x164   : > { %v1651_v59 = vadd.f32 %v1650_v56, %v1649_v53  ;;  %v1699_v60 = vadd.f32 %v1698_v58, %v1697_v54  ;;  %v1652_v61 = vpop.f32.mrb[22].mxu0  ;;  %v1700_v62 = vpop.f32.mrb[22].mxu1 }
 0x165   : > { %v1653_v0 = vpop.f32.mrb[23].mxu0  ;;  %v1701_v2 = vpop.f32.mrb[23].mxu1 }
 0x166   : > { %v905_v3 = vadd.f32 %v1651_v59, %v392_v55  ;;  %v921_v4 = vadd.f32 %v1699_v60, %v408_v57  ;;  %v1654_v5 = vadd.f32 %v1653_v0, %v1652_v61  ;;  %v1702_v6 = vadd.f32 %v1701_v2, %v1700_v62 }
 0x168   : > { %937 = vst [vmem:[#allocation2 + $0x50] sm:$0xff] %v905_v3  ;;  %953 = vst [vmem:[#allocation2 + $0xd0] sm:$0xff] %v921_v4  ;;  %v906_v7 = vadd.f32 %v1654_v5, %v393_v63  ;;  %v922_v8 = vadd.f32 %v1702_v6, %v409_v1 }
 0x16a   : > { %938 = vst [vmem:[#allocation2 + $0x58] sm:$0xff] %v906_v7  ;;  %954 = vst [vmem:[#allocation2 + $0xd8] sm:$0xff] %v922_v8  ;;  %v1655_v9 = vpop.f32.mrb[24].mxu0  ;;  %v1703_v10 = vpop.f32.mrb[24].mxu1 }
 0x16b   : > { %v1656_v12 = vpop.f32.mrb[25].mxu0  ;;  %v1704_v14 = vpop.f32.mrb[25].mxu1 }
 0x16c   : > { %v1657_v15 = vadd.f32 %v1656_v12, %v1655_v9  ;;  %v1705_v16 = vadd.f32 %v1704_v14, %v1703_v10  ;;  %v1658_v17 = vpop.f32.mrb[26].mxu0  ;;  %v1706_v18 = vpop.f32.mrb[26].mxu1 }
 0x16d   : > { %v1659_v20 = vpop.f32.mrb[27].mxu0  ;;  %v1707_v22 = vpop.f32.mrb[27].mxu1 }
 0x16e   : > { %v907_v23 = vadd.f32 %v1657_v15, %v394_v11  ;;  %v923_v24 = vadd.f32 %v1705_v16, %v410_v13  ;;  %v1660_v25 = vadd.f32 %v1659_v20, %v1658_v17  ;;  %v1708_v26 = vadd.f32 %v1707_v22, %v1706_v18 }
 0x170   : > { %939 = vst [vmem:[#allocation2 + $0x60] sm:$0xff] %v907_v23  ;;  %955 = vst [vmem:[#allocation2 + $0xe0] sm:$0xff] %v923_v24  ;;  %v908_v27 = vadd.f32 %v1660_v25, %v395_v19  ;;  %v924_v28 = vadd.f32 %v1708_v26, %v411_v21 }
 0x172   : > { %940 = vst [vmem:[#allocation2 + $0x68] sm:$0xff] %v908_v27  ;;  %956 = vst [vmem:[#allocation2 + $0xe8] sm:$0xff] %v924_v28  ;;  %v1661_v29 = vpop.f32.mrb[28].mxu0  ;;  %v1709_v30 = vpop.f32.mrb[28].mxu1 }
 0x173   : > { %v1662_v32 = vpop.f32.mrb[29].mxu0  ;;  %v1710_v34 = vpop.f32.mrb[29].mxu1 }
 0x174   : > { %v1663_v35 = vadd.f32 %v1662_v32, %v1661_v29  ;;  %v1711_v36 = vadd.f32 %v1710_v34, %v1709_v30  ;;  %v1664_v37 = vpop.f32.mrb[30].mxu0  ;;  %v1712_v38 = vpop.f32.mrb[30].mxu1  ;;  %962 = sbr.rel (%p1599_p13) target bundleno = 767 (0x2ff), region = 74 }
 0x175   : > { %v1665_v40 = vpop.f32.mrb[31].mxu0  ;;  %v1713_v42 = vpop.f32.mrb[31].mxu1 }
 0x176   : > { %v909_v43 = vadd.f32 %v1663_v35, %v396_v31  ;;  %v925_v44 = vadd.f32 %v1711_v36, %v412_v33  ;;  %v1666_v45 = vadd.f32 %v1665_v40, %v1664_v37  ;;  %v1714_v46 = vadd.f32 %v1713_v42, %v1712_v38 }
 0x178   : > { %941 = vst [vmem:[#allocation2 + $0x70] sm:$0xff] %v909_v43  ;;  %957 = vst [vmem:[#allocation2 + $0xf0] sm:$0xff] %v925_v44  ;;  %v910_v47 = vadd.f32 %v1666_v45, %v397_v39  ;;  %v926_v48 = vadd.f32 %v1714_v46, %v413_v41 }
 0x17a   : > { %942 = vst [vmem:[#allocation2 + $0x78] sm:$0xff] %v910_v47  ;;  %958 = vst [vmem:[#allocation2 + $0xf8] sm:$0xff] %v926_v48 }
 0x17b   : > { %v995_v49 = vlaneseq  ;;  %v963_v50 = vld [vmem:[#allocation2] sm:$0xff]  ;;  %v965_v52 = vld [vmem:[#allocation2 + $0x10] sm:$0xff]  ;;  %v964_v53 = vld [vmem:[#allocation2 + $0x8] sm:$0xff] }
 0x17c   : > { %v966_v54 = vld [vmem:[#allocation2 + $0x18] sm:$0xff]  ;;  %v967_v59 = vld [vmem:[#allocation2 + $0x20] sm:$0xff]  ;;  %v968_v60 = vld [vmem:[#allocation2 + $0x28] sm:$0xff] }
 0x17d   : > { %v2247_v51 = vand.u32 127, %v995_v49  ;;  %v969_v63 = vld [vmem:[#allocation2 + $0x30] sm:$0xff]  ;;  %v970_v0 = vld [vmem:[#allocation2 + $0x38] sm:$0xff]  ;;  %v971_v3 = vld [vmem:[#allocation2 + $0x40] sm:$0xff] }
 0x17e   : > { %v972_v4 = vld [vmem:[#allocation2 + $0x48] sm:$0xff]  ;;  %v973_v7 = vld [vmem:[#allocation2 + $0x50] sm:$0xff]  ;;  %v974_v8 = vld [vmem:[#allocation2 + $0x58] sm:$0xff] }
 0x17f   : > { %vm997_vm0 = vcmp.lt.s32.totalorder %v2247_v51, 8  ;;  %v975_v11 = vld [vmem:[#allocation2 + $0x60] sm:$0xff]  ;;  %v976_v12 = vld [vmem:[#allocation2 + $0x68] sm:$0xff]  ;;  %v977_v15 = vld [vmem:[#allocation2 + $0x70] sm:$0xff] }
 0x180   : > { %v2252_v55 = vsel %vm997_vm0, %v963_v50, -1e+30  ;;  %v2256_v56 = vsel %vm997_vm0, %v965_v52, -1e+30  ;;  %v2262_v57 = vsel %vm997_vm0, %v964_v53, -1e+30 }
 0x181   : > { %1030 = vmax.xlane.f32.xlu0 %v2252_v55  ;;  %1034 = vmax.xlane.f32.xlu1 %v2256_v56  ;;  %v2266_v58 = vsel %vm997_vm0, %v966_v54, -1e+30  ;;  %v2272_v61 = vsel %vm997_vm0, %v967_v59, -1e+30  ;;  %v2276_v62 = vsel %vm997_vm0, %v968_v60, -1e+30 }
 0x182   : > { %v2282_v1 = vsel %vm997_vm0, %v969_v63, -1e+30  ;;  %v2286_v2 = vsel %vm997_vm0, %v970_v0, -1e+30  ;;  %v2292_v5 = vsel %vm997_vm0, %v971_v3, -1e+30 }
 0x183   : > { %v2296_v6 = vsel %vm997_vm0, %v972_v4, -1e+30  ;;  %v2302_v9 = vsel %vm997_vm0, %v973_v7, -1e+30  ;;  %v2306_v10 = vsel %vm997_vm0, %v974_v8, -1e+30 }
 0x184   : > { %v2312_v13 = vsel %vm997_vm0, %v975_v11, -1e+30  ;;  %v2316_v14 = vsel %vm997_vm0, %v976_v12, -1e+30  ;;  %v978_v16 = vld [vmem:[#allocation2 + $0x78] sm:$0xff]  ;;  %v979_v19 = vld [vmem:[#allocation2 + $0x80] sm:$0xff] }
 0x185   : > { %1032 = vmax.xlane.f32.xlu0 %v2262_v57  ;;  %1036 = vmax.xlane.f32.xlu1 %v2266_v58  ;;  %v2322_v17 = vsel %vm997_vm0, %v977_v15, -1e+30  ;;  %v2326_v18 = vsel %vm997_vm0, %v978_v16, -1e+30  ;;  %v980_v20 = vld [vmem:[#allocation2 + $0x88] sm:$0xff]  ;;  %v981_v23 = vld [vmem:[#allocation2 + $0x90] sm:$0xff] }
 0x186   : > { %2736 = vst [vmem:[#allocation4_spill] sm:$0xff] %v2326_v18  ;;  %v2332_v21 = vsel %vm997_vm0, %v979_v19, -1e+30  ;;  %v2336_v22 = vsel %vm997_vm0, %v980_v20, -1e+30  ;;  %v982_v24 = vld [vmem:[#allocation2 + $0x98] sm:$0xff] }
 0x187   : > { %2737 = vst [vmem:[#allocation5_spill] sm:$0xff] %v2336_v22  ;;  %v2342_v25 = vsel %vm997_vm0, %v981_v23, -1e+30  ;;  %v2346_v26 = vsel %vm997_vm0, %v982_v24, -1e+30  ;;  %v983_v27 = vld [vmem:[#allocation2 + $0xa0] sm:$0xff] }
 0x188   : > { %2738 = vst [vmem:[#allocation6_spill] sm:$0xff] %v2346_v26  ;;  %v984_v28 = vld [vmem:[#allocation2 + $0xa8] sm:$0xff]  ;;  %v2352_v29 = vsel %vm997_vm0, %v983_v27, -1e+30  ;;  %v985_v31 = vld [vmem:[#allocation2 + $0xb0] sm:$0xff]  ;;  %v986_v32 = vld [vmem:[#allocation2 + $0xb8] sm:$0xff] }
 0x189   : > { %1038 = vmax.xlane.f32.xlu0 %v2272_v61  ;;  %1040 = vmax.xlane.f32.xlu1 %v2276_v62  ;;  %v2356_v30 = vsel %vm997_vm0, %v984_v28, -1e+30  ;;  %v2362_v33 = vsel %vm997_vm0, %v985_v31, -1e+30  ;;  %v2366_v34 = vsel %vm997_vm0, %v986_v32, -1e+30 }
 0x18a   : > { %2739 = vst [vmem:[#allocation7_spill] sm:$0xff] %v2356_v30  ;;  %2740 = vst [vmem:[#allocation8_spill] sm:$0xff] %v2366_v34  ;;  %v987_v35 = vld [vmem:[#allocation2 + $0xc0] sm:$0xff]  ;;  %v988_v36 = vld [vmem:[#allocation2 + $0xc8] sm:$0xff] }
 0x18b   : > { %v2372_v37 = vsel %vm997_vm0, %v987_v35, -1e+30  ;;  %v2376_v38 = vsel %vm997_vm0, %v988_v36, -1e+30  ;;  %v989_v39 = vld [vmem:[#allocation2 + $0xd0] sm:$0xff]  ;;  %v990_v40 = vld [vmem:[#allocation2 + $0xd8] sm:$0xff] }
 0x18c   : > { %2741 = vst [vmem:[#allocation9_spill] sm:$0xff] %v2376_v38  ;;  %v2382_v41 = vsel %vm997_vm0, %v989_v39, -1e+30  ;;  %v2386_v42 = vsel %vm997_vm0, %v990_v40, -1e+30  ;;  %v991_v43 = vld [vmem:[#allocation2 + $0xe0] sm:$0xff] }
 0x18d   : > { %1042 = vmax.xlane.f32.xlu0 %v2282_v1  ;;  %1044 = vmax.xlane.f32.xlu1 %v2286_v2  ;;  %2742 = vst [vmem:[#allocation10_spill] sm:$0xff] %v2386_v42  ;;  %v992_v44 = vld [vmem:[#allocation2 + $0xe8] sm:$0xff]  ;;  %v2392_v45 = vsel %vm997_vm0, %v991_v43, -1e+30  ;;  %v993_v47 = vld [vmem:[#allocation2 + $0xf0] sm:$0xff]  ;;  %v994_v48 = vld [vmem:[#allocation2 + $0xf8] sm:$0xff] }
 0x18e   : > { %v2396_v46 = vsel %vm997_vm0, %v992_v44, -1e+30  ;;  %v2402_v49 = vsel %vm997_vm0, %v993_v47, -1e+30  ;;  %v2406_v50 = vsel %vm997_vm0, %v994_v48, -1e+30 }
 0x18f   : > { %2743 = vst [vmem:[#allocation11_spill] sm:$0xff] %v2396_v46 }
 0x191   : > { %1046 = vmax.xlane.f32.xlu0 %v2292_v5  ;;  %1048 = vmax.xlane.f32.xlu1 %v2296_v6 }
 0x195   : > { %1050 = vmax.xlane.f32.xlu0 %v2302_v9  ;;  %1052 = vmax.xlane.f32.xlu1 %v2306_v10 }
 0x199   : > { %1054 = vmax.xlane.f32.xlu0 %v2312_v13  ;;  %1056 = vmax.xlane.f32.xlu1 %v2316_v14 }
 0x19d   : > { %1058 = vmax.xlane.f32.xlu0 %v2322_v17  ;;  %1060 = vmax.xlane.f32.xlu1 %v2326_v18 }
 0x1a1   : > { %1062 = vmax.xlane.f32.xlu0 %v2332_v21  ;;  %1064 = vmax.xlane.f32.xlu1 %v2336_v22 }
 0x1a5   : > { %1066 = vmax.xlane.f32.xlu0 %v2342_v25  ;;  %1068 = vmax.xlane.f32.xlu1 %v2346_v26 }
 0x1a9   : > { %1070 = vmax.xlane.f32.xlu0 %v2352_v29  ;;  %1072 = vmax.xlane.f32.xlu1 %v2356_v30 }
 0x1ad   : > { %1074 = vmax.xlane.f32.xlu0 %v2362_v33  ;;  %1076 = vmax.xlane.f32.xlu1 %v2366_v34 }
 0x1b1   : > { %1078 = vmax.xlane.f32.xlu0 %v2372_v37  ;;  %1080 = vmax.xlane.f32.xlu1 %v2376_v38 }
 0x1b5   : > { %1082 = vmax.xlane.f32.xlu0 %v2382_v41  ;;  %1084 = vmax.xlane.f32.xlu1 %v2386_v42 }
 0x1b9   : > { %1086 = vmax.xlane.f32.xlu0 %v2392_v45  ;;  %1088 = vmax.xlane.f32.xlu1 %v2396_v46 }
 0x1bd   : > { %1090 = vmax.xlane.f32.xlu0 %v2402_v49  ;;  %1092 = vmax.xlane.f32.xlu1 %v2406_v50 }
 0x20e   : > { %v2410_v52 = vpop.xlane.xlu0 %1030  ;;  %v2412_v53 = vpop.xlane.xlu1 %1034 }
 0x20f   : > { %v1094_v54 = vsub.f32 %v2252_v55, %v2410_v52  ;;  %v1096_v59 = vsub.f32 %v2256_v56, %v2412_v53 }
 0x211   : > { %v1126_v60 = vmul.f32 1.442695, %v1094_v54  ;;  %v1130_v63 = vmul.f32 1.442695, %v1096_v59 }
 0x212   : > { %v2418_v0 = vpop.xlane.xlu0 %1032  ;;  %v2420_v3 = vpop.xlane.xlu1 %1036 }
 0x213   : > { %1852 = vpow2.f32 %v1126_v60  ;;  %v1095_v4 = vsub.f32 %v2262_v57, %v2418_v0  ;;  %v1097_v7 = vsub.f32 %v2266_v58, %v2420_v3 }
 0x214   : > { %1854 = vpow2.f32 %v1130_v63 }
 0x215   : > { %v1128_v8 = vmul.f32 1.442695, %v1095_v4  ;;  %v1132_v11 = vmul.f32 1.442695, %v1097_v7 }
 0x216   : > { %v2426_v12 = vpop.xlane.xlu0 %1038  ;;  %v2428_v15 = vpop.xlane.xlu1 %1040 }
 0x217   : > { %1856 = vpow2.f32 %v1128_v8  ;;  %v1098_v16 = vsub.f32 %v2272_v61, %v2426_v12  ;;  %v1099_v19 = vsub.f32 %v2276_v62, %v2428_v15 }
 0x218   : > { %1858 = vpow2.f32 %v1132_v11 }
 0x219   : > { %v1134_v20 = vmul.f32 1.442695, %v1098_v16  ;;  %v1136_v23 = vmul.f32 1.442695, %v1099_v19 }
 0x21a   : > { %v2434_v24 = vpop.xlane.xlu0 %1042  ;;  %v2436_v27 = vpop.xlane.xlu1 %1044 }
 0x21b   : > { %1860 = vpow2.f32 %v1134_v20  ;;  %v1100_v28 = vsub.f32 %v2282_v1, %v2434_v24  ;;  %v1101_v31 = vsub.f32 %v2286_v2, %v2436_v27 }
 0x21c   : > { %1862 = vpow2.f32 %v1136_v23 }
 0x21d   : > { %v1853_v32 = vpop.eup %1852  ;;  %v1138_v35 = vmul.f32 1.442695, %v1100_v28  ;;  %v1140_v36 = vmul.f32 1.442695, %v1101_v31 }
 0x21e   : > { %v1855_v39 = vpop.eup %1854  ;;  %v2442_v40 = vpop.xlane.xlu0 %1046  ;;  %v1190_v43 = vsel %vm997_vm0, %v1853_v32, 0.0 }
 0x21f   : > { %v2446_v44 = vpop.xlane.xlu1 %1048  ;;  %1864 = vpow2.f32 %v1138_v35  ;;  %v1102_v47 = vsub.f32 %v2292_v5, %v2442_v40  ;;  %1222 = vadd.xlane.f32.xlu0 %v1190_v43  ;;  %v1192_v54 = vsel %vm997_vm0, %v1855_v39, 0.0 }
 0x220   : > { %v1103_v48 = vsub.f32 %v2296_v6, %v2446_v44  ;;  %1866 = vpow2.f32 %v1140_v36 }
 0x221   : > { %v1857_v59 = vpop.eup %1856  ;;  %v1142_v60 = vmul.f32 1.442695, %v1102_v47 }
 0x222   : > { %v1144_v63 = vmul.f32 1.442695, %v1103_v48  ;;  %v1859_v4 = vpop.eup %1858  ;;  %v2454_v7 = vpop.xlane.xlu0 %1050  ;;  %v1191_v8 = vsel %vm997_vm0, %v1857_v59, 0.0 }
 0x223   : > { %v2458_v11 = vpop.xlane.xlu1 %1052  ;;  %1868 = vpow2.f32 %v1142_v60  ;;  %v1104_v16 = vsub.f32 %v2302_v9, %v2454_v7  ;;  %1226 = vadd.xlane.f32.xlu0 %v1192_v54  ;;  %1224 = vadd.xlane.f32.xlu1 %v1191_v8  ;;  %v1193_v20 = vsel %vm997_vm0, %v1859_v4, 0.0 }
 0x224   : > { %v1105_v19 = vsub.f32 %v2306_v10, %v2458_v11  ;;  %1870 = vpow2.f32 %v1144_v63 }
 0x225   : > { %v1861_v23 = vpop.eup %1860  ;;  %v1146_v28 = vmul.f32 1.442695, %v1104_v16 }
 0x226   : > { %v1148_v31 = vmul.f32 1.442695, %v1105_v19  ;;  %v1863_v32 = vpop.eup %1862  ;;  %v2466_v35 = vpop.xlane.xlu0 %1054  ;;  %v1194_v36 = vsel %vm997_vm0, %v1861_v23, 0.0 }
 0x227   : > { %v2470_v39 = vpop.xlane.xlu1 %1056  ;;  %1872 = vpow2.f32 %v1146_v28  ;;  %v1106_v43 = vsub.f32 %v2312_v13, %v2466_v35  ;;  %1228 = vadd.xlane.f32.xlu1 %v1193_v20  ;;  %1230 = vadd.xlane.f32.xlu0 %v1194_v36  ;;  %v1195_v48 = vsel %vm997_vm0, %v1863_v32, 0.0 }
 0x228   : > { %v1107_v47 = vsub.f32 %v2316_v14, %v2470_v39  ;;  %1874 = vpow2.f32 %v1148_v31 }
 0x229   : > { %v1865_v54 = vpop.eup %1864  ;;  %v1150_v59 = vmul.f32 1.442695, %v1106_v43 }
 0x22a   : > { %v1152_v60 = vmul.f32 1.442695, %v1107_v47  ;;  %v1867_v63 = vpop.eup %1866  ;;  %v2478_v4 = vpop.xlane.xlu0 %1058  ;;  %v1196_v8 = vsel %vm997_vm0, %v1865_v54, 0.0 }
 0x22b   : > { %v2482_v16 = vpop.xlane.xlu1 %1060  ;;  %1876 = vpow2.f32 %v1150_v59  ;;  %v1108_v19 = vsub.f32 %v2322_v17, %v2478_v4  ;;  %1232 = vadd.xlane.f32.xlu1 %v1195_v48  ;;  %1234 = vadd.xlane.f32.xlu0 %v1196_v8  ;;  %v1197_v23 = vsel %vm997_vm0, %v1867_v63, 0.0 }
 0x22c   : > { %v1109_v20 = vsub.f32 %v2326_v18, %v2482_v16  ;;  %1878 = vpow2.f32 %v1152_v60 }
 0x22d   : > { %v1869_v28 = vpop.eup %1868  ;;  %v1154_v31 = vmul.f32 1.442695, %v1108_v19 }
 0x22e   : > { %v1156_v32 = vmul.f32 1.442695, %v1109_v20  ;;  %v1871_v36 = vpop.eup %1870  ;;  %v2490_v43 = vpop.xlane.xlu0 %1062  ;;  %v1198_v47 = vsel %vm997_vm0, %v1869_v28, 0.0 }
 0x22f   : > { %v2494_v54 = vpop.xlane.xlu1 %1064  ;;  %1880 = vpow2.f32 %v1154_v31  ;;  %v1110_v48 = vsub.f32 %v2332_v21, %v2490_v43  ;;  %1236 = vadd.xlane.f32.xlu1 %v1197_v23  ;;  %1238 = vadd.xlane.f32.xlu0 %v1198_v47  ;;  %v1199_v60 = vsel %vm997_vm0, %v1871_v36, 0.0 }
 0x230   : > { %2744 = vst [vmem:[#allocation12_spill] sm:$0xff] %v2494_v54  ;;  %v1111_v59 = vsub.f32 %v2336_v22, %v2494_v54  ;;  %1882 = vpow2.f32 %v1156_v32 }
 0x231   : > { %v1873_v63 = vpop.eup %1872  ;;  %v1158_v8 = vmul.f32 1.442695, %v1110_v48 }
 0x232   : > { %v1160_v19 = vmul.f32 1.442695, %v1111_v59  ;;  %v1875_v20 = vpop.eup %1874  ;;  %v2502_v28 = vpop.xlane.xlu0 %1066  ;;  %v1200_v31 = vsel %vm997_vm0, %v1873_v63, 0.0 }
 0x233   : > { %v2506_v18 = vpop.xlane.xlu1 %1068  ;;  %1884 = vpow2.f32 %v1158_v8  ;;  %v1112_v23 = vsub.f32 %v2342_v25, %v2502_v28  ;;  %1240 = vadd.xlane.f32.xlu1 %v1199_v60  ;;  %1242 = vadd.xlane.f32.xlu0 %v1200_v31  ;;  %v1201_v36 = vsel %vm997_vm0, %v1875_v20, 0.0 }
 0x234   : > { %2745 = vst [vmem:[#allocation13_spill] sm:$0xff] %v2506_v18  ;;  %v1113_v32 = vsub.f32 %v2346_v26, %v2506_v18  ;;  %1886 = vpow2.f32 %v1160_v19 }
 0x235   : > { %v1877_v47 = vpop.eup %1876  ;;  %v1162_v48 = vmul.f32 1.442695, %v1112_v23 }
 0x236   : > { %v1164_v59 = vmul.f32 1.442695, %v1113_v32  ;;  %v1879_v22 = vpop.eup %1878  ;;  %v2514_v63 = vpop.xlane.xlu0 %1070  ;;  %v1202_v8 = vsel %vm997_vm0, %v1877_v47, 0.0 }
 0x237   : > { %v2518_v54 = vpop.xlane.xlu1 %1072  ;;  %1888 = vpow2.f32 %v1162_v48  ;;  %v1114_v60 = vsub.f32 %v2352_v29, %v2514_v63  ;;  %1244 = vadd.xlane.f32.xlu1 %v1201_v36  ;;  %1246 = vadd.xlane.f32.xlu0 %v1202_v8  ;;  %v1203_v20 = vsel %vm997_vm0, %v1879_v22, 0.0 }
 0x238   : > { %2746 = vst [vmem:[#allocation14_spill] sm:$0xff] %v2518_v54  ;;  %v1115_v19 = vsub.f32 %v2356_v30, %v2518_v54  ;;  %1890 = vpow2.f32 %v1164_v59 }
 0x239   : > { %v1881_v31 = vpop.eup %1880  ;;  %v1166_v23 = vmul.f32 1.442695, %v1114_v60 }
 0x23a   : > { %v1168_v32 = vmul.f32 1.442695, %v1115_v19  ;;  %v1883_v26 = vpop.eup %1882  ;;  %v2526_v47 = vpop.xlane.xlu0 %1074  ;;  %v1204_v48 = vsel %vm997_vm0, %v1881_v31, 0.0 }
 0x23b   : > { %v2530_v18 = vpop.xlane.xlu1 %1076  ;;  %1892 = vpow2.f32 %v1166_v23  ;;  %v1116_v36 = vsub.f32 %v2362_v33, %v2526_v47  ;;  %1248 = vadd.xlane.f32.xlu1 %v1203_v20  ;;  %1250 = vadd.xlane.f32.xlu0 %v1204_v48  ;;  %v1205_v59 = vsel %vm997_vm0, %v1883_v26, 0.0 }
 0x23c   : > { %2747 = vst [vmem:[#allocation15_spill] sm:$0xff] %v2530_v18  ;;  %v1117_v22 = vsub.f32 %v2366_v34, %v2530_v18  ;;  %1894 = vpow2.f32 %v1168_v32 }
 0x23d   : > { %v1885_v8 = vpop.eup %1884  ;;  %v1170_v60 = vmul.f32 1.442695, %v1116_v36 }
 0x23e   : > { %v1172_v19 = vmul.f32 1.442695, %v1117_v22  ;;  %v1887_v30 = vpop.eup %1886  ;;  %v2538_v31 = vpop.xlane.xlu0 %1078  ;;  %v1206_v23 = vsel %vm997_vm0, %v1885_v8, 0.0 }
 0x23f   : > { %v2542_v54 = vpop.xlane.xlu1 %1080  ;;  %1896 = vpow2.f32 %v1170_v60  ;;  %v1118_v20 = vsub.f32 %v2372_v37, %v2538_v31  ;;  %1252 = vadd.xlane.f32.xlu1 %v1205_v59  ;;  %1254 = vadd.xlane.f32.xlu0 %v1206_v23  ;;  %v1207_v32 = vsel %vm997_vm0, %v1887_v30, 0.0 }
 0x240   : > { %2748 = vst [vmem:[#allocation16_spill] sm:$0xff] %v2542_v54  ;;  %v1119_v26 = vsub.f32 %v2376_v38, %v2542_v54  ;;  %1898 = vpow2.f32 %v1172_v19 }
 0x241   : > { %v1889_v48 = vpop.eup %1888  ;;  %v1174_v36 = vmul.f32 1.442695, %v1118_v20 }
 0x242   : > { %v1176_v22 = vmul.f32 1.442695, %v1119_v26  ;;  %v1891_v34 = vpop.eup %1890  ;;  %v2550_v8 = vpop.xlane.xlu0 %1082  ;;  %v1208_v60 = vsel %vm997_vm0, %v1889_v48, 0.0 }
 0x243   : > { %v2554_v18 = vpop.xlane.xlu1 %1084  ;;  %1900 = vpow2.f32 %v1174_v36  ;;  %v1120_v59 = vsub.f32 %v2382_v41, %v2550_v8  ;;  %1256 = vadd.xlane.f32.xlu1 %v1207_v32  ;;  %1258 = vadd.xlane.f32.xlu0 %v1208_v60  ;;  %v1209_v19 = vsel %vm997_vm0, %v1891_v34, 0.0 }
 0x244   : > { %2749 = vst [vmem:[#allocation17_spill] sm:$0xff] %v2554_v18  ;;  %v1121_v30 = vsub.f32 %v2386_v42, %v2554_v18  ;;  %1902 = vpow2.f32 %v1176_v22 }
 0x245   : > { %v1893_v23 = vpop.eup %1892  ;;  %v1178_v20 = vmul.f32 1.442695, %v1120_v59 }
 0x246   : > { %v1180_v26 = vmul.f32 1.442695, %v1121_v30  ;;  %v1895_v38 = vpop.eup %1894  ;;  %v2562_v48 = vpop.xlane.xlu0 %1086  ;;  %v1210_v36 = vsel %vm997_vm0, %v1893_v23, 0.0 }
 0x247   : > { %v2566_v54 = vpop.xlane.xlu1 %1088  ;;  %1904 = vpow2.f32 %v1178_v20  ;;  %v1122_v32 = vsub.f32 %v2392_v45, %v2562_v48  ;;  %1260 = vadd.xlane.f32.xlu1 %v1209_v19  ;;  %1262 = vadd.xlane.f32.xlu0 %v1210_v36  ;;  %v1211_v22 = vsel %vm997_vm0, %v1895_v38, 0.0 }
 0x248   : > { %v1123_v34 = vsub.f32 %v2396_v46, %v2566_v54  ;;  %1906 = vpow2.f32 %v1180_v26 }
 0x249   : > { %v1897_v60 = vpop.eup %1896  ;;  %v1182_v59 = vmul.f32 1.442695, %v1122_v32 }
 0x24a   : > { %v1184_v30 = vmul.f32 1.442695, %v1123_v34  ;;  %v1899_v42 = vpop.eup %1898  ;;  %v2574_v23 = vpop.xlane.xlu0 %1090  ;;  %v1212_v20 = vsel %vm997_vm0, %v1897_v60, 0.0 }
 0x24b   : > { %v2578_v18 = vpop.xlane.xlu1 %1092  ;;  %1908 = vpow2.f32 %v1182_v59  ;;  %v1124_v19 = vsub.f32 %v2402_v49, %v2574_v23  ;;  %1264 = vadd.xlane.f32.xlu1 %v1211_v22  ;;  %1266 = vadd.xlane.f32.xlu0 %v1212_v20  ;;  %v1213_v26 = vsel %vm997_vm0, %v1899_v42, 0.0 }
 0x24c   : > { %v1125_v38 = vsub.f32 %v2406_v50, %v2578_v18  ;;  %1910 = vpow2.f32 %v1184_v30 }
 0x24d   : > { %v1901_v36 = vpop.eup %1900  ;;  %v1186_v32 = vmul.f32 1.442695, %v1124_v19 }
 0x24e   : > { %v1188_v34 = vmul.f32 1.442695, %v1125_v38  ;;  %v1903_v46 = vpop.eup %1902  ;;  %v1214_v60 = vsel %vm997_vm0, %v1901_v36, 0.0 }
 0x24f   : > { %1912 = vpow2.f32 %v1186_v32  ;;  %1268 = vadd.xlane.f32.xlu1 %v1213_v26  ;;  %1270 = vadd.xlane.f32.xlu0 %v1214_v60  ;;  %v1215_v22 = vsel %vm997_vm0, %v1903_v46, 0.0 }
 0x250   : > { %1914 = vpow2.f32 %v1188_v34 }
 0x251   : > { %v1905_v59 = vpop.eup %1904 }
 0x252   : > { %v1907_v20 = vpop.eup %1906  ;;  %v1216_v30 = vsel %vm997_vm0, %v1905_v59, 0.0 }
 0x253   : > { %1272 = vadd.xlane.f32.xlu1 %v1215_v22  ;;  %1274 = vadd.xlane.f32.xlu0 %v1216_v30  ;;  %v1217_v42 = vsel %vm997_vm0, %v1907_v20, 0.0 }
 0x255   : > { %v1909_v19 = vpop.eup %1908 }
 0x256   : > { %v1911_v38 = vpop.eup %1910  ;;  %v1218_v26 = vsel %vm997_vm0, %v1909_v19, 0.0 }
 0x257   : > { %1276 = vadd.xlane.f32.xlu1 %v1217_v42  ;;  %1278 = vadd.xlane.f32.xlu0 %v1218_v26  ;;  %v1219_v46 = vsel %vm997_vm0, %v1911_v38, 0.0 }
 0x259   : > { %v1913_v36 = vpop.eup %1912 }
 0x25a   : > { %v1915_v32 = vpop.eup %1914  ;;  %v1220_v34 = vsel %vm997_vm0, %v1913_v36, 0.0 }
 0x25b   : > { %1280 = vadd.xlane.f32.xlu1 %v1219_v46  ;;  %1282 = vadd.xlane.f32.xlu0 %v1220_v34  ;;  %v1221_v60 = vsel %vm997_vm0, %v1915_v32, 0.0 }
 0x25f   : > { %1284 = vadd.xlane.f32.xlu1 %v1221_v60 }
 0x2ac   : > { %v1223_v22 = vpop.xlane.xlu0 %1222 }
 0x2ad   : > { %1916 = vlog2.f32 %v1223_v22 }
 0x2b0   : > { %v1225_v59 = vpop.xlane.xlu1 %1224  ;;  %v1227_v20 = vpop.xlane.xlu0 %1226 }
 0x2b1   : > { %1918 = vlog2.f32 %v1225_v59 }
 0x2b2   : > { %1920 = vlog2.f32 %v1227_v20 }
 0x2b4   : > { %v1229_v30 = vpop.xlane.xlu1 %1228  ;;  %v1231_v42 = vpop.xlane.xlu0 %1230 }
 0x2b5   : > { %1922 = vlog2.f32 %v1229_v30 }
 0x2b6   : > { %1924 = vlog2.f32 %v1231_v42 }
 0x2b7   : > { %v1917_v19 = vpop.eup %1916 }
 0x2b8   : > { %v1287_v38 = vmul.f32 0.6931472, %v1917_v19  ;;  %v1233_v26 = vpop.xlane.xlu1 %1232  ;;  %v1235_v46 = vpop.xlane.xlu0 %1234 }
 0x2b9   : > { %1926 = vlog2.f32 %v1233_v26 }
 0x2ba   : > { %v1350_v51 = vadd.f32 %v1287_v38, %v2410_v52  ;;  %1928 = vlog2.f32 %v1235_v46 }
 0x2bb   : > { %v1919_v36 = vpop.eup %1918 }
 0x2bc   : > { %v1921_v32 = vpop.eup %1920  ;;  %v1382_v34 = vsub.f32 %v2252_v55, %v1350_v51  ;;  %v1289_v60 = vmul.f32 0.6931472, %v1919_v36  ;;  %v1237_v22 = vpop.xlane.xlu1 %1236 }
 0x2bd   : > { %v1239_v59 = vpop.xlane.xlu0 %1238  ;;  %v1291_v20 = vmul.f32 0.6931472, %v1921_v32  ;;  %1930 = vlog2.f32 %v1237_v22 }
 0x2be   : > { %1414 = vst [vmem:[%s2193_s26] sm:$0xff] %v1382_v34  ;;  %v1351_v30 = vadd.f32 %v1289_v60, %v2418_v0  ;;  %1932 = vlog2.f32 %v1239_v59 }
 0x2bf   : > { %v1923_v42 = vpop.eup %1922  ;;  %v1352_v19 = vadd.f32 %v1291_v20, %v2412_v53 }
 0x2c0   : > { %v1925_v52 = vpop.eup %1924  ;;  %v1383_v38 = vsub.f32 %v2262_v57, %v1351_v30  ;;  %v1293_v26 = vmul.f32 0.6931472, %v1923_v42  ;;  %v1241_v46 = vpop.xlane.xlu1 %1240 }
 0x2c1   : > { %v1243_v55 = vpop.xlane.xlu0 %1242  ;;  %v1384_v51 = vsub.f32 %v2256_v56, %v1352_v19  ;;  %v1295_v36 = vmul.f32 0.6931472, %v1925_v52  ;;  %1934 = vlog2.f32 %v1241_v46 }
 0x2c2   : > { %1415 = vst [vmem:[%s2193_s26 + $0x8] sm:$0xff] %v1383_v38  ;;  %v1353_v32 = vadd.f32 %v1293_v26, %v2420_v3  ;;  %1936 = vlog2.f32 %v1243_v55 }
 0x2c3   : > { %v1927_v0 = vpop.eup %1926  ;;  %1416 = vst [vmem:[%s2193_s26 + $0x10] sm:$0xff] %v1384_v51  ;;  %v1354_v53 = vadd.f32 %v1295_v36, %v2426_v12 }
 0x2c4   : > { %v1929_v34 = vpop.eup %1928  ;;  %v1385_v57 = vsub.f32 %v2266_v58, %v1353_v32  ;;  %v1297_v60 = vmul.f32 0.6931472, %v1927_v0  ;;  %v1245_v22 = vpop.xlane.xlu1 %1244 }
 0x2c5   : > { %v1247_v59 = vpop.xlane.xlu0 %1246  ;;  %v1386_v56 = vsub.f32 %v2272_v61, %v1354_v53  ;;  %v1299_v20 = vmul.f32 0.6931472, %v1929_v34  ;;  %1938 = vlog2.f32 %v1245_v22 }
 0x2c6   : > { %1417 = vst [vmem:[%s2193_s26 + $0x18] sm:$0xff] %v1385_v57  ;;  %v1355_v3 = vadd.f32 %v1297_v60, %v2428_v15  ;;  %1940 = vlog2.f32 %v1247_v59 }
 0x2c7   : > { %v1931_v30 = vpop.eup %1930  ;;  %1418 = vst [vmem:[%s2193_s26 + $0x20] sm:$0xff] %v1386_v56  ;;  %v1356_v12 = vadd.f32 %v1299_v20, %v2434_v24 }
 0x2c8   : > { %v1933_v42 = vpop.eup %1932  ;;  %v1387_v58 = vsub.f32 %v2276_v62, %v1355_v3  ;;  %v1301_v19 = vmul.f32 0.6931472, %v1931_v30  ;;  %v1249_v52 = vpop.xlane.xlu1 %1248 }
 0x2c9   : > { %v1251_v38 = vpop.xlane.xlu0 %1250  ;;  %v1388_v61 = vsub.f32 %v2282_v1, %v1356_v12  ;;  %v1303_v26 = vmul.f32 0.6931472, %v1933_v42  ;;  %1942 = vlog2.f32 %v1249_v52 }
 0x2ca   : > { %1419 = vst [vmem:[%s2193_s26 + $0x28] sm:$0xff] %v1387_v58  ;;  %v1357_v15 = vadd.f32 %v1301_v19, %v2436_v27  ;;  %1944 = vlog2.f32 %v1251_v38 }
 0x2cb   : > { %v1935_v46 = vpop.eup %1934  ;;  %1420 = vst [vmem:[%s2193_s26 + $0x30] sm:$0xff] %v1388_v61  ;;  %v1358_v24 = vadd.f32 %v1303_v26, %v2442_v40 }
 0x2cc   : > { %v1937_v55 = vpop.eup %1936  ;;  %v1389_v62 = vsub.f32 %v2286_v2, %v1357_v15  ;;  %v1305_v51 = vmul.f32 0.6931472, %v1935_v46  ;;  %v1253_v36 = vpop.xlane.xlu1 %1252 }
 0x2cd   : > { %v1255_v32 = vpop.xlane.xlu0 %1254  ;;  %v1390_v1 = vsub.f32 %v2292_v5, %v1358_v24  ;;  %v1307_v0 = vmul.f32 0.6931472, %v1937_v55  ;;  %1946 = vlog2.f32 %v1253_v36  ;;  %v2750_v24 = vld [vmem:[#allocation4_spill] sm:$0xff] }
 0x2ce   : > { %1421 = vst [vmem:[%s2193_s26 + $0x38] sm:$0xff] %v1389_v62  ;;  %v1359_v27 = vadd.f32 %v1305_v51, %v2446_v44  ;;  %1948 = vlog2.f32 %v1255_v32  ;;  %v2751_v32 = vld [vmem:[#allocation12_spill] sm:$0xff] }
 0x2cf   : > { %v1939_v53 = vpop.eup %1938  ;;  %1422 = vst [vmem:[%s2193_s26 + $0x40] sm:$0xff] %v1390_v1  ;;  %v1360_v40 = vadd.f32 %v1307_v0, %v2454_v7 }
 0x2d0   : > { %v1941_v34 = vpop.eup %1940  ;;  %v1391_v2 = vsub.f32 %v2296_v6, %v1359_v27  ;;  %v1309_v57 = vmul.f32 0.6931472, %v1939_v53  ;;  %v1257_v60 = vpop.xlane.xlu1 %1256  ;;  %v2752_v27 = vld [vmem:[#allocation5_spill] sm:$0xff] }
 0x2d1   : > { %v1259_v22 = vpop.xlane.xlu0 %1258  ;;  %v1392_v5 = vsub.f32 %v2302_v9, %v1360_v40  ;;  %v1311_v59 = vmul.f32 0.6931472, %v1941_v34  ;;  %1950 = vlog2.f32 %v1257_v60  ;;  %v2753_v60 = vld [vmem:[#allocation13_spill] sm:$0xff] }
 0x2d2   : > { %1423 = vst [vmem:[%s2193_s26 + $0x48] sm:$0xff] %v1391_v2  ;;  %v1361_v44 = vadd.f32 %v1309_v57, %v2458_v11  ;;  %1952 = vlog2.f32 %v1259_v22 }
 0x2d3   : > { %v1943_v56 = vpop.eup %1942  ;;  %1424 = vst [vmem:[%s2193_s26 + $0x50] sm:$0xff] %v1392_v5  ;;  %v1362_v7 = vadd.f32 %v1311_v59, %v2466_v35 }
 0x2d4   : > { %v1945_v20 = vpop.eup %1944  ;;  %v1393_v6 = vsub.f32 %v2306_v10, %v1361_v44  ;;  %v1313_v3 = vmul.f32 0.6931472, %v1943_v56  ;;  %v1261_v30 = vpop.xlane.xlu1 %1260  ;;  %v2754_v44 = vld [vmem:[#allocation6_spill] sm:$0xff] }
 0x2d5   : > { %v1263_v12 = vpop.xlane.xlu0 %1262  ;;  %v1394_v9 = vsub.f32 %v2312_v13, %v1362_v7  ;;  %v1315_v42 = vmul.f32 0.6931472, %v1945_v20  ;;  %1954 = vlog2.f32 %v1261_v30  ;;  %v2755_v30 = vld [vmem:[#allocation14_spill] sm:$0xff] }
 0x2d6   : > { %1425 = vst [vmem:[%s2193_s26 + $0x58] sm:$0xff] %v1393_v6  ;;  %v1363_v11 = vadd.f32 %v1313_v3, %v2470_v39  ;;  %1956 = vlog2.f32 %v1263_v12 }
 0x2d7   : > { %v1947_v58 = vpop.eup %1946  ;;  %1426 = vst [vmem:[%s2193_s26 + $0x60] sm:$0xff] %v1394_v9  ;;  %v1364_v35 = vadd.f32 %v1315_v42, %v2478_v4 }
 0x2d8   : > { %v1949_v19 = vpop.eup %1948  ;;  %v1395_v10 = vsub.f32 %v2316_v14, %v1363_v11  ;;  %v1317_v52 = vmul.f32 0.6931472, %v1947_v58  ;;  %v1265_v38 = vpop.xlane.xlu1 %1264  ;;  %v2756_v11 = vld [vmem:[#allocation7_spill] sm:$0xff] }
 0x2d9   : > { %v1267_v61 = vpop.xlane.xlu0 %1266  ;;  %v1396_v13 = vsub.f32 %v2322_v17, %v1364_v35  ;;  %v1319_v26 = vmul.f32 0.6931472, %v1949_v19  ;;  %1958 = vlog2.f32 %v1265_v38  ;;  %v2757_v38 = vld [vmem:[#allocation15_spill] sm:$0xff] }
 0x2da   : > { %1427 = vst [vmem:[%s2193_s26 + $0x68] sm:$0xff] %v1395_v10  ;;  %v1365_v39 = vadd.f32 %v1317_v52, %v2482_v16  ;;  %1960 = vlog2.f32 %v1267_v61 }
 0x2db   : > { %v1951_v15 = vpop.eup %1950  ;;  %1428 = vst [vmem:[%s2193_s26 + $0x70] sm:$0xff] %v1396_v13  ;;  %v1366_v4 = vadd.f32 %v1319_v26, %v2490_v43 }
 0x2dc   : > { %v1953_v46 = vpop.eup %1952  ;;  %v1397_v14 = vsub.f32 %v2750_v24, %v1365_v39  ;;  %v1321_v55 = vmul.f32 0.6931472, %v1951_v15  ;;  %v1269_v62 = vpop.xlane.xlu1 %1268  ;;  %v2758_v39 = vld [vmem:[#allocation8_spill] sm:$0xff] }
 0x2dd   : > { %v1271_v51 = vpop.xlane.xlu0 %1270  ;;  %v1398_v17 = vsub.f32 %v2332_v21, %v1366_v4  ;;  %v1323_v36 = vmul.f32 0.6931472, %v1953_v46  ;;  %1962 = vlog2.f32 %v1269_v62 }
 0x2de   : > { %1429 = vst [vmem:[%s2193_s26 + $0x78] sm:$0xff] %v1397_v14  ;;  %v1367_v16 = vadd.f32 %v1321_v55, %v2751_v32  ;;  %1964 = vlog2.f32 %v1271_v51  ;;  %v2759_v14 = vld [vmem:[#allocation16_spill] sm:$0xff] }
 0x2df   : > { %v1955_v1 = vpop.eup %1954  ;;  %1430 = vst [vmem:[%s2193_s26 + $0x80] sm:$0xff] %v1398_v17  ;;  %v1368_v43 = vadd.f32 %v1323_v36, %v2502_v28  ;;  %v2760_v17 = vld [vmem:[#allocation9_spill] sm:$0xff] }
 0x2e0   : > { %v1957_v0 = vpop.eup %1956  ;;  %v1399_v53 = vsub.f32 %v2752_v27, %v1367_v16  ;;  %v1325_v40 = vmul.f32 0.6931472, %v1955_v1  ;;  %v1273_v34 = vpop.xlane.xlu1 %1272 }
 0x2e1   : > { %v1275_v2 = vpop.xlane.xlu0 %1274  ;;  %v1400_v21 = vsub.f32 %v2342_v25, %v1368_v43  ;;  %v1327_v57 = vmul.f32 0.6931472, %v1957_v0  ;;  %1966 = vlog2.f32 %v1273_v34 }
 0x2e2   : > { %1431 = vst [vmem:[%s2193_s26 + $0x88] sm:$0xff] %v1399_v53  ;;  %v1369_v22 = vadd.f32 %v1325_v40, %v2753_v60  ;;  %1968 = vlog2.f32 %v1275_v2 }
 0x2e3   : > { %v1959_v5 = vpop.eup %1958  ;;  %1432 = vst [vmem:[%s2193_s26 + $0x90] sm:$0xff] %v1400_v21  ;;  %v1370_v28 = vadd.f32 %v1327_v57, %v2514_v63 }
 0x2e4   : > { %v1961_v59 = vpop.eup %1960  ;;  %v1401_v56 = vsub.f32 %v2754_v44, %v1369_v22  ;;  %v1329_v7 = vmul.f32 0.6931472, %v1959_v5  ;;  %v1277_v20 = vpop.xlane.xlu1 %1276  ;;  %v2763_v22 = vld [vmem:[#allocation11_spill] sm:$0xff] }
 0x2e5   : > { %v1279_v6 = vpop.xlane.xlu0 %1278  ;;  %v1402_v25 = vsub.f32 %v2352_v29, %v1370_v28  ;;  %v1331_v3 = vmul.f32 0.6931472, %v1961_v59  ;;  %1970 = vlog2.f32 %v1277_v20 }
 0x2e6   : > { %1433 = vst [vmem:[%s2193_s26 + $0x98] sm:$0xff] %v1401_v56  ;;  %v1371_v12 = vadd.f32 %v1329_v7, %v2755_v30  ;;  %1972 = vlog2.f32 %v1279_v6 }
 0x2e7   : > { %v1963_v9 = vpop.eup %1962  ;;  %1434 = vst [vmem:[%s2193_s26 + $0xa0] sm:$0xff] %v1402_v25  ;;  %v1372_v63 = vadd.f32 %v1331_v3, %v2526_v47 }
 0x2e8   : > { %v1965_v42 = vpop.eup %1964  ;;  %v1403_v58 = vsub.f32 %v2756_v11, %v1371_v12  ;;  %v1333_v35 = vmul.f32 0.6931472, %v1963_v9  ;;  %v1281_v19 = vpop.xlane.xlu1 %1280 }
 0x2e9   : > { %v1283_v10 = vpop.xlane.xlu0 %1282  ;;  %v1404_v29 = vsub.f32 %v2362_v33, %v1372_v63  ;;  %v1335_v52 = vmul.f32 0.6931472, %v1965_v42  ;;  %1974 = vlog2.f32 %v1281_v19 }
 0x2ea   : > { %1435 = vst [vmem:[%s2193_s26 + $0xa8] sm:$0xff] %v1403_v58  ;;  %v1373_v61 = vadd.f32 %v1333_v35, %v2757_v38  ;;  %1976 = vlog2.f32 %v1283_v10 }
 0x2eb   : > { %v1967_v13 = vpop.eup %1966  ;;  %1436 = vst [vmem:[%s2193_s26 + $0xb0] sm:$0xff] %v1404_v29  ;;  %v1374_v47 = vadd.f32 %v1335_v52, %v2538_v31 }
 0x2ec   : > { %v1969_v26 = vpop.eup %1968  ;;  %v1405_v15 = vsub.f32 %v2758_v39, %v1373_v61  ;;  %v1337_v4 = vmul.f32 0.6931472, %v1967_v13  ;;  %v1285_v46 = vpop.xlane.xlu1 %1284 }
 0x2ed   : > { %v1406_v33 = vsub.f32 %v2372_v37, %v1374_v47  ;;  %v1339_v24 = vmul.f32 0.6931472, %v1969_v26  ;;  %1978 = vlog2.f32 %v1285_v46  ;;  %v2761_v37 = vld [vmem:[#allocation17_spill] sm:$0xff] }
 0x2ee   : > { %1437 = vst [vmem:[%s2193_s26 + $0xb8] sm:$0xff] %v1405_v15  ;;  %v1375_v55 = vadd.f32 %v1337_v4, %v2759_v14 }
 0x2ef   : > { %v1971_v62 = vpop.eup %1970  ;;  %1438 = vst [vmem:[%s2193_s26 + $0xc0] sm:$0xff] %v1406_v33  ;;  %v1376_v51 = vadd.f32 %v1339_v24, %v2550_v8  ;;  %v2762_v8 = vld [vmem:[#allocation10_spill] sm:$0xff] }
 0x2f0   : > { %v1973_v31 = vpop.eup %1972  ;;  %v1407_v36 = vsub.f32 %v2760_v17, %v1375_v55  ;;  %v1341_v32 = vmul.f32 0.6931472, %v1971_v62 }
 0x2f1   : > { %v1408_v16 = vsub.f32 %v2382_v41, %v1376_v51  ;;  %v1343_v1 = vmul.f32 0.6931472, %v1973_v31 }
 0x2f2   : > { %1439 = vst [vmem:[%s2193_s26 + $0xc8] sm:$0xff] %v1407_v36  ;;  %v1377_v43 = vadd.f32 %v1341_v32, %v2761_v37 }
 0x2f3   : > { %v1975_v0 = vpop.eup %1974  ;;  %1440 = vst [vmem:[%s2193_s26 + $0xd0] sm:$0xff] %v1408_v16  ;;  %v1378_v27 = vadd.f32 %v1343_v1, %v2562_v48 }
 0x2f4   : > { %v1977_v53 = vpop.eup %1976  ;;  %v1409_v40 = vsub.f32 %v2762_v8, %v1377_v43  ;;  %v1345_v34 = vmul.f32 0.6931472, %v1975_v0 }
 0x2f5   : > { %v1410_v2 = vsub.f32 %v2392_v45, %v1378_v27  ;;  %v1347_v21 = vmul.f32 0.6931472, %v1977_v53 }
 0x2f6   : > { %1441 = vst [vmem:[%s2193_s26 + $0xd8] sm:$0xff] %v1409_v40  ;;  %v1379_v41 = vadd.f32 %v1345_v34, %v2566_v54 }
 0x2f7   : > { %v1979_v57 = vpop.eup %1978  ;;  %1442 = vst [vmem:[%s2193_s26 + $0xe0] sm:$0xff] %v1410_v2  ;;  %v1380_v60 = vadd.f32 %v1347_v21, %v2574_v23 }
 0x2f8   : > { %v1411_v5 = vsub.f32 %v2763_v22, %v1379_v41  ;;  %v1349_v28 = vmul.f32 0.6931472, %v1979_v57 }
 0x2f9   : > { %v1412_v48 = vsub.f32 %v2402_v49, %v1380_v60 }
 0x2fa   : > { %1443 = vst [vmem:[%s2193_s26 + $0xe8] sm:$0xff] %v1411_v5  ;;  %v1381_v59 = vadd.f32 %v1349_v28, %v2578_v18 }
 0x2fb   : > { %1444 = vst [vmem:[%s2193_s26 + $0xf0] sm:$0xff] %v1412_v48 }
 0x2fc   : > { %v1413_v44 = vsub.f32 %v2406_v50, %v1381_v59 }
 0x2fe   : > { %1445 = vst [vmem:[%s2193_s26 + $0xf8] sm:$0xff] %v1413_v44 }
 0x2ff PF: > { %s12_s15 = sadd.s32 1, %s2034_s15   ;;  %s2764_s9 = smov %s2014_s10 }
 0x300   : > { %p9_p0 = scmp.ge.s32.totalorder %s12_s15, 6   ;;  %s2765_s10 = smov %s2103_s22 }
 0x301   : > { %s2766_s11 = smov %s2026_s13  ;;  %s2767_s12 = smov %s2030_s14 }
 0x302   : > { %s2768_s13 = smov %s2771_s16  ;;  %s2769_s14 = smov %s2775_s17 }
 0x303   :  { %11 = sbr.rel (!%p9_p0) target bundleno = 4 (0x4), region = 112 }

</bundles_post_ra>
